<compile_context>
chip_gen: v7x
topology: tpu7x:2x2x1
jax: 0.10.0
libtpu: 0.0.40
codegen_flags: <defaults>
</compile_context>

<pallas_src>
import functools

import jax
import jax.numpy as jnp
from jax.experimental import pallas as pl
from jax.experimental.pallas import tpu as pltpu

_LANES = 128
_SUBLANES = 8


# ----------------------------- Pallas kernels ------------------------------


def _conv_relu_kernel(x_ref, w_ref, b_ref, o_ref, *, pool, w_img, tm):
    """Fused 3x3-conv GEMM tile: one bf16 MXU matmul + bias + ReLU (+ 2x2 max-pool).

    x_ref: (1, TM, 9*Cin) bf16   im2col rows for TM output pixels
    w_ref: (9*Cin, TN)    bf16   taps folded into the contraction dim
    b_ref: (1, TN)        f32
    o_ref: (1, TM, TN) or (1, TM//4, TN) bf16
    """
    acc = jnp.dot(x_ref[0], w_ref[...], preferred_element_type=jnp.float32)
    acc = jnp.maximum(acc + b_ref[...], 0.0)              # (TM, TN) f32
    if pool:
        tn = acc.shape[-1]
        # rows of `acc` are (h*W + w) within this tile; TM is a multiple of 2*W,
        # so every 2x2 pool window lies entirely inside the tile.
        a3 = acc.reshape(tm // 2, 2, tn)
        aw = jnp.maximum(a3[:, 0, :], a3[:, 1, :])        # pool over w -> (TM//2, TN)
        a4 = aw.reshape(tm // (2 * w_img), 2, w_img // 2, tn)
        ah = jnp.maximum(a4[:, 0, :, :], a4[:, 1, :, :])  # pool over h
        acc = ah.reshape(tm // 4, tn)
    o_ref[0] = acc.astype(o_ref.dtype)


def _sq_diff_partial_kernel(a_ref, b_ref, o_ref):
    """Accumulate sum((a-b)^2) over row tiles into a resident (1, 128) block."""
    @pl.when(pl.program_id(0) == 0)
    def _():
        o_ref[...] = jnp.zeros_like(o_ref)
    d = a_ref[...].astype(jnp.float32) - b_ref[...].astype(jnp.float32)
    o_ref[...] += jnp.sum(d * d, axis=0, keepdims=True)


def _sum_partial_kernel(x_ref, o_ref):
    """Accumulate sum(x) over row tiles into a resident (1, 128) block."""
    @pl.when(pl.program_id(0) == 0)
    def _():
        o_ref[...] = jnp.zeros_like(o_ref)
    o_ref[...] += jnp.sum(x_ref[...].astype(jnp.float32), axis=0, keepdims=True)


# ------------------------------ wrappers ------------------------------------


def _pick_tm(h, w, *, pool, target_rows=512):
    """Largest row-tile TM = k*2W (k | H//2) with TM <= ~target_rows.

    TM being a multiple of 2*W keeps complete 2x2 pool windows inside a tile; for
    pooled layers TM//4 must also be sublane-friendly unless the tile is the image."""
    assert h % 2 == 0 and w % 2 == 0, "spatial dims must be even"
    base = 2 * w
    half = h // 2
    kmax = max(1, target_rows // base)
    best = None
    for k in range(1, half + 1):
        if half % k or k > kmax:
            continue
        if pool and (k * w) % 16 != 0 and k != half:
            continue
        best = k
    if best is None:
        best = half                       # whole image: output block == full dim
    return best * base


def conv3x3_relu_pool(x, w, b, *, pool):
    """x: (N, H, W, Cin) -> ReLU(conv3x3(x)+b) [optionally 2x2 max-pooled], bf16 out."""
    n, h, wdt, cin = x.shape
    cout = w.shape[-1]
    hw = h * wdt
    k9 = 9 * cin

    xb = x.astype(jnp.bfloat16)
    # TODO(synk): build the (TM, 9*Cin) im2col rows inside the kernel from a haloed row
    # tile (manual DMA) to avoid the 9x HBM materialization below.
    xp = jnp.pad(xb, ((0, 0), (1, 1), (1, 1), (0, 0)))
    cols = jnp.concatenate(
        [xp[:, dh:dh + h, dw:dw + wdt, :] for dh in range(3) for dw in range(3)],
        axis=-1)                                          # (N, H, W, 9*Cin)
    slabs = cols.reshape(n, hw, k9)
    wmat = w.reshape(k9, cout).astype(jnp.bfloat16)       # taps folded into K
    bmat = b.reshape(1, cout).astype(jnp.float32)

    tm = _pick_tm(h, wdt, pool=pool)
    tn = 256 if cout % 256 == 0 else (128 if cout % 128 == 0 else cout)
    tm_out = tm // 4 if pool else tm
    hw_out = hw // 4 if pool else hw

    kern = functools.partial(_conv_relu_kernel, pool=pool, w_img=wdt, tm=tm)
    out = pl.pallas_call(
        kern,
        out_shape=jax.ShapeDtypeStruct((n, hw_out, cout), jnp.bfloat16),
        grid=(n, hw // tm, cout // tn),
        in_specs=[
            pl.BlockSpec((1, tm, k9), lambda ni, i, j: (ni, i, 0)),
            pl.BlockSpec((k9, tn), lambda ni, i, j: (0, j)),
            pl.BlockSpec((1, tn), lambda ni, i, j: (0, j)),
        ],
        out_specs=pl.BlockSpec((1, tm_out, tn), lambda ni, i, j: (ni, i, j)),
        compiler_params=pltpu.CompilerParams(
            dimension_semantics=("parallel", "parallel", "parallel"),
            vmem_limit_bytes=48 * 1024 * 1024),
    )(slabs, wmat, bmat)

    ho, wo = (h // 2, wdt // 2) if pool else (h, wdt)
    return out.reshape(n, ho, wo, cout)


def _flatten_lane_dense(x, max_tile_rows=512):
    """Flatten to a zero-padded, lane-dense (rows, 128) layout; rows % tile_rows == 0."""
    flat = x.reshape(-1)
    n = flat.size
    rows = -(-n // _LANES)
    rows = -(-rows // _SUBLANES) * _SUBLANES
    tile_rows = min(max_tile_rows, rows)
    rows = -(-rows // tile_rows) * tile_rows
    flat = jnp.pad(flat, (0, rows * _LANES - n))
    return flat.reshape(rows, _LANES), n, tile_rows


def mse_loss(a, b):
    """mean((a - b)**2) over all elements (matches nn.MSELoss default)."""
    a2, n, tr = _flatten_lane_dense(a)
    b2, _, _ = _flatten_lane_dense(b)
    partial = pl.pallas_call(
        _sq_diff_partial_kernel,
        out_shape=jax.ShapeDtypeStruct((1, _LANES), jnp.float32),
        grid=(a2.shape[0] // tr,),
        in_specs=[pl.BlockSpec((tr, _LANES), lambda i: (i, 0)),
                  pl.BlockSpec((tr, _LANES), lambda i: (i, 0))],
        out_specs=pl.BlockSpec((1, _LANES), lambda i: (0, 0)),
        compiler_params=pltpu.CompilerParams(dimension_semantics=("arbitrary",)),
    )(a2, b2)
    return jnp.sum(partial) / float(n)


def adversarial_mean(fake_out):
    """mean(1 - fake_out) == 1 - mean(fake_out)."""
    x2, n, tr = _flatten_lane_dense(fake_out)
    partial = pl.pallas_call(
        _sum_partial_kernel,
        out_shape=jax.ShapeDtypeStruct((1, _LANES), jnp.float32),
        grid=(x2.shape[0] // tr,),
        in_specs=[pl.BlockSpec((tr, _LANES), lambda i: (i, 0))],
        out_specs=pl.BlockSpec((1, _LANES), lambda i: (0, 0)),
        compiler_params=pltpu.CompilerParams(dimension_semantics=("arbitrary",)),
    )(x2)
    return 1.0 - jnp.sum(partial) / float(n)


def vgg_features(x_nhwc, params):
    """VGG19 features[:12]: conv-relu, conv-relu+pool, conv-relu, conv-relu+pool, conv-relu."""
    (w1, b1), (w2, b2), (w3, b3), (w4, b4), (w5, b5) = params
    x = conv3x3_relu_pool(x_nhwc, w1, b1, pool=False)
    x = conv3x3_relu_pool(x, w2, b2, pool=True)
    x = conv3x3_relu_pool(x, w3, b3, pool=False)
    x = conv3x3_relu_pool(x, w4, b4, pool=True)
    x = conv3x3_relu_pool(x, w5, b5, pool=False)
    return x


@jax.jit
def generator_loss(params, fake_out, fake, real):
    """fake_out: (N, 1); fake, real: (N, 3, H, W) NCHW (PyTorch convention)."""
    fake_n = jnp.transpose(fake, (0, 2, 3, 1)).astype(jnp.float32)  # NCHW -> NHWC
    real_n = jnp.transpose(real, (0, 2, 3, 1)).astype(jnp.float32)

    adv = adversarial_mean(fake_out)

    # One VGG pass over the concatenated batch: weights stay resident across 2x blocks.
    both = jnp.concatenate([fake_n, real_n], axis=0).astype(jnp.bfloat16)
    feats = vgg_features(both, params)
    n = fake_n.shape[0]
    feat_fake, feat_real = feats[:n], feats[n:]

    content = mse_loss(fake_n, real_n) + 0.006 * mse_loss(feat_fake, feat_real)
    return content + 0.001 * adv


def init_vgg_params(key):
    # (Cin, Cout) for the 5 conv layers of VGG19 features[:12]
    specs = [(3, 64), (64, 64), (64, 128), (128, 128), (128, 256)]
    params = []
    for i, (cin, cout) in enumerate(specs):
        kw, kb = jax.random.split(jax.random.fold_in(key, i))
        w = jax.random.normal(kw, (3, 3, cin, cout), jnp.float32) * (0.05 / (cin ** 0.5))
        b = jax.random.normal(kb, (cout,), jnp.float32) * 0.01
        params.append((w, b))
    return params


if __name__ == "__main__":
    key = jax.random.PRNGKey(0)
    k1, k2, k3, kp = jax.random.split(key, 4)

    N, C, H, W = 2, 3, 16, 16
    fake = jax.random.uniform(k1, (N, C, H, W), jnp.float32)
    real = jax.random.uniform(k2, (N, C, H, W), jnp.float32)
    fake_out = jax.random.uniform(k3, (N, 1), jnp.float32)

    params = init_vgg_params(kp)
    loss = generator_loss(params, fake_out, fake, real)
    jax.block_until_ready(loss)
    print("KERNEL_OK")
</pallas_src>

<mosaic_0001>
module attributes {stable_mosaic.version = 11 : i64} {
  func.func @_conv_relu_kernel(%arg0: i32, %arg1: i32, %arg2: i32, %arg3: memref<1x256x27xbf16, #tpu.memory_space<vmem>>, %arg4: memref<27x64xbf16, #tpu.memory_space<vmem>>, %arg5: memref<1x64xf32, #tpu.memory_space<vmem>>, %arg6: memref<1x256x64xbf16, #tpu.memory_space<vmem>>) attributes {dimension_semantics = [#tpu.dimension_semantics<parallel>, #tpu.dimension_semantics<parallel>, #tpu.dimension_semantics<parallel>], iteration_bounds = array<i64: 4, 1, 1>, scalar_prefetch = 0 : i64, scratch_operands = 0 : i64, tpu.core_type = #tpu.core_type<tc>, window_params = [{transform_indices = @transform_0, window_bounds = array<i64: 1, 256, 27>}, {transform_indices = @transform_1, window_bounds = array<i64: 27, 64>}, {transform_indices = @transform_2, window_bounds = array<i64: 1, 64>}, {transform_indices = @transform_3, window_bounds = array<i64: 1, 256, 64>}]} {
    %c0 = arith.constant 0 : index
    %c0_0 = arith.constant 0 : index
    %c0_1 = arith.constant 0 : index
    %0 = vector.load %arg3[%c0, %c0_0, %c0_1] : memref<1x256x27xbf16, #tpu.memory_space<vmem>>, vector<1x256x27xbf16>
    %1 = vector.shape_cast %0 : vector<1x256x27xbf16> to vector<256x27xbf16>
    %c0_2 = arith.constant 0 : index
    %c0_3 = arith.constant 0 : index
    %2 = vector.load %arg4[%c0_2, %c0_3] : memref<27x64xbf16, #tpu.memory_space<vmem>>, vector<27x64xbf16>
    %cst = arith.constant dense<0.000000e+00> : vector<256x64xf32>
    %3 = tpu.matmul %1, %2, %cst {dimension_numbers = #tpu.dot_dimension_numbers<[1], [0], [0], [1], [0, 0, 1, 1], [], []>} : vector<256x27xbf16>, vector<27x64xbf16>, vector<256x64xf32> -> vector<256x64xf32>
    %c0_4 = arith.constant 0 : index
    %c0_5 = arith.constant 0 : index
    %4 = vector.load %arg5[%c0_4, %c0_5] : memref<1x64xf32, #tpu.memory_space<vmem>>, vector<1x64xf32>
    %5 = vector.broadcast %4 : vector<1x64xf32> to vector<256x64xf32>
    %6 = arith.addf %3, %5 : vector<256x64xf32>
    %cst_6 = arith.constant 0.000000e+00 : f32
    %7 = vector.broadcast %cst_6 : f32 to vector<256x64xf32>
    %8 = arith.maximumf %6, %7 : vector<256x64xf32>
    %9 = arith.truncf %8 : vector<256x64xf32> to vector<256x64xbf16>
    %c0_7 = arith.constant 0 : index
    %c0_8 = arith.constant 0 : index
    %c0_9 = arith.constant 0 : index
    %10 = vector.load %arg6[%c0_7, %c0_8, %c0_9] : memref<1x256x64xbf16, #tpu.memory_space<vmem>>, vector<1x256x64xbf16>
    %11 = vector.shape_cast %10 : vector<1x256x64xbf16> to vector<256x64xbf16>
    %12 = vector.shape_cast %9 : vector<256x64xbf16> to vector<1x256x64xbf16>
    tpu.vector_store %arg6[%c0_7, %c0_8, %c0_9], %12 {strides = array<i32>} : memref<1x256x64xbf16, #tpu.memory_space<vmem>>, vector<1x256x64xbf16>,
    return
  }
  func.func @transform_0(%arg0: i32, %arg1: i32, %arg2: i32) -> (i32, i32, i32) {
    %c0_i32 = arith.constant 0 : i32
    %c0_i32_0 = arith.constant 0 : i32
    return %arg0, %arg1, %c0_i32 : i32, i32, i32
  }
  func.func @transform_1(%arg0: i32, %arg1: i32, %arg2: i32) -> (i32, i32) {
    %c0_i32 = arith.constant 0 : i32
    %c0_i32_0 = arith.constant 0 : i32
    return %c0_i32, %arg2 : i32, i32
  }
  func.func @transform_2(%arg0: i32, %arg1: i32, %arg2: i32) -> (i32, i32) {
    %c0_i32 = arith.constant 0 : i32
    %c0_i32_0 = arith.constant 0 : i32
    return %c0_i32, %arg2 : i32, i32
  }
  func.func @transform_3(%arg0: i32, %arg1: i32, %arg2: i32) -> (i32, i32, i32) {
    %c0_i32 = arith.constant 0 : i32
    return %arg0, %arg1, %arg2 : i32, i32, i32
  }
}

module attributes {stable_mosaic.version = 11 : i64} {
  func.func @_conv_relu_kernel(%arg0: i32, %arg1: i32, %arg2: i32, %arg3: memref<1x256x576xbf16, #tpu.memory_space<vmem>>, %arg4: memref<576x64xbf16, #tpu.memory_space<vmem>>, %arg5: memref<1x64xf32, #tpu.memory_space<vmem>>, %arg6: memref<1x64x64xbf16, #tpu.memory_space<vmem>>) attributes {dimension_semantics = [#tpu.dimension_semantics<parallel>, #tpu.dimension_semantics<parallel>, #tpu.dimension_semantics<parallel>], iteration_bounds = array<i64: 4, 1, 1>, scalar_prefetch = 0 : i64, scratch_operands = 0 : i64, tpu.core_type = #tpu.core_type<tc>, window_params = [{transform_indices = @transform_0, window_bounds = array<i64: 1, 256, 576>}, {transform_indices = @transform_1, window_bounds = array<i64: 576, 64>}, {transform_indices = @transform_2, window_bounds = array<i64: 1, 64>}, {transform_indices = @transform_3, window_bounds = array<i64: 1, 64, 64>}]} {
    %c0 = arith.constant 0 : index
    %c0_0 = arith.constant 0 : index
    %c0_1 = arith.constant 0 : index
    %0 = vector.load %arg3[%c0, %c0_0, %c0_1] : memref<1x256x576xbf16, #tpu.memory_space<vmem>>, vector<1x256x576xbf16>
    %1 = vector.shape_cast %0 : vector<1x256x576xbf16> to vector<256x576xbf16>
    %c0_2 = arith.constant 0 : index
    %c0_3 = arith.constant 0 : index
    %2 = vector.load %arg4[%c0_2, %c0_3] : memref<576x64xbf16, #tpu.memory_space<vmem>>, vector<576x64xbf16>
    %cst = arith.constant dense<0.000000e+00> : vector<256x64xf32>
    %3 = tpu.matmul %1, %2, %cst {dimension_numbers = #tpu.dot_dimension_numbers<[1], [0], [0], [1], [0, 0, 1, 1], [], []>} : vector<256x576xbf16>, vector<576x64xbf16>, vector<256x64xf32> -> vector<256x64xf32>
    %c0_4 = arith.constant 0 : index
    %c0_5 = arith.constant 0 : index
    %4 = vector.load %arg5[%c0_4, %c0_5] : memref<1x64xf32, #tpu.memory_space<vmem>>, vector<1x64xf32>
    %5 = vector.broadcast %4 : vector<1x64xf32> to vector<256x64xf32>
    %6 = arith.addf %3, %5 : vector<256x64xf32>
    %cst_6 = arith.constant 0.000000e+00 : f32
    %7 = vector.broadcast %cst_6 : f32 to vector<256x64xf32>
    %8 = arith.maximumf %6, %7 : vector<256x64xf32>
    %9 = vector.shape_cast %8 : vector<256x64xf32> to vector<128x2x64xf32>
    %10 = vector.extract_strided_slice %9 {offsets = [0, 0, 0], sizes = [128, 1, 64], strides = [1, 1, 1]} : vector<128x2x64xf32> to vector<128x1x64xf32>
    %11 = vector.shape_cast %10 : vector<128x1x64xf32> to vector<128x64xf32>
    %12 = vector.extract_strided_slice %9 {offsets = [0, 1, 0], sizes = [128, 1, 64], strides = [1, 1, 1]} : vector<128x2x64xf32> to vector<128x1x64xf32>
    %13 = vector.shape_cast %12 : vector<128x1x64xf32> to vector<128x64xf32>
    %14 = arith.maximumf %11, %13 : vector<128x64xf32>
    %15 = vector.shape_cast %14 : vector<128x64xf32> to vector<8x2x8x64xf32>
    %16 = vector.extract_strided_slice %15 {offsets = [0, 0, 0, 0], sizes = [8, 1, 8, 64], strides = [1, 1, 1, 1]} : vector<8x2x8x64xf32> to vector<8x1x8x64xf32>
    %17 = vector.shape_cast %16 : vector<8x1x8x64xf32> to vector<8x8x64xf32>
    %18 = vector.extract_strided_slice %15 {offsets = [0, 1, 0, 0], sizes = [8, 1, 8, 64], strides = [1, 1, 1, 1]} : vector<8x2x8x64xf32> to vector<8x1x8x64xf32>
    %19 = vector.shape_cast %18 : vector<8x1x8x64xf32> to vector<8x8x64xf32>
    %20 = arith.maximumf %17, %19 : vector<8x8x64xf32>
    %21 = vector.shape_cast %20 : vector<8x8x64xf32> to vector<64x64xf32>
    %22 = arith.truncf %21 : vector<64x64xf32> to vector<64x64xbf16>
    %c0_7 = arith.constant 0 : index
    %c0_8 = arith.constant 0 : index
    %c0_9 = arith.constant 0 : index
    %23 = vector.load %arg6[%c0_7, %c0_8, %c0_9] : memref<1x64x64xbf16, #tpu.memory_space<vmem>>, vector<1x64x64xbf16>
    %24 = vector.shape_cast %23 : vector<1x64x64xbf16> to vector<64x64xbf16>
    %25 = vector.shape_cast %22 : vector<64x64xbf16> to vector<1x64x64xbf16>
    tpu.vector_store %arg6[%c0_7, %c0_8, %c0_9], %25 {strides = array<i32>} : memref<1x64x64xbf16, #tpu.memory_space<vmem>>, vector<1x64x64xbf16>,
    return
  }
  func.func @transform_0(%arg0: i32, %arg1: i32, %arg2: i32) -> (i32, i32, i32) {
    %c0_i32 = arith.constant 0 : i32
    %c0_i32_0 = arith.constant 0 : i32
    return %arg0, %arg1, %c0_i32 : i32, i32, i32
  }
  func.func @transform_1(%arg0: i32, %arg1: i32, %arg2: i32) -> (i32, i32) {
    %c0_i32 = arith.constant 0 : i32
    %c0_i32_0 = arith.constant 0 : i32
    return %c0_i32, %arg2 : i32, i32
  }
  func.func @transform_2(%arg0: i32, %arg1: i32, %arg2: i32) -> (i32, i32) {
    %c0_i32 = arith.constant 0 : i32
    %c0_i32_0 = arith.constant 0 : i32
    return %c0_i32, %arg2 : i32, i32
  }
  func.func @transform_3(%arg0: i32, %arg1: i32, %arg2: i32) -> (i32, i32, i32) {
    %c0_i32 = arith.constant 0 : i32
    return %arg0, %arg1, %arg2 : i32, i32, i32
  }
}

module attributes {stable_mosaic.version = 11 : i64} {
  func.func @_conv_relu_kernel(%arg0: i32, %arg1: i32, %arg2: i32, %arg3: memref<1x64x576xbf16, #tpu.memory_space<vmem>>, %arg4: memref<576x128xbf16, #tpu.memory_space<vmem>>, %arg5: memref<1x128xf32, #tpu.memory_space<vmem>>, %arg6: memref<1x64x128xbf16, #tpu.memory_space<vmem>>) attributes {dimension_semantics = [#tpu.dimension_semantics<parallel>, #tpu.dimension_semantics<parallel>, #tpu.dimension_semantics<parallel>], iteration_bounds = array<i64: 4, 1, 1>, scalar_prefetch = 0 : i64, scratch_operands = 0 : i64, tpu.core_type = #tpu.core_type<tc>, window_params = [{transform_indices = @transform_0, window_bounds = array<i64: 1, 64, 576>}, {transform_indices = @transform_1, window_bounds = array<i64: 576, 128>}, {transform_indices = @transform_2, window_bounds = array<i64: 1, 128>}, {transform_indices = @transform_3, window_bounds = array<i64: 1, 64, 128>}]} {
    %c0 = arith.constant 0 : index
    %c0_0 = arith.constant 0 : index
    %c0_1 = arith.constant 0 : index
    %0 = vector.load %arg3[%c0, %c0_0, %c0_1] : memref<1x64x576xbf16, #tpu.memory_space<vmem>>, vector<1x64x576xbf16>
    %1 = vector.shape_cast %0 : vector<1x64x576xbf16> to vector<64x576xbf16>
    %c0_2 = arith.constant 0 : index
    %c0_3 = arith.constant 0 : index
    %2 = vector.load %arg4[%c0_2, %c0_3] : memref<576x128xbf16, #tpu.memory_space<vmem>>, vector<576x128xbf16>
    %cst = arith.constant dense<0.000000e+00> : vector<64x128xf32>
    %3 = tpu.matmul %1, %2, %cst {dimension_numbers = #tpu.dot_dimension_numbers<[1], [0], [0], [1], [0, 0, 1, 1], [], []>} : vector<64x576xbf16>, vector<576x128xbf16>, vector<64x128xf32> -> vector<64x128xf32>
    %c0_4 = arith.constant 0 : index
    %c0_5 = arith.constant 0 : index
    %4 = vector.load %arg5[%c0_4, %c0_5] : memref<1x128xf32, #tpu.memory_space<vmem>>, vector<1x128xf32>
    %5 = vector.broadcast %4 : vector<1x128xf32> to vector<64x128xf32>
    %6 = arith.addf %3, %5 : vector<64x128xf32>
    %cst_6 = arith.constant 0.000000e+00 : f32
    %7 = vector.broadcast %cst_6 : f32 to vector<64x128xf32>
    %8 = arith.maximumf %6, %7 : vector<64x128xf32>
    %9 = arith.truncf %8 : vector<64x128xf32> to vector<64x128xbf16>
    %c0_7 = arith.constant 0 : index
    %c0_8 = arith.constant 0 : index
    %c0_9 = arith.constant 0 : index
    %10 = vector.load %arg6[%c0_7, %c0_8, %c0_9] : memref<1x64x128xbf16, #tpu.memory_space<vmem>>, vector<1x64x128xbf16>
    %11 = vector.shape_cast %10 : vector<1x64x128xbf16> to vector<64x128xbf16>
    %12 = vector.shape_cast %9 : vector<64x128xbf16> to vector<1x64x128xbf16>
    tpu.vector_store %arg6[%c0_7, %c0_8, %c0_9], %12 {strides = array<i32>} : memref<1x64x128xbf16, #tpu.memory_space<vmem>>, vector<1x64x128xbf16>,
    return
  }
  func.func @transform_0(%arg0: i32, %arg1: i32, %arg2: i32) -> (i32, i32, i32) {
    %c0_i32 = arith.constant 0 : i32
    %c0_i32_0 = arith.constant 0 : i32
    return %arg0, %arg1, %c0_i32 : i32, i32, i32
  }
  func.func @transform_1(%arg0: i32, %arg1: i32, %arg2: i32) -> (i32, i32) {
    %c0_i32 = arith.constant 0 : i32
    %c0_i32_0 = arith.constant 0 : i32
    return %c0_i32, %arg2 : i32, i32
  }
  func.func @transform_2(%arg0: i32, %arg1: i32, %arg2: i32) -> (i32, i32) {
    %c0_i32 = arith.constant 0 : i32
    %c0_i32_0 = arith.constant 0 : i32
    return %c0_i32, %arg2 : i32, i32
  }
  func.func @transform_3(%arg0: i32, %arg1: i32, %arg2: i32) -> (i32, i32, i32) {
    %c0_i32 = arith.constant 0 : i32
    return %arg0, %arg1, %arg2 : i32, i32, i32
  }
}

module attributes {stable_mosaic.version = 11 : i64} {
  func.func @_conv_relu_kernel(%arg0: i32, %arg1: i32, %arg2: i32, %arg3: memref<1x64x1152xbf16, #tpu.memory_space<vmem>>, %arg4: memref<1152x128xbf16, #tpu.memory_space<vmem>>, %arg5: memref<1x128xf32, #tpu.memory_space<vmem>>, %arg6: memref<1x16x128xbf16, #tpu.memory_space<vmem>>) attributes {dimension_semantics = [#tpu.dimension_semantics<parallel>, #tpu.dimension_semantics<parallel>, #tpu.dimension_semantics<parallel>], iteration_bounds = array<i64: 4, 1, 1>, scalar_prefetch = 0 : i64, scratch_operands = 0 : i64, tpu.core_type = #tpu.core_type<tc>, window_params = [{transform_indices = @transform_0, window_bounds = array<i64: 1, 64, 1152>}, {transform_indices = @transform_1, window_bounds = array<i64: 1152, 128>}, {transform_indices = @transform_2, window_bounds = array<i64: 1, 128>}, {transform_indices = @transform_3, window_bounds = array<i64: 1, 16, 128>}]} {
    %c0 = arith.constant 0 : index
    %c0_0 = arith.constant 0 : index
    %c0_1 = arith.constant 0 : index
    %0 = vector.load %arg3[%c0, %c0_0, %c0_1] : memref<1x64x1152xbf16, #tpu.memory_space<vmem>>, vector<1x64x1152xbf16>
    %1 = vector.shape_cast %0 : vector<1x64x1152xbf16> to vector<64x1152xbf16>
    %c0_2 = arith.constant 0 : index
    %c0_3 = arith.constant 0 : index
    %2 = vector.load %arg4[%c0_2, %c0_3] : memref<1152x128xbf16, #tpu.memory_space<vmem>>, vector<1152x128xbf16>
    %cst = arith.constant dense<0.000000e+00> : vector<64x128xf32>
    %3 = tpu.matmul %1, %2, %cst {dimension_numbers = #tpu.dot_dimension_numbers<[1], [0], [0], [1], [0, 0, 1, 1], [], []>} : vector<64x1152xbf16>, vector<1152x128xbf16>, vector<64x128xf32> -> vector<64x128xf32>
    %c0_4 = arith.constant 0 : index
    %c0_5 = arith.constant 0 : index
    %4 = vector.load %arg5[%c0_4, %c0_5] : memref<1x128xf32, #tpu.memory_space<vmem>>, vector<1x128xf32>
    %5 = vector.broadcast %4 : vector<1x128xf32> to vector<64x128xf32>
    %6 = arith.addf %3, %5 : vector<64x128xf32>
    %cst_6 = arith.constant 0.000000e+00 : f32
    %7 = vector.broadcast %cst_6 : f32 to vector<64x128xf32>
    %8 = arith.maximumf %6, %7 : vector<64x128xf32>
    %9 = vector.shape_cast %8 : vector<64x128xf32> to vector<32x2x128xf32>
    %10 = vector.extract_strided_slice %9 {offsets = [0, 0, 0], sizes = [32, 1, 128], strides = [1, 1, 1]} : vector<32x2x128xf32> to vector<32x1x128xf32>
    %11 = vector.shape_cast %10 : vector<32x1x128xf32> to vector<32x128xf32>
    %12 = vector.extract_strided_slice %9 {offsets = [0, 1, 0], sizes = [32, 1, 128], strides = [1, 1, 1]} : vector<32x2x128xf32> to vector<32x1x128xf32>
    %13 = vector.shape_cast %12 : vector<32x1x128xf32> to vector<32x128xf32>
    %14 = arith.maximumf %11, %13 : vector<32x128xf32>
    %15 = vector.shape_cast %14 : vector<32x128xf32> to vector<4x2x4x128xf32>
    %16 = vector.extract_strided_slice %15 {offsets = [0, 0, 0, 0], sizes = [4, 1, 4, 128], strides = [1, 1, 1, 1]} : vector<4x2x4x128xf32> to vector<4x1x4x128xf32>
    %17 = vector.shape_cast %16 : vector<4x1x4x128xf32> to vector<4x4x128xf32>
    %18 = vector.extract_strided_slice %15 {offsets = [0, 1, 0, 0], sizes = [4, 1, 4, 128], strides = [1, 1, 1, 1]} : vector<4x2x4x128xf32> to vector<4x1x4x128xf32>
    %19 = vector.shape_cast %18 : vector<4x1x4x128xf32> to vector<4x4x128xf32>
    %20 = arith.maximumf %17, %19 : vector<4x4x128xf32>
    %21 = vector.shape_cast %20 : vector<4x4x128xf32> to vector<16x128xf32>
    %22 = arith.truncf %21 : vector<16x128xf32> to vector<16x128xbf16>
    %c0_7 = arith.constant 0 : index
    %c0_8 = arith.constant 0 : index
    %c0_9 = arith.constant 0 : index
    %23 = vector.load %arg6[%c0_7, %c0_8, %c0_9] : memref<1x16x128xbf16, #tpu.memory_space<vmem>>, vector<1x16x128xbf16>
    %24 = vector.shape_cast %23 : vector<1x16x128xbf16> to vector<16x128xbf16>
    %25 = vector.shape_cast %22 : vector<16x128xbf16> to vector<1x16x128xbf16>
    tpu.vector_store %arg6[%c0_7, %c0_8, %c0_9], %25 {strides = array<i32>} : memref<1x16x128xbf16, #tpu.memory_space<vmem>>, vector<1x16x128xbf16>,
    return
  }
  func.func @transform_0(%arg0: i32, %arg1: i32, %arg2: i32) -> (i32, i32, i32) {
    %c0_i32 = arith.constant 0 : i32
    %c0_i32_0 = arith.constant 0 : i32
    return %arg0, %arg1, %c0_i32 : i32, i32, i32
  }
  func.func @transform_1(%arg0: i32, %arg1: i32, %arg2: i32) -> (i32, i32) {
    %c0_i32 = arith.constant 0 : i32
    %c0_i32_0 = arith.constant 0 : i32
    return %c0_i32, %arg2 : i32, i32
  }
  func.func @transform_2(%arg0: i32, %arg1: i32, %arg2: i32) -> (i32, i32) {
    %c0_i32 = arith.constant 0 : i32
    %c0_i32_0 = arith.constant 0 : i32
    return %c0_i32, %arg2 : i32, i32
  }
  func.func @transform_3(%arg0: i32, %arg1: i32, %arg2: i32) -> (i32, i32, i32) {
    %c0_i32 = arith.constant 0 : i32
    return %arg0, %arg1, %arg2 : i32, i32, i32
  }
}

module attributes {stable_mosaic.version = 11 : i64} {
  func.func @_conv_relu_kernel(%arg0: i32, %arg1: i32, %arg2: i32, %arg3: memref<1x16x1152xbf16, #tpu.memory_space<vmem>>, %arg4: memref<1152x256xbf16, #tpu.memory_space<vmem>>, %arg5: memref<1x256xf32, #tpu.memory_space<vmem>>, %arg6: memref<1x16x256xbf16, #tpu.memory_space<vmem>>) attributes {dimension_semantics = [#tpu.dimension_semantics<parallel>, #tpu.dimension_semantics<parallel>, #tpu.dimension_semantics<parallel>], iteration_bounds = array<i64: 4, 1, 1>, scalar_prefetch = 0 : i64, scratch_operands = 0 : i64, tpu.core_type = #tpu.core_type<tc>, window_params = [{transform_indices = @transform_0, window_bounds = array<i64: 1, 16, 1152>}, {transform_indices = @transform_1, window_bounds = array<i64: 1152, 256>}, {transform_indices = @transform_2, window_bounds = array<i64: 1, 256>}, {transform_indices = @transform_3, window_bounds = array<i64: 1, 16, 256>}]} {
    %c0 = arith.constant 0 : index
    %c0_0 = arith.constant 0 : index
    %c0_1 = arith.constant 0 : index
    %0 = vector.load %arg3[%c0, %c0_0, %c0_1] : memref<1x16x1152xbf16, #tpu.memory_space<vmem>>, vector<1x16x1152xbf16>
    %1 = vector.shape_cast %0 : vector<1x16x1152xbf16> to vector<16x1152xbf16>
    %c0_2 = arith.constant 0 : index
    %c0_3 = arith.constant 0 : index
    %2 = vector.load %arg4[%c0_2, %c0_3] : memref<1152x256xbf16, #tpu.memory_space<vmem>>, vector<1152x256xbf16>
    %cst = arith.constant dense<0.000000e+00> : vector<16x256xf32>
    %3 = tpu.matmul %1, %2, %cst {dimension_numbers = #tpu.dot_dimension_numbers<[1], [0], [0], [1], [0, 0, 1, 1], [], []>} : vector<16x1152xbf16>, vector<1152x256xbf16>, vector<16x256xf32> -> vector<16x256xf32>
    %c0_4 = arith.constant 0 : index
    %c0_5 = arith.constant 0 : index
    %4 = vector.load %arg5[%c0_4, %c0_5] : memref<1x256xf32, #tpu.memory_space<vmem>>, vector<1x256xf32>
    %5 = vector.broadcast %4 : vector<1x256xf32> to vector<16x256xf32>
    %6 = arith.addf %3, %5 : vector<16x256xf32>
    %cst_6 = arith.constant 0.000000e+00 : f32
    %7 = vector.broadcast %cst_6 : f32 to vector<16x256xf32>
    %8 = arith.maximumf %6, %7 : vector<16x256xf32>
    %9 = arith.truncf %8 : vector<16x256xf32> to vector<16x256xbf16>
    %c0_7 = arith.constant 0 : index
    %c0_8 = arith.constant 0 : index
    %c0_9 = arith.constant 0 : index
    %10 = vector.load %arg6[%c0_7, %c0_8, %c0_9] : memref<1x16x256xbf16, #tpu.memory_space<vmem>>, vector<1x16x256xbf16>
    %11 = vector.shape_cast %10 : vector<1x16x256xbf16> to vector<16x256xbf16>
    %12 = vector.shape_cast %9 : vector<16x256xbf16> to vector<1x16x256xbf16>
    tpu.vector_store %arg6[%c0_7, %c0_8, %c0_9], %12 {strides = array<i32>} : memref<1x16x256xbf16, #tpu.memory_space<vmem>>, vector<1x16x256xbf16>,
    return
  }
  func.func @transform_0(%arg0: i32, %arg1: i32, %arg2: i32) -> (i32, i32, i32) {
    %c0_i32 = arith.constant 0 : i32
    %c0_i32_0 = arith.constant 0 : i32
    return %arg0, %arg1, %c0_i32 : i32, i32, i32
  }
  func.func @transform_1(%arg0: i32, %arg1: i32, %arg2: i32) -> (i32, i32) {
    %c0_i32 = arith.constant 0 : i32
    %c0_i32_0 = arith.constant 0 : i32
    return %c0_i32, %arg2 : i32, i32
  }
  func.func @transform_2(%arg0: i32, %arg1: i32, %arg2: i32) -> (i32, i32) {
    %c0_i32 = arith.constant 0 : i32
    %c0_i32_0 = arith.constant 0 : i32
    return %c0_i32, %arg2 : i32, i32
  }
  func.func @transform_3(%arg0: i32, %arg1: i32, %arg2: i32) -> (i32, i32, i32) {
    %c0_i32 = arith.constant 0 : i32
    return %arg0, %arg1, %arg2 : i32, i32, i32
  }
}

module attributes {stable_mosaic.version = 11 : i64} {
  func.func @_sq_diff_partial_kernel(%arg0: i32, %arg1: memref<64x128xbf16, #tpu.memory_space<vmem>>, %arg2: memref<64x128xbf16, #tpu.memory_space<vmem>>, %arg3: memref<1x128xf32, #tpu.memory_space<vmem>>) attributes {dimension_semantics = [#tpu.dimension_semantics<arbitrary>], iteration_bounds = array<i64: 1>, scalar_prefetch = 0 : i64, scratch_operands = 0 : i64, tpu.core_type = #tpu.core_type<tc>, window_params = [{transform_indices = @transform_0, window_bounds = array<i64: 64, 128>}, {transform_indices = @transform_1, window_bounds = array<i64: 64, 128>}, {pipeline_mode = #tpu.pipeline_mode<synchronous>, transform_indices = @transform_2, window_bounds = array<i64: 1, 128>}]} {
    %c0_i32 = arith.constant 0 : i32
    %0 = arith.cmpi eq, %arg0, %c0_i32 : i32
    %1 = arith.extui %0 : i1 to i32
    %c0_i32_0 = arith.constant 0 : i32
    %2 = arith.cmpi ne, %1, %c0_i32_0 : i32
    scf.if %2 {
      %cst_8 = arith.constant 0.000000e+00 : f32
      %14 = vector.broadcast %cst_8 : f32 to vector<1x128xf32>
      %c0_9 = arith.constant 0 : index
      %c0_10 = arith.constant 0 : index
      %15 = vector.load %arg3[%c0_9, %c0_10] : memref<1x128xf32, #tpu.memory_space<vmem>>, vector<1x128xf32>
      tpu.vector_store %arg3[%c0_9, %c0_10], %14 {strides = array<i32>} : memref<1x128xf32, #tpu.memory_space<vmem>>, vector<1x128xf32>,
    } else {
    }
    %c0 = arith.constant 0 : index
    %c0_1 = arith.constant 0 : index
    %3 = vector.load %arg1[%c0, %c0_1] : memref<64x128xbf16, #tpu.memory_space<vmem>>, vector<64x128xbf16>
    %4 = arith.extf %3 : vector<64x128xbf16> to vector<64x128xf32>
    %c0_2 = arith.constant 0 : index
    %c0_3 = arith.constant 0 : index
    %5 = vector.load %arg2[%c0_2, %c0_3] : memref<64x128xbf16, #tpu.memory_space<vmem>>, vector<64x128xbf16>
    %6 = arith.extf %5 : vector<64x128xbf16> to vector<64x128xf32>
    %7 = arith.subf %4, %6 : vector<64x128xf32>
    %c0_4 = arith.constant 0 : index
    %c0_5 = arith.constant 0 : index
    %8 = vector.load %arg3[%c0_4, %c0_5] : memref<1x128xf32, #tpu.memory_space<vmem>>, vector<1x128xf32>
    %9 = arith.mulf %7, %7 : vector<64x128xf32>
    %cst = arith.constant dense<0.000000e+00> : vector<128xf32>
    %10 = vector.multi_reduction <add>, %9, %cst [0] : vector<64x128xf32> to vector<128xf32>
    %11 = vector.shape_cast %10 : vector<128xf32> to vector<1x128xf32>
    %12 = arith.addf %8, %11 : vector<1x128xf32>
    %c0_6 = arith.constant 0 : index
    %c0_7 = arith.constant 0 : index
    %13 = vector.load %arg3[%c0_6, %c0_7] : memref<1x128xf32, #tpu.memory_space<vmem>>, vector<1x128xf32>
    tpu.vector_store %arg3[%c0_6, %c0_7], %12 {strides = array<i32>} : memref<1x128xf32, #tpu.memory_space<vmem>>, vector<1x128xf32>,
    return
  }
  func.func @transform_0(%arg0: i32) -> (i32, i32) {
    %c0_i32 = arith.constant 0 : i32
    %c0_i32_0 = arith.constant 0 : i32
    return %arg0, %c0_i32 : i32, i32
  }
  func.func @transform_1(%arg0: i32) -> (i32, i32) {
    %c0_i32 = arith.constant 0 : i32
    %c0_i32_0 = arith.constant 0 : i32
    return %arg0, %c0_i32 : i32, i32
  }
  func.func @transform_2(%arg0: i32) -> (i32, i32) {
    %c0_i32 = arith.constant 0 : i32
    %c0_i32_0 = arith.constant 0 : i32
    %c0_i32_1 = arith.constant 0 : i32
    return %c0_i32, %c0_i32_0 : i32, i32
  }
}

module attributes {stable_mosaic.version = 11 : i64} {
  func.func @_sq_diff_partial_kernel(%arg0: i32, %arg1: memref<16x128xf32, #tpu.memory_space<vmem>>, %arg2: memref<16x128xf32, #tpu.memory_space<vmem>>, %arg3: memref<1x128xf32, #tpu.memory_space<vmem>>) attributes {dimension_semantics = [#tpu.dimension_semantics<arbitrary>], iteration_bounds = array<i64: 1>, scalar_prefetch = 0 : i64, scratch_operands = 0 : i64, tpu.core_type = #tpu.core_type<tc>, window_params = [{transform_indices = @transform_0, window_bounds = array<i64: 16, 128>}, {transform_indices = @transform_1, window_bounds = array<i64: 16, 128>}, {pipeline_mode = #tpu.pipeline_mode<synchronous>, transform_indices = @transform_2, window_bounds = array<i64: 1, 128>}]} {
    %c0_i32 = arith.constant 0 : i32
    %0 = arith.cmpi eq, %arg0, %c0_i32 : i32
    %1 = arith.extui %0 : i1 to i32
    %c0_i32_0 = arith.constant 0 : i32
    %2 = arith.cmpi ne, %1, %c0_i32_0 : i32
    scf.if %2 {
      %cst_8 = arith.constant 0.000000e+00 : f32
      %12 = vector.broadcast %cst_8 : f32 to vector<1x128xf32>
      %c0_9 = arith.constant 0 : index
      %c0_10 = arith.constant 0 : index
      %13 = vector.load %arg3[%c0_9, %c0_10] : memref<1x128xf32, #tpu.memory_space<vmem>>, vector<1x128xf32>
      tpu.vector_store %arg3[%c0_9, %c0_10], %12 {strides = array<i32>} : memref<1x128xf32, #tpu.memory_space<vmem>>, vector<1x128xf32>,
    } else {
    }
    %c0 = arith.constant 0 : index
    %c0_1 = arith.constant 0 : index
    %3 = vector.load %arg1[%c0, %c0_1] : memref<16x128xf32, #tpu.memory_space<vmem>>, vector<16x128xf32>
    %c0_2 = arith.constant 0 : index
    %c0_3 = arith.constant 0 : index
    %4 = vector.load %arg2[%c0_2, %c0_3] : memref<16x128xf32, #tpu.memory_space<vmem>>, vector<16x128xf32>
    %5 = arith.subf %3, %4 : vector<16x128xf32>
    %c0_4 = arith.constant 0 : index
    %c0_5 = arith.constant 0 : index
    %6 = vector.load %arg3[%c0_4, %c0_5] : memref<1x128xf32, #tpu.memory_space<vmem>>, vector<1x128xf32>
    %7 = arith.mulf %5, %5 : vector<16x128xf32>
    %cst = arith.constant dense<0.000000e+00> : vector<128xf32>
    %8 = vector.multi_reduction <add>, %7, %cst [0] : vector<16x128xf32> to vector<128xf32>
    %9 = vector.shape_cast %8 : vector<128xf32> to vector<1x128xf32>
    %10 = arith.addf %6, %9 : vector<1x128xf32>
    %c0_6 = arith.constant 0 : index
    %c0_7 = arith.constant 0 : index
    %11 = vector.load %arg3[%c0_6, %c0_7] : memref<1x128xf32, #tpu.memory_space<vmem>>, vector<1x128xf32>
    tpu.vector_store %arg3[%c0_6, %c0_7], %10 {strides = array<i32>} : memref<1x128xf32, #tpu.memory_space<vmem>>, vector<1x128xf32>,
    return
  }
  func.func @transform_0(%arg0: i32) -> (i32, i32) {
    %c0_i32 = arith.constant 0 : i32
    %c0_i32_0 = arith.constant 0 : i32
    return %arg0, %c0_i32 : i32, i32
  }
  func.func @transform_1(%arg0: i32) -> (i32, i32) {
    %c0_i32 = arith.constant 0 : i32
    %c0_i32_0 = arith.constant 0 : i32
    return %arg0, %c0_i32 : i32, i32
  }
  func.func @transform_2(%arg0: i32) -> (i32, i32) {
    %c0_i32 = arith.constant 0 : i32
    %c0_i32_0 = arith.constant 0 : i32
    %c0_i32_1 = arith.constant 0 : i32
    return %c0_i32, %c0_i32_0 : i32, i32
  }
}

module attributes {stable_mosaic.version = 11 : i64} {
  func.func @_sum_partial_kernel(%arg0: i32, %arg1: memref<8x128xf32, #tpu.memory_space<vmem>>, %arg2: memref<1x128xf32, #tpu.memory_space<vmem>>) attributes {dimension_semantics = [#tpu.dimension_semantics<arbitrary>], iteration_bounds = array<i64: 1>, scalar_prefetch = 0 : i64, scratch_operands = 0 : i64, tpu.core_type = #tpu.core_type<tc>, window_params = [{transform_indices = @transform_0, window_bounds = array<i64: 8, 128>}, {pipeline_mode = #tpu.pipeline_mode<synchronous>, transform_indices = @transform_1, window_bounds = array<i64: 1, 128>}]} {
    %c0_i32 = arith.constant 0 : i32
    %0 = arith.cmpi eq, %arg0, %c0_i32 : i32
    %1 = arith.extui %0 : i1 to i32
    %c0_i32_0 = arith.constant 0 : i32
    %2 = arith.cmpi ne, %1, %c0_i32_0 : i32
    scf.if %2 {
      %cst_6 = arith.constant 0.000000e+00 : f32
      %9 = vector.broadcast %cst_6 : f32 to vector<1x128xf32>
      %c0_7 = arith.constant 0 : index
      %c0_8 = arith.constant 0 : index
      %10 = vector.load %arg2[%c0_7, %c0_8] : memref<1x128xf32, #tpu.memory_space<vmem>>, vector<1x128xf32>
      tpu.vector_store %arg2[%c0_7, %c0_8], %9 {strides = array<i32>} : memref<1x128xf32, #tpu.memory_space<vmem>>, vector<1x128xf32>,
    } else {
    }
    %c0 = arith.constant 0 : index
    %c0_1 = arith.constant 0 : index
    %3 = vector.load %arg2[%c0, %c0_1] : memref<1x128xf32, #tpu.memory_space<vmem>>, vector<1x128xf32>
    %c0_2 = arith.constant 0 : index
    %c0_3 = arith.constant 0 : index
    %4 = vector.load %arg1[%c0_2, %c0_3] : memref<8x128xf32, #tpu.memory_space<vmem>>, vector<8x128xf32>
    %cst = arith.constant dense<0.000000e+00> : vector<128xf32>
    %5 = vector.multi_reduction <add>, %4, %cst [0] : vector<8x128xf32> to vector<128xf32>
    %6 = vector.shape_cast %5 : vector<128xf32> to vector<1x128xf32>
    %7 = arith.addf %3, %6 : vector<1x128xf32>
    %c0_4 = arith.constant 0 : index
    %c0_5 = arith.constant 0 : index
    %8 = vector.load %arg2[%c0_4, %c0_5] : memref<1x128xf32, #tpu.memory_space<vmem>>, vector<1x128xf32>
    tpu.vector_store %arg2[%c0_4, %c0_5], %7 {strides = array<i32>} : memref<1x128xf32, #tpu.memory_space<vmem>>, vector<1x128xf32>,
    return
  }
  func.func @transform_0(%arg0: i32) -> (i32, i32) {
    %c0_i32 = arith.constant 0 : i32
    %c0_i32_0 = arith.constant 0 : i32
    return %arg0, %c0_i32 : i32, i32
  }
  func.func @transform_1(%arg0: i32) -> (i32, i32) {
    %c0_i32 = arith.constant 0 : i32
    %c0_i32_0 = arith.constant 0 : i32
    %c0_i32_1 = arith.constant 0 : i32
    return %c0_i32, %c0_i32_0 : i32, i32
  }
}

</mosaic_0001>

<bundles_post_ra>
// kernel: generator_loss.9
= control target key start
LH: loop header
LB: loop body
LE: loop exit
PB: predicated region body
PF: predicated region fallthrough
CT: control target
= control target key end

     0   :  { %s1188_s12 = smov 0   ;;  %s1190_s13 = smov 0   ;;  %s1371_s0 = inlined_call_operand.vmem [shape: bf16[4,256,27], index: 0, kind: input, shape index: {}]   ;;  %s1372_s1 = inlined_call_operand.vmem [shape: bf16[27,64], index: 1, kind: input, shape index: {}]   ;;  %s1373_s2 = inlined_call_operand.vmem [shape: f32[1,64], index: 2, kind: input, shape index: {}]   ;;  %s1374_s3 = inlined_call_operand.vmem [shape: bf16[4,256,64], index: 3, kind: output, shape index: {}]  }
   0x1   :  { %s1192_s14 = smov 0  }
   0x2 LB: > { %s32_s15 = sadd.s32 1, %s1161_s13  ;;  %p934_p0 = scmp.ge.s32.totalorder %s1165_s14, 1  ;;  %s1165_s14 = sphi %s1192_s14, %s13_s14   ;;  %s1161_s13 = sphi %s1190_s13, %s1376_s13   ;;  %s1157_s12 = sphi %s1188_s12, %s1375_s12  }
   0x3   : > { %p34_p1 = scmp.ge.s32.totalorder %s32_s15, 4  ;;  %p184_p2 = scmp.lt.s32.totalorder %s1165_s14, 5 }
   0x5   : > { %s1378_s15 = smov (%p34_p1, %s32_s15), 0  ;;  %p185_p3 = pnand %p934_p0, %p184_p2 }
   0x6   : > { %v1125_v0 = vld [vmem:[%s1372_s1] sm:$0xff] (!%p185_p3)   ;;  %vm440_vm0 = vcmask (!%p185_p3), 1044480   ;;  %v1126_v1 = vld [vmem:[%s1372_s1 + $0x8] sm:$0x3f] (!%p185_p3)   ;;  %vm441_vm1 = vcmask (!%p185_p3), 1045504   ;;  %p227_p4 = scmp.lt.s32.totalorder (!%p185_p3), %s1157_s12, 3 }
   0x7   : > { %188 = sbr.rel (%p185_p3) target bundleno = 266 (0x10a), region = 32  ;;  %1060 = vmatprep.subr.bf16.mxu0 (!%p185_p3), %v1125_v0  ;;  %1096 = vmatprep.subr.bf16.mxu1 (!%p185_p3), %v1125_v0  ;;  %v1167_v2 = vmov (!%p185_p3), 65535   ;;  %vm391_vm2 = vcmask (!%p185_p3), 220160   ;;  %v1257_v22 = vld [vmem:[%s1373_s2] ss:$0 sm:$0xff] (!%p185_p3)  ;;  %vm768_vm3 = vcmask (!%p185_p3), 519168  }
   0x8   : > { %1061 = vmatpush3.bf16.msra.mxu0 (!%p185_p3), %v1125_v0  ;;  %1098 = vmatpush3.bf16.msra.mxu1 (!%p185_p3), %v1125_v0  ;;  %v442_v3 = vsel (!%p185_p3), %vm440_vm0, 4294967295, %v1167_v2 }
   0x9   : > { %v443_v4 = vsel (!%p185_p3), %vm441_vm1, %v442_v3, 0 }
   0xa   : > { %v445_v5 = vand.u32 (!%p185_p3), %v1126_v1, %v443_v4 }
   0xc   : > { %1062 = vmatprep.subr.bf16.mxu0 (!%p185_p3), %v445_v5  ;;  %1097 = vmatprep.subr.bf16.mxu1 (!%p185_p3), %v445_v5 }
   0xd   : > { %1063 = vmatpush3.bf16.msra.mxu0 (!%p185_p3), %v445_v5  ;;  %1099 = vmatpush3.bf16.msra.mxu1 (!%p185_p3), %v445_v5 }
   0xe   : > { %s1380_s12 = smov (!%p227_p4, %s1157_s12), 3 }
   0xf   : > { %s1008_s20 = sshll.u32 %s1380_s12, 7 }
  0x10   : > { %s1220_s23 = scalar_lea.vmem %s1371_s0, %s1008_s20  ;;  %s1269_s28 = scalar_lea.vmem %s1374_s3, %s1008_s20 }
  0x11   : > { %v1127_v6 = vld [vmem:[%s1220_s23] sm:$0xff]   ;;  %v1129_v8 = vld [vmem:[%s1220_s23 + $0x8] sm:$0xff]   ;;  %v1131_v10 = vld [vmem:[%s1220_s23 + $0x10] sm:$0xff]  }
  0x12   : > { %v1128_v7 = vld [vmem:[%s1220_s23 + $0x40] sm:$0xff]   ;;  %1064 = vmatprep.mubr.msk.bf16.mxu0 %vm391_vm2, %v1127_v6  ;;  %v1130_v9 = vld [vmem:[%s1220_s23 + $0x48] sm:$0xff]   ;;  %v1132_v11 = vld [vmem:[%s1220_s23 + $0x50] sm:$0xff]  }
  0x13   : > { %1080 = vmatprep.mubr.msk.bf16.mxu1 %vm391_vm2, %v1128_v7  ;;  %1065 = vmatmul.mubr.msk.bf16.vlgmr.msra.gmra.mrb[0].mxu0 %vm391_vm2, %v1129_v8  ;;  %v1133_v12 = vld [vmem:[%s1220_s23 + $0x18] sm:$0xff]   ;;  %v1135_v14 = vld [vmem:[%s1220_s23 + $0x20] sm:$0xff]   ;;  %v1137_v16 = vld [vmem:[%s1220_s23 + $0x28] sm:$0xff]  }
  0x14   : > { %1081 = vmatmul.mubr.msk.bf16.vlgmr.msra.gmra.mrb[0].mxu1 %vm391_vm2, %v1130_v9  ;;  %1068 = vmatprep.mubr.msk.bf16.mxu0 %vm391_vm2, %v1131_v10  ;;  %v1134_v13 = vld [vmem:[%s1220_s23 + $0x58] sm:$0xff]   ;;  %v1136_v15 = vld [vmem:[%s1220_s23 + $0x60] sm:$0xff]   ;;  %v1138_v17 = vld [vmem:[%s1220_s23 + $0x68] sm:$0xff]  }
  0x15   : > { %1084 = vmatprep.mubr.msk.bf16.mxu1 %vm391_vm2, %v1132_v11  ;;  %v1139_v18 = vld [vmem:[%s1220_s23 + $0x30] sm:$0xff]   ;;  %v1141_v20 = vld [vmem:[%s1220_s23 + $0x38] sm:$0xff]  }
  0x16   : > { %v1140_v19 = vld [vmem:[%s1220_s23 + $0x70] sm:$0xff]   ;;  %v1142_v21 = vld [vmem:[%s1220_s23 + $0x78] sm:$0xff]  }
  0x1b   : > { %1069 = vmatmul.mubr.msk.bf16.gmra.mrb[4].mxu0 %vm391_vm2, %v1133_v12 }
  0x1c   : > { %1085 = vmatmul.mubr.msk.bf16.gmra.mrb[4].mxu1 %vm391_vm2, %v1134_v13  ;;  %1072 = vmatprep.mubr.msk.bf16.mxu0 %vm391_vm2, %v1135_v14 }
  0x1d   : > { %1088 = vmatprep.mubr.msk.bf16.mxu1 %vm391_vm2, %v1136_v15 }
  0x23   : > { %1073 = vmatmul.mubr.msk.bf16.gmra.mrb[8].mxu0 %vm391_vm2, %v1137_v16 }
  0x24   : > { %1089 = vmatmul.mubr.msk.bf16.gmra.mrb[8].mxu1 %vm391_vm2, %v1138_v17  ;;  %1076 = vmatprep.mubr.msk.bf16.mxu0 %vm391_vm2, %v1139_v18 }
  0x25   : > { %1092 = vmatprep.mubr.msk.bf16.mxu1 %vm391_vm2, %v1140_v19 }
  0x2b   : > { %1077 = vmatmul.mubr.msk.bf16.gmra.mrb[12].mxu0 %vm391_vm2, %v1141_v20 }
  0x2c   : > { %1093 = vmatmul.mubr.msk.bf16.gmra.mrb[12].mxu1 %vm391_vm2, %v1142_v21 }
  0xe6   : > { %v1066_v23 = vpop.f32.mrb[0].mxu0 }
  0xe7   : > { %v490_v24 = vadd.f32 %v1066_v23, %v1257_v22  ;;  %v1082_v25 = vpop.f32.mrb[0].mxu1  ;;  %v481_v26 = vpop.f32.mrb[1].mxu0 }
  0xe8   : > { %v554_v27 = vadd.f32 %v1082_v25, %v1257_v22  ;;  %v482_v28 = vadd.f32 %v1257_v22, %v481_v26  ;;  %v545_v29 = vpop.f32.mrb[1].mxu1  ;;  %v1067_v30 = vpop.f32.mrb[2].mxu0 }
  0xe9   : > { %v610_v31 = vmax.f32 %v490_v24, 0.0  ;;  %v546_v32 = vadd.f32 %v1257_v22, %v545_v29  ;;  %v493_v33 = vadd.f32 %v1067_v30, %v1257_v22  ;;  %v1083_v34 = vpop.f32.mrb[2].mxu1  ;;  %v484_v35 = vpop.f32.mrb[3].mxu0 }
  0xea   : > { %v626_v36 = vmax.f32 %v554_v27, 0.0  ;;  %v608_v37 = vmax.f32 %v482_v28, 0.0  ;;  %v557_v38 = vadd.f32 %v1083_v34, %v1257_v22  ;;  %v485_v39 = vadd.f32 %v1257_v22, %v484_v35  ;;  %v548_v40 = vpop.f32.mrb[3].mxu1 }
  0xeb   : > { %v1012_v41 = vpack.c.bf16 %v610_v31, %v610_v31  ;;  %v624_v42 = vmax.f32 %v546_v32, 0.0  ;;  %v611_v43 = vmax.f32 %v493_v33, 0.0  ;;  %v549_v44 = vadd.f32 %v1257_v22, %v548_v40 }
  0xec   : > { %v1028_v45 = vpack.c.bf16 %v626_v36, %v626_v36  ;;  %v1010_v46 = vpack.c.bf16 %v608_v37, %v608_v37  ;;  %v627_v47 = vmax.f32 %v557_v38, 0.0  ;;  %v609_v48 = vmax.f32 %v485_v39, 0.0 }
  0xed   : > { %771 = vst.msk [vmem:[%s1269_s28 + $0x8] sm:$0xf] %vm768_vm3, %v1012_v41  ;;  %v1026_v49 = vpack.c.bf16 %v624_v42, %v624_v42  ;;  %v1013_v50 = vpack.c.bf16 %v611_v43, %v611_v43  ;;  %v625_v51 = vmax.f32 %v549_v44, 0.0 }
  0xee   : > { %787 = vst.msk [vmem:[%s1269_s28 + $0x48] sm:$0xf] %vm768_vm3, %v1028_v45  ;;  %769 = vst.msk [vmem:[%s1269_s28] sm:$0xf] %vm768_vm3, %v1010_v46  ;;  %v1029_v52 = vpack.c.bf16 %v627_v47, %v627_v47  ;;  %v1011_v53 = vpack.c.bf16 %v609_v48, %v609_v48  ;;  %v1070_v54 = vpop.f32.mrb[4].mxu0 }
  0xef   : > { %785 = vst.msk [vmem:[%s1269_s28 + $0x40] sm:$0xf] %vm768_vm3, %v1026_v49  ;;  %772 = vst.msk [vmem:[%s1269_s28 + $0xc] sm:$0xf] %vm768_vm3, %v1013_v50  ;;  %v1027_v55 = vpack.c.bf16 %v625_v51, %v625_v51  ;;  %v506_v56 = vadd.f32 %v1070_v54, %v1257_v22  ;;  %v1086_v57 = vpop.f32.mrb[4].mxu1  ;;  %v497_v58 = vpop.f32.mrb[5].mxu0 }
  0xf0   : > { %788 = vst.msk [vmem:[%s1269_s28 + $0x4c] sm:$0xf] %vm768_vm3, %v1029_v52  ;;  %770 = vst.msk [vmem:[%s1269_s28 + $0x4] sm:$0xf] %vm768_vm3, %v1011_v53  ;;  %v570_v59 = vadd.f32 %v1086_v57, %v1257_v22  ;;  %v498_v60 = vadd.f32 %v1257_v22, %v497_v58  ;;  %v561_v61 = vpop.f32.mrb[5].mxu1  ;;  %v1071_v62 = vpop.f32.mrb[6].mxu0 }
  0xf1   : > { %786 = vst.msk [vmem:[%s1269_s28 + $0x44] sm:$0xf] %vm768_vm3, %v1027_v55  ;;  %v614_v63 = vmax.f32 %v506_v56, 0.0  ;;  %v562_v0 = vadd.f32 %v1257_v22, %v561_v61  ;;  %v509_v1 = vadd.f32 %v1071_v62, %v1257_v22  ;;  %v1087_v2 = vpop.f32.mrb[6].mxu1  ;;  %v500_v3 = vpop.f32.mrb[7].mxu0 }
  0xf2   : > { %v630_v4 = vmax.f32 %v570_v59, 0.0  ;;  %v612_v5 = vmax.f32 %v498_v60, 0.0  ;;  %v573_v6 = vadd.f32 %v1087_v2, %v1257_v22  ;;  %v501_v7 = vadd.f32 %v1257_v22, %v500_v3  ;;  %v564_v8 = vpop.f32.mrb[7].mxu1 }
  0xf3   : > { %v1016_v9 = vpack.c.bf16 %v614_v63, %v614_v63  ;;  %v628_v10 = vmax.f32 %v562_v0, 0.0  ;;  %v615_v11 = vmax.f32 %v509_v1, 0.0  ;;  %v565_v12 = vadd.f32 %v1257_v22, %v564_v8 }
  0xf4   : > { %v1032_v13 = vpack.c.bf16 %v630_v4, %v630_v4  ;;  %v1014_v14 = vpack.c.bf16 %v612_v5, %v612_v5  ;;  %v631_v15 = vmax.f32 %v573_v6, 0.0  ;;  %v613_v16 = vmax.f32 %v501_v7, 0.0 }
  0xf5   : > { %775 = vst.msk [vmem:[%s1269_s28 + $0x18] sm:$0xf] %vm768_vm3, %v1016_v9  ;;  %v1030_v17 = vpack.c.bf16 %v628_v10, %v628_v10  ;;  %v1017_v18 = vpack.c.bf16 %v615_v11, %v615_v11  ;;  %v629_v19 = vmax.f32 %v565_v12, 0.0 }
  0xf6   : > { %791 = vst.msk [vmem:[%s1269_s28 + $0x58] sm:$0xf] %vm768_vm3, %v1032_v13  ;;  %773 = vst.msk [vmem:[%s1269_s28 + $0x10] sm:$0xf] %vm768_vm3, %v1014_v14  ;;  %v1033_v20 = vpack.c.bf16 %v631_v15, %v631_v15  ;;  %v1015_v21 = vpack.c.bf16 %v613_v16, %v613_v16  ;;  %v1074_v23 = vpop.f32.mrb[8].mxu0 }
  0xf7   : > { %789 = vst.msk [vmem:[%s1269_s28 + $0x50] sm:$0xf] %vm768_vm3, %v1030_v17  ;;  %776 = vst.msk [vmem:[%s1269_s28 + $0x1c] sm:$0xf] %vm768_vm3, %v1017_v18  ;;  %v1031_v24 = vpack.c.bf16 %v629_v19, %v629_v19  ;;  %v522_v25 = vadd.f32 %v1074_v23, %v1257_v22  ;;  %v1090_v26 = vpop.f32.mrb[8].mxu1  ;;  %v513_v27 = vpop.f32.mrb[9].mxu0 }
  0xf8   : > { %792 = vst.msk [vmem:[%s1269_s28 + $0x5c] sm:$0xf] %vm768_vm3, %v1033_v20  ;;  %774 = vst.msk [vmem:[%s1269_s28 + $0x14] sm:$0xf] %vm768_vm3, %v1015_v21  ;;  %v586_v28 = vadd.f32 %v1090_v26, %v1257_v22  ;;  %v514_v29 = vadd.f32 %v1257_v22, %v513_v27  ;;  %v577_v30 = vpop.f32.mrb[9].mxu1  ;;  %v1075_v31 = vpop.f32.mrb[10].mxu0 }
  0xf9   : > { %790 = vst.msk [vmem:[%s1269_s28 + $0x54] sm:$0xf] %vm768_vm3, %v1031_v24  ;;  %v618_v32 = vmax.f32 %v522_v25, 0.0  ;;  %v578_v33 = vadd.f32 %v1257_v22, %v577_v30  ;;  %v525_v34 = vadd.f32 %v1075_v31, %v1257_v22  ;;  %v1091_v35 = vpop.f32.mrb[10].mxu1  ;;  %v516_v36 = vpop.f32.mrb[11].mxu0 }
  0xfa   : > { %v634_v37 = vmax.f32 %v586_v28, 0.0  ;;  %v616_v38 = vmax.f32 %v514_v29, 0.0  ;;  %v589_v39 = vadd.f32 %v1091_v35, %v1257_v22  ;;  %v517_v40 = vadd.f32 %v1257_v22, %v516_v36  ;;  %v580_v41 = vpop.f32.mrb[11].mxu1 }
  0xfb   : > { %v1020_v42 = vpack.c.bf16 %v618_v32, %v618_v32  ;;  %v632_v43 = vmax.f32 %v578_v33, 0.0  ;;  %v619_v44 = vmax.f32 %v525_v34, 0.0  ;;  %v581_v45 = vadd.f32 %v1257_v22, %v580_v41 }
  0xfc   : > { %v1036_v46 = vpack.c.bf16 %v634_v37, %v634_v37  ;;  %v1018_v47 = vpack.c.bf16 %v616_v38, %v616_v38  ;;  %v635_v48 = vmax.f32 %v589_v39, 0.0  ;;  %v617_v49 = vmax.f32 %v517_v40, 0.0 }
  0xfd   : > { %779 = vst.msk [vmem:[%s1269_s28 + $0x28] sm:$0xf] %vm768_vm3, %v1020_v42  ;;  %v1034_v50 = vpack.c.bf16 %v632_v43, %v632_v43  ;;  %v1021_v51 = vpack.c.bf16 %v619_v44, %v619_v44  ;;  %v633_v52 = vmax.f32 %v581_v45, 0.0 }
  0xfe   : > { %795 = vst.msk [vmem:[%s1269_s28 + $0x68] sm:$0xf] %vm768_vm3, %v1036_v46  ;;  %777 = vst.msk [vmem:[%s1269_s28 + $0x20] sm:$0xf] %vm768_vm3, %v1018_v47  ;;  %v1037_v53 = vpack.c.bf16 %v635_v48, %v635_v48  ;;  %v1019_v54 = vpack.c.bf16 %v617_v49, %v617_v49  ;;  %v1078_v55 = vpop.f32.mrb[12].mxu0 }
  0xff   : > { %793 = vst.msk [vmem:[%s1269_s28 + $0x60] sm:$0xf] %vm768_vm3, %v1034_v50  ;;  %780 = vst.msk [vmem:[%s1269_s28 + $0x2c] sm:$0xf] %vm768_vm3, %v1021_v51  ;;  %v1035_v56 = vpack.c.bf16 %v633_v52, %v633_v52  ;;  %v538_v57 = vadd.f32 %v1078_v55, %v1257_v22  ;;  %v1094_v58 = vpop.f32.mrb[12].mxu1  ;;  %v529_v59 = vpop.f32.mrb[13].mxu0 }
 0x100   : > { %796 = vst.msk [vmem:[%s1269_s28 + $0x6c] sm:$0xf] %vm768_vm3, %v1037_v53  ;;  %778 = vst.msk [vmem:[%s1269_s28 + $0x24] sm:$0xf] %vm768_vm3, %v1019_v54  ;;  %v602_v60 = vadd.f32 %v1094_v58, %v1257_v22  ;;  %v530_v61 = vadd.f32 %v1257_v22, %v529_v59  ;;  %v593_v62 = vpop.f32.mrb[13].mxu1  ;;  %v1079_v63 = vpop.f32.mrb[14].mxu0 }
 0x101   : > { %794 = vst.msk [vmem:[%s1269_s28 + $0x64] sm:$0xf] %vm768_vm3, %v1035_v56  ;;  %v622_v0 = vmax.f32 %v538_v57, 0.0  ;;  %v594_v1 = vadd.f32 %v1257_v22, %v593_v62  ;;  %v541_v2 = vadd.f32 %v1079_v63, %v1257_v22  ;;  %v1095_v3 = vpop.f32.mrb[14].mxu1  ;;  %v532_v4 = vpop.f32.mrb[15].mxu0 }
 0x102   : > { %v638_v5 = vmax.f32 %v602_v60, 0.0  ;;  %v620_v6 = vmax.f32 %v530_v61, 0.0  ;;  %v605_v7 = vadd.f32 %v1095_v3, %v1257_v22  ;;  %v533_v8 = vadd.f32 %v1257_v22, %v532_v4  ;;  %v596_v9 = vpop.f32.mrb[15].mxu1 }
 0x103   : > { %v1024_v10 = vpack.c.bf16 %v622_v0, %v622_v0  ;;  %v636_v11 = vmax.f32 %v594_v1, 0.0  ;;  %v623_v12 = vmax.f32 %v541_v2, 0.0  ;;  %v597_v13 = vadd.f32 %v1257_v22, %v596_v9 }
 0x104   : > { %v1040_v14 = vpack.c.bf16 %v638_v5, %v638_v5  ;;  %v1022_v15 = vpack.c.bf16 %v620_v6, %v620_v6  ;;  %v639_v16 = vmax.f32 %v605_v7, 0.0  ;;  %v621_v17 = vmax.f32 %v533_v8, 0.0 }
 0x105   : > { %783 = vst.msk [vmem:[%s1269_s28 + $0x38] sm:$0xf] %vm768_vm3, %v1024_v10  ;;  %v1038_v18 = vpack.c.bf16 %v636_v11, %v636_v11  ;;  %v1025_v19 = vpack.c.bf16 %v623_v12, %v623_v12  ;;  %v637_v20 = vmax.f32 %v597_v13, 0.0 }
 0x106   : > { %799 = vst.msk [vmem:[%s1269_s28 + $0x78] sm:$0xf] %vm768_vm3, %v1040_v14  ;;  %781 = vst.msk [vmem:[%s1269_s28 + $0x30] sm:$0xf] %vm768_vm3, %v1022_v15  ;;  %v1041_v21 = vpack.c.bf16 %v639_v16, %v639_v16  ;;  %v1023_v23 = vpack.c.bf16 %v621_v17, %v621_v17 }
 0x107   : > { %797 = vst.msk [vmem:[%s1269_s28 + $0x70] sm:$0xf] %vm768_vm3, %v1038_v18  ;;  %784 = vst.msk [vmem:[%s1269_s28 + $0x3c] sm:$0xf] %vm768_vm3, %v1025_v19  ;;  %v1039_v22 = vpack.c.bf16 %v637_v20, %v637_v20 }
 0x108   : > { %800 = vst.msk [vmem:[%s1269_s28 + $0x7c] sm:$0xf] %vm768_vm3, %v1041_v21  ;;  %782 = vst.msk [vmem:[%s1269_s28 + $0x34] sm:$0xf] %vm768_vm3, %v1023_v23 }
 0x109   : > { %798 = vst.msk [vmem:[%s1269_s28 + $0x74] sm:$0xf] %vm768_vm3, %v1039_v22 }
 0x10a PF: > { %s13_s14 = sadd.s32 1, %s1165_s14   ;;  %s1375_s12 = smov %s1161_s13 }
 0x10b   : > { %p10_p5 = scmp.ge.s32.totalorder %s13_s14, 6   ;;  %s1376_s13 = smov %s1378_s15 }
 0x10d   :  { %12 = sbr.rel (!%p10_p5) target bundleno = 2 (0x2), region = 68 }

// kernel: generator_loss.11
= control target key start
LH: loop header
LB: loop body
LE: loop exit
PB: predicated region body
PF: predicated region fallthrough
CT: control target
= control target key end

     0   :  { %s1423_s12 = smov 0   ;;  %s1425_s13 = smov 0   ;;  %s1597_s0 = inlined_call_operand.vmem [shape: bf16[4,64,576], index: 0, kind: input, shape index: {}]   ;;  %s1598_s1 = inlined_call_operand.vmem [shape: bf16[576,128], index: 1, kind: input, shape index: {}]   ;;  %s1599_s2 = inlined_call_operand.vmem [shape: f32[1,128], index: 2, kind: input, shape index: {}]   ;;  %s1600_s3 = inlined_call_operand.vmem [shape: bf16[4,64,128], index: 3, kind: output, shape index: {}]  }
   0x1   :  { %s1427_s14 = smov 0  }
   0x2 LB: > { %s32_s15 = sadd.s32 1, %s1397_s13  ;;  %p1071_p0 = scmp.ge.s32.totalorder %s1401_s14, 1  ;;  %s1401_s14 = sphi %s1427_s14, %s13_s14   ;;  %s1397_s13 = sphi %s1425_s13, %s1602_s13   ;;  %s1393_s12 = sphi %s1423_s12, %s1601_s12  }
   0x3   : > { %p34_p1 = scmp.ge.s32.totalorder %s32_s15, 4  ;;  %p185_p2 = scmp.lt.s32.totalorder %s1401_s14, 5 }
   0x5   : > { %s1604_s15 = smov (%p34_p1, %s32_s15), 0  ;;  %p186_p3 = pnand %p1071_p0, %p185_p2 }
   0x6   : > { %v1315_v0 = vld [vmem:[%s1598_s1 + $0x40] sm:$0xff] (!%p186_p3)   ;;  %v1319_v4 = vld [vmem:[%s1598_s1 + $0x48] sm:$0xff] (!%p186_p3)   ;;  %v1323_v8 = vld [vmem:[%s1598_s1 + $0x50] sm:$0xff] (!%p186_p3)   ;;  %p229_p4 = scmp.lt.s32.totalorder (!%p186_p3), %s1393_s12, 3  ;;  %vm679_vm0 = vcmask (!%p186_p3), 523264  }
   0x7   : > { %189 = sbr.rel (%p186_p3) target bundleno = 295 (0x127), region = 32  ;;  %v1316_v1 = vld [vmem:[%s1598_s1 + $0xc0] sm:$0xff] (!%p186_p3)   ;;  %1178 = vmatprep.subr.bf16.mxu0 (!%p186_p3), %v1315_v0  ;;  %v1320_v5 = vld [vmem:[%s1598_s1 + $0xc8] sm:$0xff] (!%p186_p3)   ;;  %v1324_v9 = vld [vmem:[%s1598_s1 + $0xd0] sm:$0xff] (!%p186_p3)  }
   0x8   : > { %v1317_v2 = vld [vmem:[%s1598_s1] sm:$0xff] (!%p186_p3)   ;;  %1218 = vmatprep.subr.bf16.mxu1 (!%p186_p3), %v1316_v1  ;;  %v1321_v6 = vld [vmem:[%s1598_s1 + $0x8] sm:$0xff] (!%p186_p3)   ;;  %v1325_v10 = vld [vmem:[%s1598_s1 + $0x10] sm:$0xff] (!%p186_p3)  }
   0x9   : > { %v1318_v3 = vld [vmem:[%s1598_s1 + $0x80] sm:$0xff] (!%p186_p3)   ;;  %1179 = vmatpush3.bf16.msra.mxu0 (!%p186_p3), %v1317_v2  ;;  %v1322_v7 = vld [vmem:[%s1598_s1 + $0x88] sm:$0xff] (!%p186_p3)   ;;  %v1326_v11 = vld [vmem:[%s1598_s1 + $0x90] sm:$0xff] (!%p186_p3)  }
   0xa   : > { %1219 = vmatpush3.bf16.msra.mxu1 (!%p186_p3), %v1318_v3  ;;  %1180 = vmatprep.subr.bf16.mxu0 (!%p186_p3), %v1319_v4  ;;  %v1327_v12 = vld [vmem:[%s1598_s1 + $0x58] sm:$0xff] (!%p186_p3)   ;;  %v1331_v16 = vld [vmem:[%s1598_s1 + $0x60] sm:$0xff] (!%p186_p3)   ;;  %v1335_v20 = vld [vmem:[%s1598_s1 + $0x68] sm:$0xff] (!%p186_p3)  }
   0xb   : > { %1220 = vmatprep.subr.bf16.mxu1 (!%p186_p3), %v1320_v5  ;;  %v1328_v13 = vld [vmem:[%s1598_s1 + $0xd8] sm:$0xff] (!%p186_p3)   ;;  %v1332_v17 = vld [vmem:[%s1598_s1 + $0xe0] sm:$0xff] (!%p186_p3)   ;;  %v1336_v21 = vld [vmem:[%s1598_s1 + $0xe8] sm:$0xff] (!%p186_p3)  }
   0xc   : > { %v1329_v14 = vld [vmem:[%s1598_s1 + $0x18] sm:$0xff] (!%p186_p3)   ;;  %v1333_v18 = vld [vmem:[%s1598_s1 + $0x20] sm:$0xff] (!%p186_p3)   ;;  %v1337_v22 = vld [vmem:[%s1598_s1 + $0x28] sm:$0xff] (!%p186_p3)  }
   0xd   : > { %1181 = vmatpush3.bf16.msra.mxu0 (!%p186_p3), %v1321_v6  ;;  %v1330_v15 = vld [vmem:[%s1598_s1 + $0x98] sm:$0xff] (!%p186_p3)   ;;  %v1334_v19 = vld [vmem:[%s1598_s1 + $0xa0] sm:$0xff] (!%p186_p3)   ;;  %v1338_v23 = vld [vmem:[%s1598_s1 + $0xa8] sm:$0xff] (!%p186_p3)  }
   0xe   : > { %1221 = vmatpush3.bf16.msra.mxu1 %v1322_v7  ;;  %1182 = vmatprep.subr.bf16.mxu0 %v1323_v8  ;;  %s1606_s12 = smov (!%p229_p4, %s1393_s12), 3  ;;  %v1339_v24 = vld [vmem:[%s1598_s1 + $0x70] sm:$0xff]   ;;  %v1343_v28 = vld [vmem:[%s1598_s1 + $0x78] sm:$0xff]   ;;  %v1353_v36 = vld [vmem:[%s1598_s1 + $0x100] sm:$0xff]  }
   0xf   : > { %1222 = vmatprep.subr.bf16.mxu1 %v1324_v9  ;;  %v1340_v25 = vld [vmem:[%s1598_s1 + $0xf0] sm:$0xff]   ;;  %s1290_s22 = smul.u32 160, %s1606_s12  ;;  %v1344_v29 = vld [vmem:[%s1598_s1 + $0xf8] sm:$0xff]   ;;  %v1360_v39 = vld [vmem:[%s1598_s1 + $0x108] sm:$0xff]   ;;  %s1146_s25 = sshll.u32 %s1606_s12, 5 }
  0x10   : > { %v1341_v26 = vld [vmem:[%s1598_s1 + $0x30] sm:$0xff]   ;;  %v1345_v30 = vld [vmem:[%s1598_s1 + $0x38] sm:$0xff]   ;;  %v1075_v58 = vld [vmem:[%s1599_s2] ss:$0 sm:$0xff]  ;;  %s257_s28 = scalar_lea.vmem %s1600_s3, %s1146_s25 }
  0x11   : > { %1183 = vmatpush3.bf16.msra.mxu0 %v1325_v10  ;;  %v1342_v27 = vld [vmem:[%s1598_s1 + $0xb0] sm:$0xff]   ;;  %s1541_s6 = scalar_lea.vmem %s1597_s0, %s1290_s22  ;;  %v1346_v31 = vld [vmem:[%s1598_s1 + $0xb8] sm:$0xff]  }
  0x12   : > { %1223 = vmatpush3.bf16.msra.mxu1 %v1326_v11  ;;  %1184 = vmatprep.subr.bf16.mxu0 %v1327_v12  ;;  %v1347_v32 = vld [vmem:[%s1541_s6] ss:$20 sps:$4 sm:$0xff]   ;;  %v1349_v33 = vld [vmem:[%s1541_s6 + $0x4] ss:$20 sps:$4 sm:$0xff]   ;;  %v1350_v34 = vld [vmem:[%s1541_s6 + $0x8] ss:$20 sps:$4 sm:$0xff]  }
  0x13   : > { %1224 = vmatprep.subr.bf16.mxu1 %v1328_v13  ;;  %v1352_v35 = vld [vmem:[%s1541_s6 + $0xc] ss:$20 sps:$4 sm:$0xff]   ;;  %724 = vmatprep.mubr.bf16.mxu0 %v1349_v33  ;;  %v1356_v38 = vld [vmem:[%s1541_s6 + $0x34] ss:$20 sps:$4 sm:$0xff]   ;;  %v1359_v41 = vld [vmem:[%s1541_s6 + $0x30] ss:$20 sps:$4 sm:$0xff]  }
  0x14   : > { %789 = vmatprep.mubr.bf16.mxu1 %v1352_v35  ;;  %v1354_v37 = vld [vmem:[%s1541_s6 + $0x2c] ss:$20 sps:$4 sm:$0xff]   ;;  %v1358_v40 = vld [vmem:[%s1541_s6 + $0x28] ss:$20 sps:$4 sm:$0xff]   ;;  %v1367_v44 = vld [vmem:[%s1598_s1 + $0x110] sm:$0xff]  }
  0x15   : > { %1185 = vmatpush3.bf16.msra.mxu0 %v1329_v14  ;;  %v1361_v42 = vld [vmem:[%s1541_s6 + $0x54] ss:$20 sps:$4 sm:$0xff]   ;;  %v1363_v43 = vld [vmem:[%s1541_s6 + $0x5c] ss:$20 sps:$4 sm:$0xff]   ;;  %v1366_v47 = vld [vmem:[%s1541_s6 + $0x58] ss:$20 sps:$4 sm:$0xff]  }
  0x16   : > { %1225 = vmatpush3.bf16.msra.mxu1 %v1330_v15  ;;  %1186 = vmatprep.subr.bf16.mxu0 %v1331_v16  ;;  %v1374_v45 = vld [vmem:[%s1598_s1 + $0x118] sm:$0xff]   ;;  %v1365_v46 = vld [vmem:[%s1541_s6 + $0x50] ss:$20 sps:$4 sm:$0xff]   ;;  %v1373_v51 = vld [vmem:[%s1541_s6 + $0x80] ss:$20 sps:$4 sm:$0xff]  }
  0x17   : > { %1226 = vmatprep.subr.bf16.mxu1 %v1332_v17  ;;  %v1368_v48 = vld [vmem:[%s1541_s6 + $0x7c] ss:$20 sps:$4 sm:$0xff]   ;;  %v1370_v49 = vld [vmem:[%s1541_s6 + $0x84] ss:$20 sps:$4 sm:$0xff]   ;;  %v1376_v53 = vld [vmem:[%s1541_s6 + $0x60] ss:$20 sps:$4 sm:$0xff]  }
  0x18   : > { %v1372_v50 = vld [vmem:[%s1541_s6 + $0x78] ss:$20 sps:$4 sm:$0xff]   ;;  %v1375_v52 = vld [vmem:[%s1541_s6 + $0x10] ss:$20 sps:$4 sm:$0xff]   ;;  %v1378_v55 = vld [vmem:[%s1541_s6 + $0x88] ss:$20 sps:$4 sm:$0xff]  }
  0x19   : > { %1187 = vmatpush3.bf16.msra.mxu0 %v1333_v18  ;;  %v1377_v54 = vld [vmem:[%s1541_s6 + $0x38] ss:$20 sps:$4 sm:$0xff]  }
  0x1a   : > { %1227 = vmatpush3.bf16.msra.mxu1 %v1334_v19  ;;  %1188 = vmatprep.subr.bf16.mxu0 %v1335_v20 }
  0x1b   : > { %1228 = vmatprep.subr.bf16.mxu1 %v1336_v21 }
  0x1d   : > { %1189 = vmatpush3.bf16.msra.mxu0 %v1337_v22 }
  0x1e   : > { %1229 = vmatpush3.bf16.msra.mxu1 %v1338_v23  ;;  %1190 = vmatprep.subr.bf16.mxu0 %v1339_v24 }
  0x1f   : > { %1230 = vmatprep.subr.bf16.mxu1 %v1340_v25 }
  0x21   : > { %1191 = vmatpush3.bf16.msra.mxu0 %v1341_v26 }
  0x22   : > { %1231 = vmatpush3.bf16.msra.mxu1 %v1342_v27  ;;  %1192 = vmatprep.subr.bf16.mxu0 %v1343_v28 }
  0x23   : > { %1232 = vmatprep.subr.bf16.mxu1 %v1344_v29 }
  0x25   : > { %1193 = vmatpush3.bf16.msra.mxu0 %v1345_v30 }
  0x26   : > { %1233 = vmatpush3.bf16.msra.mxu1 %v1346_v31  ;;  %1266 = vmatprep.subr.bf16.mxu0 %v1353_v36 }
  0x27   : > { %1282 = vmatprep.subr.bf16.mxu1 %v1353_v36 }
  0x28   : > { %725 = vmatmul.mubr.bf16.vlgmr.msra.gmra.mrb[0].mxu0 %v1347_v32 }
  0x29   : > { %790 = vmatmul.mubr.bf16.vlgmr.msra.gmra.mrb[0].mxu1 %v1350_v34  ;;  %1267 = vmatpush3.bf16.msra.mxu0 %v1353_v36 }
  0x2a   : > { %1286 = vmatpush3.bf16.msra.mxu1 %v1353_v36  ;;  %732 = vmatprep.mubr.bf16.mxu0 %v1354_v37 }
  0x2b   : > { %797 = vmatprep.mubr.bf16.mxu1 %v1356_v38  ;;  %1268 = vmatprep.subr.bf16.mxu0 %v1360_v39 }
  0x2c   : > { %1283 = vmatprep.subr.bf16.mxu1 %v1360_v39 }
  0x2d   : > { %1269 = vmatpush3.bf16.msra.mxu0 %v1360_v39 }
  0x2e   : > { %1287 = vmatpush3.bf16.msra.mxu1 %v1360_v39  ;;  %1270 = vmatprep.subr.bf16.mxu0 %v1367_v44 }
  0x2f   : > { %1284 = vmatprep.subr.bf16.mxu1 %v1367_v44 }
  0x30   : > { %733 = vmatmul.mubr.bf16.gmra.mrb[4].mxu0 %v1358_v40 }
  0x31   : > { %798 = vmatmul.mubr.bf16.gmra.mrb[4].mxu1 %v1359_v41  ;;  %740 = vmatprep.mubr.bf16.mxu0 %v1361_v42 }
  0x32   : > { %805 = vmatprep.mubr.bf16.mxu1 %v1363_v43  ;;  %1271 = vmatpush3.bf16.msra.mxu0 %v1367_v44 }
  0x33   : > { %1288 = vmatpush3.bf16.msra.mxu1 %v1367_v44  ;;  %1272 = vmatprep.subr.bf16.mxu0 %v1374_v45 }
  0x34   : > { %1285 = vmatprep.subr.bf16.mxu1 %v1374_v45 }
  0x36   : > { %1273 = vmatpush3.bf16.msra.mxu0 %v1374_v45 }
  0x37   : > { %1289 = vmatpush3.bf16.msra.mxu1 %v1374_v45 }
  0x38   : > { %741 = vmatmul.mubr.bf16.gmra.mrb[8].mxu0 %v1365_v46 }
  0x39   : > { %806 = vmatmul.mubr.bf16.gmra.mrb[8].mxu1 %v1366_v47  ;;  %748 = vmatprep.mubr.bf16.mxu0 %v1368_v48 }
  0x3a   : > { %813 = vmatprep.mubr.bf16.mxu1 %v1370_v49 }
  0x40   : > { %749 = vmatmul.mubr.bf16.gmra.mrb[12].mxu0 %v1372_v50 }
  0x41   : > { %814 = vmatmul.mubr.bf16.gmra.mrb[12].mxu1 %v1373_v51  ;;  %1274 = vmatprep.mubr.msk.bf16.mxu0 %vm679_vm0, %v1375_v52 }
  0x42   : > { %1278 = vmatprep.mubr.msk.bf16.mxu1 %vm679_vm0, %v1376_v53 }
  0x48   : > { %1275 = vmatmul.mubr.msk.bf16.vlgmr.msra.gmra.mrb[16].mxu0 %vm679_vm0, %v1377_v54 }
  0x49   : > { %1279 = vmatmul.mubr.msk.bf16.vlgmr.msra.gmra.mrb[16].mxu1 %vm679_vm0, %v1378_v55 }
  0xfb   : > { %v1194_v56 = vpop.f32.mrb[0].mxu0 }
  0xfc   : > { %v1234_v57 = vpop.f32.mrb[0].mxu1  ;;  %v1195_v59 = vpop.f32.mrb[1].mxu0 }
  0xfd   : > { %v1196_v60 = vadd.f32 %v1195_v59, %v1194_v56  ;;  %v1235_v61 = vpop.f32.mrb[1].mxu1  ;;  %v1197_v62 = vpop.f32.mrb[2].mxu0 }
  0xfe   : > { %v1236_v63 = vadd.f32 %v1235_v61, %v1234_v57  ;;  %v1237_v0 = vpop.f32.mrb[2].mxu1  ;;  %v1198_v1 = vpop.f32.mrb[3].mxu0 }
  0xff   : > { %v727_v2 = vadd.f32 %v1196_v60, %v1075_v58  ;;  %v1199_v3 = vadd.f32 %v1198_v1, %v1197_v62  ;;  %v1238_v4 = vpop.f32.mrb[3].mxu1 }
 0x100   : > { %v1239_v5 = vadd.f32 %v1238_v4, %v1237_v0 }
 0x101   : > { %v730_v6 = vadd.f32 %v1199_v3, %v1075_v58  ;;  %v792_v7 = vadd.f32 %v1236_v63, %v727_v2 }
 0x103   : > { %v1200_v8 = vpop.f32.mrb[4].mxu0  ;;  %v795_v9 = vadd.f32 %v1239_v5, %v730_v6 }
 0x104   : > { %v1240_v10 = vpop.f32.mrb[4].mxu1  ;;  %v1201_v11 = vpop.f32.mrb[5].mxu0 }
 0x105   : > { %v1202_v12 = vadd.f32 %v1201_v11, %v1200_v8  ;;  %v1241_v13 = vpop.f32.mrb[5].mxu1  ;;  %v1203_v14 = vpop.f32.mrb[6].mxu0 }
 0x106   : > { %v1242_v15 = vadd.f32 %v1241_v13, %v1240_v10  ;;  %v1243_v16 = vpop.f32.mrb[6].mxu1  ;;  %v1204_v17 = vpop.f32.mrb[7].mxu0 }
 0x107   : > { %v735_v18 = vadd.f32 %v1202_v12, %v1075_v58  ;;  %v1205_v19 = vadd.f32 %v1204_v17, %v1203_v14  ;;  %v1244_v20 = vpop.f32.mrb[7].mxu1 }
 0x108   : > { %v1245_v21 = vadd.f32 %v1244_v20, %v1243_v16 }
 0x109   : > { %v738_v22 = vadd.f32 %v1205_v19, %v1075_v58  ;;  %v800_v23 = vadd.f32 %v1242_v15, %v735_v18 }
 0x10b   : > { %v1206_v24 = vpop.f32.mrb[8].mxu0  ;;  %v803_v25 = vadd.f32 %v1245_v21, %v738_v22 }
 0x10c   : > { %v1246_v26 = vpop.f32.mrb[8].mxu1  ;;  %v1207_v27 = vpop.f32.mrb[9].mxu0 }
 0x10d   : > { %v1208_v28 = vadd.f32 %v1207_v27, %v1206_v24  ;;  %v1247_v29 = vpop.f32.mrb[9].mxu1  ;;  %v1209_v30 = vpop.f32.mrb[10].mxu0 }
 0x10e   : > { %v1248_v31 = vadd.f32 %v1247_v29, %v1246_v26  ;;  %v1249_v32 = vpop.f32.mrb[10].mxu1  ;;  %v1210_v33 = vpop.f32.mrb[11].mxu0 }
 0x10f   : > { %v743_v34 = vadd.f32 %v1208_v28, %v1075_v58  ;;  %v1211_v35 = vadd.f32 %v1210_v33, %v1209_v30  ;;  %v1250_v36 = vpop.f32.mrb[11].mxu1 }
 0x110   : > { %v1251_v37 = vadd.f32 %v1250_v36, %v1249_v32 }
 0x111   : > { %v746_v38 = vadd.f32 %v1211_v35, %v1075_v58  ;;  %v808_v39 = vadd.f32 %v1248_v31, %v743_v34 }
 0x113   : > { %v1212_v40 = vpop.f32.mrb[12].mxu0  ;;  %v811_v41 = vadd.f32 %v1251_v37, %v746_v38 }
 0x114   : > { %v1252_v42 = vpop.f32.mrb[12].mxu1  ;;  %v1213_v43 = vpop.f32.mrb[13].mxu0 }
 0x115   : > { %v1214_v44 = vadd.f32 %v1213_v43, %v1212_v40  ;;  %v1253_v45 = vpop.f32.mrb[13].mxu1  ;;  %v1215_v46 = vpop.f32.mrb[14].mxu0 }
 0x116   : > { %v1254_v47 = vadd.f32 %v1253_v45, %v1252_v42  ;;  %v1255_v48 = vpop.f32.mrb[14].mxu1  ;;  %v1216_v49 = vpop.f32.mrb[15].mxu0 }
 0x117   : > { %v751_v50 = vadd.f32 %v1214_v44, %v1075_v58  ;;  %v1217_v51 = vadd.f32 %v1216_v49, %v1215_v46  ;;  %v1256_v52 = vpop.f32.mrb[15].mxu1 }
 0x118   : > { %v1257_v53 = vadd.f32 %v1256_v52, %v1255_v48 }
 0x119   : > { %v754_v54 = vadd.f32 %v1217_v51, %v1075_v58  ;;  %v816_v55 = vadd.f32 %v1254_v47, %v751_v50 }
 0x11b   : > { %v1276_v56 = vpop.f32.mrb[16].mxu0  ;;  %v819_v57 = vadd.f32 %v1257_v53, %v754_v54 }
 0x11c   : > { %v865_v59 = vadd.f32 %v1276_v56, %v800_v23  ;;  %v1280_v60 = vpop.f32.mrb[16].mxu1  ;;  %v856_v61 = vpop.f32.mrb[17].mxu0 }
 0x11d   : > { %v881_v62 = vadd.f32 %v1280_v60, %v816_v55  ;;  %v857_v63 = vadd.f32 %v856_v61, %v792_v7  ;;  %v872_v0 = vpop.f32.mrb[17].mxu1  ;;  %v1277_v1 = vpop.f32.mrb[18].mxu0 }
 0x11e   : > { %v873_v2 = vadd.f32 %v872_v0, %v808_v39  ;;  %v868_v3 = vadd.f32 %v1277_v1, %v803_v25  ;;  %v1281_v4 = vpop.f32.mrb[18].mxu1  ;;  %v859_v5 = vpop.f32.mrb[19].mxu0  ;;  %v889_v11 = vmax.f32 %v865_v59, 0.0 }
 0x11f   : > { %v884_v6 = vadd.f32 %v1281_v4, %v819_v57  ;;  %v860_v8 = vadd.f32 %v859_v5, %v795_v9  ;;  %v875_v10 = vpop.f32.mrb[19].mxu1  ;;  %v893_v13 = vmax.f32 %v881_v62, 0.0  ;;  %v887_v14 = vmax.f32 %v857_v63, 0.0 }
 0x120   : > { %v890_v58 = vmax.f32 %v868_v3, 0.0  ;;  %v876_v12 = vadd.f32 %v875_v10, %v811_v41  ;;  %v891_v16 = vmax.f32 %v873_v2, 0.0 }
 0x121   : > { %v894_v7 = vmax.f32 %v884_v6, 0.0  ;;  %v888_v15 = vmax.f32 %v860_v8, 0.0 }
 0x122   : > { %v1163_v17 = vpack.c.bf16 %v890_v58, %v889_v11  ;;  %v892_v18 = vmax.f32 %v876_v12, 0.0 }
 0x123   : > { %v1173_v19 = vpack.c.bf16 %v894_v7, %v893_v13  ;;  %v1158_v20 = vpack.c.bf16 %v888_v15, %v887_v14 }
 0x124   : > { %1175 = vst [vmem:[%s257_s28 + $0x8] sm:$0xff] %v1163_v17   ;;  %v1168_v21 = vpack.c.bf16 %v892_v18, %v891_v16 }
 0x125   : > { %1177 = vst [vmem:[%s257_s28 + $0x18] sm:$0xff] %v1173_v19   ;;  %1159 = vst [vmem:[%s257_s28] sm:$0xff] %v1158_v20  }
 0x126   : > { %1176 = vst [vmem:[%s257_s28 + $0x10] sm:$0xff] %v1168_v21  }
 0x127 PF: > { %s13_s14 = sadd.s32 1, %s1401_s14   ;;  %s1601_s12 = smov %s1397_s13 }
 0x128   : > { %p10_p5 = scmp.ge.s32.totalorder %s13_s14, 6   ;;  %s1602_s13 = smov %s1604_s15 }
 0x12a   :  { %12 = sbr.rel (!%p10_p5) target bundleno = 2 (0x2), region = 68 }

// kernel: generator_loss.10
= control target key start
LH: loop header
LB: loop body
LE: loop exit
PB: predicated region body
PF: predicated region fallthrough
CT: control target
= control target key end

     0   :  { %s4411_s12 = smov 0   ;;  %s4413_s13 = smov 0   ;;  %s5160_s0 = inlined_call_operand.vmem [shape: bf16[4,256,576], index: 0, kind: input, shape index: {}]   ;;  %s5161_s1 = inlined_call_operand.vmem [shape: bf16[576,64], index: 1, kind: input, shape index: {}]   ;;  %s5162_s2 = inlined_call_operand.vmem [shape: f32[1,64], index: 2, kind: input, shape index: {}]   ;;  %s5163_s3 = inlined_call_operand.vmem [shape: bf16[4,64,64], index: 3, kind: output, shape index: {}]  }
   0x1   :  { %s4415_s14 = smov 0  }
   0x2 LB: > { %s32_s15 = sadd.s32 1, %s4384_s13  ;;  %p3495_p0 = scmp.ge.s32.totalorder %s4388_s14, 1  ;;  %s4388_s14 = sphi %s4415_s14, %s13_s14   ;;  %s4384_s13 = sphi %s4413_s13, %s5231_s13   ;;  %s4380_s12 = sphi %s4411_s12, %s5230_s12  }
   0x3   : > { %p34_p1 = scmp.ge.s32.totalorder %s32_s15, 4  ;;  %p185_p2 = scmp.lt.s32.totalorder %s4388_s14, 5 }
   0x5   : > { %s5233_s15 = smov (%p34_p1, %s32_s15), 0  ;;  %p186_p3 = pnand %p3495_p0, %p185_p2 }
   0x7   : > { %189 = sbr.rel (%p186_p3) target bundleno = 573 (0x23d), region = 32 }
   0xe   : > { %v4217_v0 = vld [vmem:[%s5161_s1 + $0x40] sm:$0xff]   ;;  %v4219_v2 = vld [vmem:[%s5161_s1 + $0x48] sm:$0xff]   ;;  %p229_p4 = scmp.lt.s32.totalorder %s4380_s12, 3  ;;  %v4221_v4 = vld [vmem:[%s5161_s1 + $0x50] sm:$0xff]   ;;  %vm1051_vm0 = vcmask 523264   ;;  %vm3216_vm1 = vcmask 1041409  }
   0xf   : > { %v4218_v1 = vld [vmem:[%s5161_s1] sm:$0xff]   ;;  %3891 = vmatprep.subr.bf16.mxu0 %v4217_v0  ;;  %4175 = vmatprep.subr.bf16.mxu1 %v4217_v0  ;;  %v4220_v3 = vld [vmem:[%s5161_s1 + $0x8] sm:$0xff]   ;;  %v4222_v5 = vld [vmem:[%s5161_s1 + $0x10] sm:$0xff]   ;;  %vm3219_vm2 = vcmask 1042434   ;;  %vm3222_vm3 = vcmask 1043459   ;;  %vm3225_vm4 = vcmask 1044484  }
  0x10   : > { %3892 = vmatpush3.bf16.msra.mxu0 %v4218_v1  ;;  %4183 = vmatpush3.bf16.msra.mxu1 %v4218_v1  ;;  %s5235_s12 = smov (!%p229_p4, %s4380_s12), 3  ;;  %v4223_v6 = vld [vmem:[%s5161_s1 + $0x58] sm:$0xff]   ;;  %v4225_v8 = vld [vmem:[%s5161_s1 + $0x60] sm:$0xff]   ;;  %v4227_v10 = vld [vmem:[%s5161_s1 + $0x68] sm:$0xff]   ;;  %vm3228_vm5 = vcmask 1045509   ;;  %vm3231_vm6 = vcmask 1046534  }
  0x11   : > { %3893 = vmatprep.subr.bf16.mxu0 %v4219_v2  ;;  %4176 = vmatprep.subr.bf16.mxu1 %v4219_v2  ;;  %s4191_s30 = smul.u32 640, %s5235_s12  ;;  %v4224_v7 = vld [vmem:[%s5161_s1 + $0x18] sm:$0xff]   ;;  %v4226_v9 = vld [vmem:[%s5161_s1 + $0x20] sm:$0xff]   ;;  %v4228_v13 = vld [vmem:[%s5161_s1 + $0x28] sm:$0xff]   ;;  %vm3234_vm7 = vcmask 1047559   ;;  %vm3350_vm8 = vcmask 519168  }
  0x12   : > { %v4229_v14 = vld [vmem:[%s5161_s1 + $0x70] sm:$0xff]   ;;  %v4231_v16 = vld [vmem:[%s5161_s1 + $0x78] sm:$0xff]   ;;  %v4239_v18 = vld [vmem:[%s5161_s1 + $0xc0] sm:$0xff]   ;;  %s3826_s26 = sshll.u32 %s5235_s12, 5 }
  0x13   : > { %s4462_s10 = scalar_lea.vmem %s5160_s0, %s4191_s30  ;;  %v4230_v15 = vld [vmem:[%s5161_s1 + $0x30] sm:$0xff]   ;;  %v4232_v17 = vld [vmem:[%s5161_s1 + $0x38] sm:$0xff]   ;;  %v4242_v19 = vld [vmem:[%s5161_s1 + $0x100] sm:$0xff]   ;;  %s4869_s28 = scalar_lea.vmem %s5163_s3, %s3826_s26 }
  0x14   : > { %3894 = vmatpush3.bf16.msra.mxu0 %v4220_v3  ;;  %4184 = vmatpush3.bf16.msra.mxu1 %v4220_v3  ;;  %v4235_v11 = vld [vmem:[%s4462_s10 + $0x4] ss:$20 sps:$4 sm:$0xff]   ;;  %v4233_v20 = vld [vmem:[%s4462_s10] ss:$20 sps:$4 sm:$0xff]   ;;  %v4241_v23 = vld [vmem:[%s5161_s1 + $0xc8] sm:$0xff]  }
  0x15   : > { %3895 = vmatprep.subr.bf16.mxu0 %v4221_v4  ;;  %4177 = vmatprep.subr.bf16.mxu1 %v4221_v4  ;;  %v4238_v12 = vld [vmem:[%s4462_s10 + $0x1e4] ss:$20 sps:$4 sm:$0xff]   ;;  %v4236_v21 = vld [vmem:[%s4462_s10 + $0x1e0] ss:$20 sps:$4 sm:$0xff]   ;;  %v4243_v26 = vld [vmem:[%s5161_s1 + $0x88] sm:$0xff]  }
  0x16   : > { %1132 = vmatprep.mubr.bf16.mxu0 %v4235_v11  ;;  %1228 = vmatprep.mubr.bf16.mxu1 %v4238_v12  ;;  %v4240_v22 = vld [vmem:[%s5161_s1 + $0x80] sm:$0xff]   ;;  %v4248_v27 = vld [vmem:[%s4462_s10 + $0x28] ss:$20 sps:$4 sm:$0xff]   ;;  %v4250_v28 = vld [vmem:[%s5161_s1 + $0xd0] sm:$0xff]  }
  0x17   : > { %v4244_v24 = vld [vmem:[%s4462_s10 + $0x2c] ss:$20 sps:$4 sm:$0xff]   ;;  %v4249_v29 = vld [vmem:[%s4462_s10 + $0x208] ss:$20 sps:$4 sm:$0xff]   ;;  %v4251_v30 = vld [vmem:[%s5161_s1 + $0x90] sm:$0xff]  }
  0x18   : > { %3896 = vmatpush3.bf16.msra.mxu0 %v4222_v5  ;;  %4185 = vmatpush3.bf16.msra.mxu1 %v4222_v5  ;;  %v4246_v25 = vld [vmem:[%s4462_s10 + $0x20c] ss:$20 sps:$4 sm:$0xff]   ;;  %v4252_v31 = vld [vmem:[%s5161_s1 + $0xd8] sm:$0xff]   ;;  %v4254_v32 = vld [vmem:[%s4462_s10 + $0x54] ss:$20 sps:$4 sm:$0xff]  }
  0x19   : > { %3897 = vmatprep.subr.bf16.mxu0 %v4223_v6  ;;  %4178 = vmatprep.subr.bf16.mxu1 %v4223_v6  ;;  %v4256_v33 = vld [vmem:[%s4462_s10 + $0x234] ss:$20 sps:$4 sm:$0xff]   ;;  %v4253_v34 = vld [vmem:[%s5161_s1 + $0x98] sm:$0xff]   ;;  %v4258_v36 = vld [vmem:[%s4462_s10 + $0x50] ss:$20 sps:$4 sm:$0xff]  }
  0x1a   : > { %v4273_v35 = vld [vmem:[%s5161_s1 + $0x108] sm:$0xff]   ;;  %v4260_v37 = vld [vmem:[%s5161_s1 + $0xe0] sm:$0xff]   ;;  %v4264_v41 = vld [vmem:[%s4462_s10 + $0x7c] ss:$20 sps:$4 sm:$0xff]  }
  0x1b   : > { %v4259_v38 = vld [vmem:[%s4462_s10 + $0x230] ss:$20 sps:$4 sm:$0xff]   ;;  %v4262_v40 = vld [vmem:[%s5161_s1 + $0xe8] sm:$0xff]   ;;  %v4272_v49 = vld [vmem:[%s5161_s1 + $0xf8] sm:$0xff]  }
  0x1c   : > { %3898 = vmatpush3.bf16.msra.mxu0 %v4224_v7  ;;  %4186 = vmatpush3.bf16.msra.mxu1 %v4224_v7  ;;  %v4261_v39 = vld [vmem:[%s5161_s1 + $0xa0] sm:$0xff]   ;;  %v4266_v42 = vld [vmem:[%s4462_s10 + $0x25c] ss:$20 sps:$4 sm:$0xff]   ;;  %v4263_v43 = vld [vmem:[%s5161_s1 + $0xa8] sm:$0xff]  }
  0x1d   : > { %3899 = vmatprep.subr.bf16.mxu0 %v4225_v8  ;;  %4179 = vmatprep.subr.bf16.mxu1 %v4225_v8  ;;  %v4268_v44 = vld [vmem:[%s4462_s10 + $0x78] ss:$20 sps:$4 sm:$0xff]   ;;  %v4270_v46 = vld [vmem:[%s5161_s1 + $0xf0] sm:$0xff]   ;;  %v4277_v53 = vld [vmem:[%s4462_s10 + $0x8] ss:$20 sps:$4 sm:$0xff]  }
  0x1e   : > { %v4269_v45 = vld [vmem:[%s4462_s10 + $0x258] ss:$20 sps:$4 sm:$0xff]   ;;  %v4293_v47 = vld [vmem:[%s5161_s1 + $0x110] sm:$0xff]   ;;  %v4285_v58 = vld [vmem:[%s4462_s10 + $0xc8] ss:$20 sps:$4 sm:$0xff]  }
  0x1f   : > { %v4271_v48 = vld [vmem:[%s5161_s1 + $0xb0] sm:$0xff]   ;;  %v4275_v50 = vld [vmem:[%s4462_s10 + $0xa4] ss:$20 sps:$4 sm:$0xff]   ;;  %v4279_v51 = vld [vmem:[%s4462_s10 + $0xc] ss:$20 sps:$4 sm:$0xff]  }
  0x20   : > { %3900 = vmatpush3.bf16.msra.mxu0 %v4226_v9  ;;  %4187 = vmatpush3.bf16.msra.mxu1 %v4226_v9  ;;  %v4274_v52 = vld [vmem:[%s5161_s1 + $0xb8] sm:$0xff]   ;;  %v4280_v54 = vld [vmem:[%s4462_s10 + $0xa0] ss:$20 sps:$4 sm:$0xff]   ;;  %v4286_v59 = vld [vmem:[%s4462_s10 + $0x30] ss:$20 sps:$4 sm:$0xff]  }
  0x21   : > { %3901 = vmatprep.subr.bf16.mxu0 %v4227_v10  ;;  %4180 = vmatprep.subr.bf16.mxu1 %v4227_v10  ;;  %v4281_v55 = vld [vmem:[%s4462_s10 + $0xcc] ss:$20 sps:$4 sm:$0xff]   ;;  %v4312_v56 = vld [vmem:[%s5161_s1 + $0x118] sm:$0xff]   ;;  %v4283_v57 = vld [vmem:[%s4462_s10 + $0x34] ss:$20 sps:$4 sm:$0xff]  }
  0x22   : > { %v4287_v60 = vld [vmem:[%s4462_s10 + $0xf4] ss:$20 sps:$4 sm:$0xff]   ;;  %v4289_v61 = vld [vmem:[%s4462_s10 + $0x5c] ss:$20 sps:$4 sm:$0xff]   ;;  %v4292_v63 = vld [vmem:[%s4462_s10 + $0x58] ss:$20 sps:$4 sm:$0xff]  }
  0x23   : > { %v4291_v62 = vld [vmem:[%s4462_s10 + $0xf0] ss:$20 sps:$4 sm:$0xff]   ;;  %v4298_v2 = vld [vmem:[%s4462_s10 + $0x118] ss:$20 sps:$4 sm:$0xff]   ;;  %v4299_v3 = vld [vmem:[%s4462_s10 + $0x80] ss:$20 sps:$4 sm:$0xff]  }
  0x24   : > { %3902 = vmatpush3.bf16.msra.mxu0 %v4228_v13  ;;  %4188 = vmatpush3.bf16.msra.mxu1 %v4228_v13  ;;  %v4294_v0 = vld [vmem:[%s4462_s10 + $0x11c] ss:$20 sps:$4 sm:$0xff]   ;;  %v4296_v1 = vld [vmem:[%s4462_s10 + $0x84] ss:$20 sps:$4 sm:$0xff]   ;;  %v4302_v5 = vld [vmem:[%s4462_s10 + $0xac] ss:$20 sps:$4 sm:$0xff]  }
  0x25   : > { %3903 = vmatprep.subr.bf16.mxu0 %v4229_v14  ;;  %4181 = vmatprep.subr.bf16.mxu1 %v4229_v14  ;;  %v4300_v4 = vld [vmem:[%s4462_s10 + $0x144] ss:$20 sps:$4 sm:$0xff]   ;;  %v4304_v6 = vld [vmem:[%s4462_s10 + $0x140] ss:$20 sps:$4 sm:$0xff]   ;;  %v4305_v7 = vld [vmem:[%s4462_s10 + $0xa8] ss:$20 sps:$4 sm:$0xff]  }
  0x26   : > { %v4306_v8 = vld [vmem:[%s4462_s10 + $0x16c] ss:$20 sps:$4 sm:$0xff]   ;;  %v4308_v9 = vld [vmem:[%s4462_s10 + $0xd4] ss:$20 sps:$4 sm:$0xff]   ;;  %v4311_v11 = vld [vmem:[%s4462_s10 + $0xd0] ss:$20 sps:$4 sm:$0xff]  }
  0x27   : > { %v4310_v10 = vld [vmem:[%s4462_s10 + $0x168] ss:$20 sps:$4 sm:$0xff]   ;;  %v4317_v14 = vld [vmem:[%s4462_s10 + $0x190] ss:$20 sps:$4 sm:$0xff]  }
  0x28   : > { %3904 = vmatpush3.bf16.msra.mxu0 %v4230_v15  ;;  %4189 = vmatpush3.bf16.msra.mxu1 %v4230_v15  ;;  %v4313_v12 = vld [vmem:[%s4462_s10 + $0x194] ss:$20 sps:$4 sm:$0xff]   ;;  %v4315_v13 = vld [vmem:[%s4462_s10 + $0xfc] ss:$20 sps:$4 sm:$0xff]   ;;  %v4318_v15 = vld [vmem:[%s4462_s10 + $0xf8] ss:$20 sps:$4 sm:$0xff]  }
  0x29   : > { %3905 = vmatprep.subr.bf16.mxu0 %v4231_v16  ;;  %4182 = vmatprep.subr.bf16.mxu1 %v4231_v16  ;;  %v4319_v16 = vld [vmem:[%s4462_s10 + $0x1bc] ss:$20 sps:$4 sm:$0xff]  }
  0x2c   : > { %3906 = vmatpush3.bf16.msra.mxu0 %v4232_v17  ;;  %4190 = vmatpush3.bf16.msra.mxu1 %v4232_v17  ;;  %v4321_v17 = vld [vmem:[%s4462_s10 + $0x124] ss:$20 sps:$4 sm:$0xff]  }
  0x2d   : > { %4003 = vmatprep.subr.bf16.mxu1 %v4239_v18  ;;  %4135 = vmatprep.subr.bf16.mxu0 %v4242_v19  ;;  %v4323_v18 = vld [vmem:[%s4462_s10 + $0x1b8] ss:$20 sps:$4 sm:$0xff]  }
  0x2f   : > { %1133 = vmatmul.mubr.bf16.vlgmr.msra.gmra.mrb[0].mxu0 %v4233_v20  ;;  %1229 = vmatmul.mubr.bf16.vlgmr.msra.gmra.mrb[0].mxu1 %v4236_v21  ;;  %v4325_v20 = vld [vmem:[%s4462_s10 + $0x14c] ss:$20 sps:$4 sm:$0xff]   ;;  %v4327_v21 = vld [vmem:[%s4462_s10 + $0x10] ss:$20 sps:$4 sm:$0xff]  }
  0x30   : > { %4004 = vmatpush3.bf16.msra.mxu1 %v4240_v22  ;;  %4136 = vmatpush3.bf16.msra.mxu0 %v4242_v19  ;;  %v4324_v19 = vld [vmem:[%s4462_s10 + $0x120] ss:$20 sps:$4 sm:$0xff]   ;;  %v4328_v22 = vld [vmem:[%s4462_s10 + $0x148] ss:$20 sps:$4 sm:$0xff]  }
  0x31   : > { %4005 = vmatprep.subr.bf16.mxu1 %v4241_v23  ;;  %1140 = vmatprep.mubr.bf16.mxu0 %v4244_v24  ;;  %v4329_v23 = vld [vmem:[%s4462_s10 + $0x38] ss:$20 sps:$4 sm:$0xff]   ;;  %v4330_v24 = vld [vmem:[%s4462_s10 + $0x174] ss:$20 sps:$4 sm:$0xff]  }
  0x32   : > { %1236 = vmatprep.mubr.bf16.mxu1 %v4246_v25  ;;  %4137 = vmatprep.subr.bf16.mxu0 %v4273_v35  ;;  %v4332_v25 = vld [vmem:[%s4462_s10 + $0x60] ss:$20 sps:$4 sm:$0xff]  }
  0x34   : > { %4006 = vmatpush3.bf16.msra.mxu1 %v4243_v26  ;;  %4138 = vmatpush3.bf16.msra.mxu0 %v4273_v35  ;;  %v4333_v26 = vld [vmem:[%s4462_s10 + $0x170] ss:$20 sps:$4 sm:$0xff]   ;;  %v4344_v35 = vld [vmem:[%s4462_s10 + $0x128] ss:$20 sps:$4 sm:$0xff]  }
  0x35   : > { %4007 = vmatprep.subr.bf16.mxu1 %v4250_v28  ;;  %4139 = vmatprep.subr.bf16.mxu0 %v4293_v47  ;;  %v4335_v28 = vld [vmem:[%s4462_s10 + $0x19c] ss:$20 sps:$4 sm:$0xff]  }
  0x37   : > { %1141 = vmatmul.mubr.bf16.gmra.mrb[4].mxu0 %v4248_v27  ;;  %1237 = vmatmul.mubr.bf16.gmra.mrb[4].mxu1 %v4249_v29  ;;  %v4334_v27 = vld [vmem:[%s4462_s10 + $0x88] ss:$20 sps:$4 sm:$0xff]   ;;  %v4337_v29 = vld [vmem:[%s4462_s10 + $0xb0] ss:$20 sps:$4 sm:$0xff]  }
  0x38   : > { %4008 = vmatpush3.bf16.msra.mxu1 %v4251_v30  ;;  %1148 = vmatprep.mubr.bf16.mxu0 %v4254_v32  ;;  %v4338_v30 = vld [vmem:[%s4462_s10 + $0x198] ss:$20 sps:$4 sm:$0xff]  }
  0x39   : > { %4009 = vmatprep.subr.bf16.mxu1 %v4252_v31  ;;  %1244 = vmatprep.mubr.bf16.mxu1 %v4256_v33  ;;  %v4339_v31 = vld [vmem:[%s4462_s10 + $0xd8] ss:$20 sps:$4 sm:$0xff]   ;;  %v4342_v33 = vld [vmem:[%s4462_s10 + $0x100] ss:$20 sps:$4 sm:$0xff]  }
  0x3a   : > { %4140 = vmatpush3.bf16.msra.mxu0 %v4293_v47  ;;  %v4340_v32 = vld [vmem:[%s4462_s10 + $0x1c4] ss:$20 sps:$4 sm:$0xff]  }
  0x3b   : > { %4141 = vmatprep.subr.bf16.mxu0 %v4312_v56  ;;  %v4359_v47 = vld [vmem:[%s4462_s10 + $0x218] ss:$20 sps:$4 sm:$0xff]  }
  0x3c   : > { %4010 = vmatpush3.bf16.msra.mxu1 %v4253_v34  ;;  %v4343_v34 = vld [vmem:[%s4462_s10 + $0x1c0] ss:$20 sps:$4 sm:$0xff]  }
  0x3d   : > { %4011 = vmatprep.subr.bf16.mxu1 %v4260_v37  ;;  %v4347_v37 = vld [vmem:[%s4462_s10 + $0x150] ss:$20 sps:$4 sm:$0xff]  }
  0x3e   : > { %4142 = vmatpush3.bf16.msra.mxu0 %v4312_v56 }
  0x3f   : > { %1149 = vmatmul.mubr.bf16.gmra.mrb[8].mxu0 %v4258_v36  ;;  %1245 = vmatmul.mubr.bf16.gmra.mrb[8].mxu1 %v4259_v38  ;;  %v4345_v36 = vld [vmem:[%s4462_s10 + $0x1ec] ss:$20 sps:$4 sm:$0xff]   ;;  %v4348_v38 = vld [vmem:[%s4462_s10 + $0x1e8] ss:$20 sps:$4 sm:$0xff]  }
  0x40   : > { %4012 = vmatpush3.bf16.msra.mxu1 %v4261_v39  ;;  %1156 = vmatprep.mubr.bf16.mxu0 %v4264_v41  ;;  %v4349_v39 = vld [vmem:[%s4462_s10 + $0x178] ss:$20 sps:$4 sm:$0xff]   ;;  %v4352_v41 = vld [vmem:[%s4462_s10 + $0x1a0] ss:$20 sps:$4 sm:$0xff]  }
  0x41   : > { %4013 = vmatprep.subr.bf16.mxu1 %v4262_v40  ;;  %1252 = vmatprep.mubr.bf16.mxu1 %v4266_v42  ;;  %v4350_v40 = vld [vmem:[%s4462_s10 + $0x214] ss:$20 sps:$4 sm:$0xff]   ;;  %v4353_v42 = vld [vmem:[%s4462_s10 + $0x210] ss:$20 sps:$4 sm:$0xff]  }
  0x44   : > { %4014 = vmatpush3.bf16.msra.mxu1 %v4263_v43  ;;  %v4354_v43 = vld [vmem:[%s4462_s10 + $0x1c8] ss:$20 sps:$4 sm:$0xff]  }
  0x45   : > { %4015 = vmatprep.subr.bf16.mxu1 %v4270_v46  ;;  %v4358_v46 = vld [vmem:[%s4462_s10 + $0x238] ss:$20 sps:$4 sm:$0xff]  }
  0x47   : > { %1157 = vmatmul.mubr.bf16.gmra.mrb[12].mxu0 %v4268_v44  ;;  %1253 = vmatmul.mubr.bf16.gmra.mrb[12].mxu1 %v4269_v45  ;;  %v4355_v44 = vld [vmem:[%s4462_s10 + $0x23c] ss:$20 sps:$4 sm:$0xff]  }
  0x48   : > { %4016 = vmatpush3.bf16.msra.mxu1 %v4271_v48  ;;  %1164 = vmatprep.mubr.bf16.mxu0 %v4275_v50  ;;  %v4357_v45 = vld [vmem:[%s4462_s10 + $0x1f0] ss:$20 sps:$4 sm:$0xff]   ;;  %v4363_v50 = vld [vmem:[%s4462_s10 + $0x260] ss:$20 sps:$4 sm:$0xff]  }
  0x49   : > { %4017 = vmatprep.subr.bf16.mxu1 %v4272_v49  ;;  %1293 = vmatprep.mubr.bf16.mxu1 %v4279_v51  ;;  %v4360_v48 = vld [vmem:[%s4462_s10 + $0x264] ss:$20 sps:$4 sm:$0xff]   ;;  %v4362_v49 = vld [vmem:[%s4462_s10 + $0x240] ss:$20 sps:$4 sm:$0xff]   ;;  %v4364_v51 = vld [vmem:[%s4462_s10 + $0x268] ss:$20 sps:$4 sm:$0xff]  }
  0x4c   : > { %4018 = vmatpush3.bf16.msra.mxu1 %v4274_v52 }
  0x4f   : > { %1165 = vmatmul.mubr.bf16.gmra.mrb[16].mxu0 %v4280_v54  ;;  %1294 = vmatmul.mubr.bf16.vlgmr.msra.gmra.mrb[16].mxu1 %v4277_v53 }
  0x50   : > { %1172 = vmatprep.mubr.bf16.mxu0 %v4281_v55  ;;  %1301 = vmatprep.mubr.bf16.mxu1 %v4283_v57 }
  0x57   : > { %1173 = vmatmul.mubr.bf16.gmra.mrb[20].mxu0 %v4285_v58  ;;  %1302 = vmatmul.mubr.bf16.gmra.mrb[20].mxu1 %v4286_v59 }
  0x58   : > { %1180 = vmatprep.mubr.bf16.mxu0 %v4287_v60  ;;  %1309 = vmatprep.mubr.bf16.mxu1 %v4289_v61 }
  0x5f   : > { %1181 = vmatmul.mubr.bf16.gmra.mrb[24].mxu0 %v4291_v62  ;;  %1310 = vmatmul.mubr.bf16.gmra.mrb[24].mxu1 %v4292_v63 }
  0x60   : > { %1188 = vmatprep.mubr.bf16.mxu0 %v4294_v0  ;;  %1317 = vmatprep.mubr.bf16.mxu1 %v4296_v1 }
  0x67   : > { %1189 = vmatmul.mubr.bf16.gmra.mrb[28].mxu0 %v4298_v2  ;;  %1318 = vmatmul.mubr.bf16.gmra.mrb[28].mxu1 %v4299_v3 }
  0x68   : > { %1196 = vmatprep.mubr.bf16.mxu0 %v4300_v4  ;;  %1325 = vmatprep.mubr.bf16.mxu1 %v4302_v5 }
  0x6f   : > { %1197 = vmatmul.mubr.bf16.gmra.mrb[32].mxu0 %v4304_v6  ;;  %1326 = vmatmul.mubr.bf16.gmra.mrb[32].mxu1 %v4305_v7 }
  0x70   : > { %1204 = vmatprep.mubr.bf16.mxu0 %v4306_v8  ;;  %1333 = vmatprep.mubr.bf16.mxu1 %v4308_v9 }
  0x77   : > { %1205 = vmatmul.mubr.bf16.gmra.mrb[36].mxu0 %v4310_v10  ;;  %1334 = vmatmul.mubr.bf16.gmra.mrb[36].mxu1 %v4311_v11 }
  0x78   : > { %1212 = vmatprep.mubr.bf16.mxu0 %v4313_v12  ;;  %1341 = vmatprep.mubr.bf16.mxu1 %v4315_v13 }
  0x7f   : > { %1213 = vmatmul.mubr.bf16.gmra.mrb[40].mxu0 %v4317_v14  ;;  %1342 = vmatmul.mubr.bf16.gmra.mrb[40].mxu1 %v4318_v15 }
  0x80   : > { %1220 = vmatprep.mubr.bf16.mxu0 %v4319_v16  ;;  %1349 = vmatprep.mubr.bf16.mxu1 %v4321_v17 }
  0x87   : > { %1221 = vmatmul.mubr.bf16.gmra.mrb[44].mxu0 %v4323_v18  ;;  %1350 = vmatmul.mubr.bf16.gmra.mrb[44].mxu1 %v4324_v19 }
  0x88   : > { %1357 = vmatprep.mubr.bf16.mxu1 %v4325_v20  ;;  %4143 = vmatprep.mubr.msk.bf16.mxu0 %vm1051_vm0, %v4327_v21 }
  0x8f   : > { %1358 = vmatmul.mubr.bf16.gmra.mrb[48].mxu1 %v4328_v22  ;;  %4144 = vmatmul.mubr.msk.bf16.vlgmr.msra.gmra.mrb[48].mxu0 %vm1051_vm0, %v4329_v23 }
  0x90   : > { %1365 = vmatprep.mubr.bf16.mxu1 %v4330_v24  ;;  %4147 = vmatprep.mubr.msk.bf16.mxu0 %vm1051_vm0, %v4332_v25 }
  0x97   : > { %1366 = vmatmul.mubr.bf16.gmra.mrb[52].mxu1 %v4333_v26  ;;  %4148 = vmatmul.mubr.msk.bf16.gmra.mrb[52].mxu0 %vm1051_vm0, %v4334_v27 }
  0x98   : > { %1373 = vmatprep.mubr.bf16.mxu1 %v4335_v28  ;;  %4151 = vmatprep.mubr.msk.bf16.mxu0 %vm1051_vm0, %v4337_v29 }
  0x9f   : > { %1374 = vmatmul.mubr.bf16.gmra.mrb[56].mxu1 %v4338_v30  ;;  %4152 = vmatmul.mubr.msk.bf16.gmra.mrb[56].mxu0 %vm1051_vm0, %v4339_v31 }
  0xa0   : > { %1381 = vmatprep.mubr.bf16.mxu1 %v4340_v32  ;;  %4155 = vmatprep.mubr.msk.bf16.mxu0 %vm1051_vm0, %v4342_v33 }
  0xa7   : > { %1382 = vmatmul.mubr.bf16.gmra.mrb[60].mxu1 %v4343_v34  ;;  %4156 = vmatmul.mubr.msk.bf16.gmra.mrb[60].mxu0 %vm1051_vm0, %v4344_v35 }
  0xa8   : > { %1389 = vmatprep.mubr.bf16.mxu1 %v4345_v36  ;;  %4159 = vmatprep.mubr.msk.bf16.mxu0 %vm1051_vm0, %v4347_v37 }
  0xaf   : > { %1390 = vmatmul.mubr.bf16.gmra.mrb[64].mxu1 %v4348_v38  ;;  %4160 = vmatmul.mubr.msk.bf16.gmra.mrb[64].mxu0 %vm1051_vm0, %v4349_v39  ;;  %v4660_v38 = vld [vmem:[%s5162_s2] ss:$0 sm:$0xff] }
  0xb0   : > { %1397 = vmatprep.mubr.bf16.mxu1 %v4350_v40  ;;  %4163 = vmatprep.mubr.msk.bf16.mxu0 %vm1051_vm0, %v4352_v41 }
  0xb7   : > { %1398 = vmatmul.mubr.bf16.gmra.mrb[68].mxu1 %v4353_v42  ;;  %4164 = vmatmul.mubr.msk.bf16.gmra.mrb[68].mxu0 %vm1051_vm0, %v4354_v43 }
  0xb8   : > { %1405 = vmatprep.mubr.bf16.mxu1 %v4355_v44  ;;  %4167 = vmatprep.mubr.msk.bf16.mxu0 %vm1051_vm0, %v4357_v45 }
  0xbf   : > { %1406 = vmatmul.mubr.bf16.gmra.mrb[72].mxu1 %v4358_v46  ;;  %4168 = vmatmul.mubr.msk.bf16.gmra.mrb[72].mxu0 %vm1051_vm0, %v4359_v47 }
  0xc0   : > { %1413 = vmatprep.mubr.bf16.mxu1 %v4360_v48  ;;  %4171 = vmatprep.mubr.msk.bf16.mxu0 %vm1051_vm0, %v4362_v49 }
  0xc7   : > { %1414 = vmatmul.mubr.bf16.gmra.mrb[76].mxu1 %v4363_v50  ;;  %4172 = vmatmul.mubr.msk.bf16.gmra.mrb[76].mxu0 %vm1051_vm0, %v4364_v51 }
 0x102   : > { %v3979_v52 = vpop.f32.mrb[0].mxu1  ;;  %v3907_v53 = vpop.f32.mrb[0].mxu0 }
 0x103   : > { %v3980_v54 = vpop.f32.mrb[1].mxu1  ;;  %v3908_v55 = vpop.f32.mrb[1].mxu0 }
 0x104   : > { %v4641_v56 = vadd.f32 %v3980_v54, %v3979_v52  ;;  %v3982_v57 = vpop.f32.mrb[2].mxu1  ;;  %v3909_v58 = vadd.f32 %v3908_v55, %v3907_v53  ;;  %v3910_v59 = vpop.f32.mrb[2].mxu0 }
 0x105   : > { %v3983_v60 = vpop.f32.mrb[3].mxu1  ;;  %v3911_v61 = vpop.f32.mrb[3].mxu0 }
 0x106   : > { %v4643_v62 = vadd.f32 %v3983_v60, %v3982_v57  ;;  %v3912_v63 = vadd.f32 %v3911_v61, %v3910_v59  ;;  %v1135_v41 = vadd.f32 %v3909_v58, %v4660_v38 }
 0x108   : > { %v1138_v48 = vadd.f32 %v3912_v63, %v4660_v38 }
 0x10a   : > { %v3985_v0 = vpop.f32.mrb[4].mxu1  ;;  %v3913_v1 = vpop.f32.mrb[4].mxu0 }
 0x10b   : > { %v3986_v2 = vpop.f32.mrb[5].mxu1  ;;  %v3914_v3 = vpop.f32.mrb[5].mxu0 }
 0x10c   : > { %v4645_v4 = vadd.f32 %v3986_v2, %v3985_v0  ;;  %v3988_v5 = vpop.f32.mrb[6].mxu1  ;;  %v3915_v6 = vadd.f32 %v3914_v3, %v3913_v1  ;;  %v3916_v7 = vpop.f32.mrb[6].mxu0 }
 0x10d   : > { %v3989_v8 = vpop.f32.mrb[7].mxu1  ;;  %v3917_v9 = vpop.f32.mrb[7].mxu0 }
 0x10e   : > { %v4647_v10 = vadd.f32 %v3989_v8, %v3988_v5  ;;  %v3918_v11 = vadd.f32 %v3917_v9, %v3916_v7  ;;  %v1143_v58 = vadd.f32 %v3915_v6, %v4660_v38 }
 0x110   : > { %v1146_v63 = vadd.f32 %v3918_v11, %v4660_v38 }
 0x112   : > { %v3991_v12 = vpop.f32.mrb[8].mxu1  ;;  %v3919_v13 = vpop.f32.mrb[8].mxu0 }
 0x113   : > { %v3992_v14 = vpop.f32.mrb[9].mxu1  ;;  %v3920_v15 = vpop.f32.mrb[9].mxu0 }
 0x114   : > { %v4649_v16 = vadd.f32 %v3992_v14, %v3991_v12  ;;  %v3994_v17 = vpop.f32.mrb[10].mxu1  ;;  %v3921_v18 = vadd.f32 %v3920_v15, %v3919_v13  ;;  %v3922_v19 = vpop.f32.mrb[10].mxu0 }
 0x115   : > { %v3995_v20 = vpop.f32.mrb[11].mxu1  ;;  %v3923_v21 = vpop.f32.mrb[11].mxu0 }
 0x116   : > { %v4651_v22 = vadd.f32 %v3995_v20, %v3994_v17  ;;  %v3924_v23 = vadd.f32 %v3923_v21, %v3922_v19  ;;  %v1151_v6 = vadd.f32 %v3921_v18, %v4660_v38 }
 0x118   : > { %v1154_v11 = vadd.f32 %v3924_v23, %v4660_v38 }
 0x11a   : > { %v3997_v24 = vpop.f32.mrb[12].mxu1  ;;  %v3925_v25 = vpop.f32.mrb[12].mxu0 }
 0x11b   : > { %v3998_v26 = vpop.f32.mrb[13].mxu1  ;;  %v3926_v27 = vpop.f32.mrb[13].mxu0 }
 0x11c   : > { %v4653_v28 = vadd.f32 %v3998_v26, %v3997_v24  ;;  %v4000_v29 = vpop.f32.mrb[14].mxu1  ;;  %v3927_v30 = vadd.f32 %v3926_v27, %v3925_v25  ;;  %v3928_v31 = vpop.f32.mrb[14].mxu0 }
 0x11d   : > { %v4001_v32 = vpop.f32.mrb[15].mxu1  ;;  %v3929_v33 = vpop.f32.mrb[15].mxu0 }
 0x11e   : > { %5164 = vst [vmem:[#allocation2_spill] sm:$0xff] %v4653_v28  ;;  %v4655_v34 = vadd.f32 %v4001_v32, %v4000_v29  ;;  %v3930_v35 = vadd.f32 %v3929_v33, %v3928_v31  ;;  %v1159_v18 = vadd.f32 %v3927_v30, %v4660_v38 }
 0x120   : > { %5165 = vst [vmem:[#allocation3_spill] sm:$0xff] %v4655_v34  ;;  %v1162_v23 = vadd.f32 %v3930_v35, %v4660_v38 }
 0x122   : > { %v4019_v36 = vpop.f32.mrb[16].mxu1  ;;  %v3931_v37 = vpop.f32.mrb[16].mxu0 }
 0x123   : > { %v4020_v39 = vpop.f32.mrb[17].mxu1  ;;  %v3932_v40 = vpop.f32.mrb[17].mxu0 }
 0x124   : > { %v4021_v42 = vadd.f32 %v4020_v39, %v4019_v36  ;;  %v4022_v43 = vpop.f32.mrb[18].mxu1  ;;  %v3933_v44 = vadd.f32 %v3932_v40, %v3931_v37  ;;  %v3934_v45 = vpop.f32.mrb[18].mxu0 }
 0x125   : > { %v4023_v46 = vpop.f32.mrb[19].mxu1  ;;  %v3935_v47 = vpop.f32.mrb[19].mxu0 }
 0x126   : > { %v4024_v49 = vadd.f32 %v4023_v46, %v4022_v43  ;;  %v3936_v50 = vadd.f32 %v3935_v47, %v3934_v45  ;;  %v4664_v51 = vadd.f32 %v4021_v42, %v1135_v41 }
 0x128   : > { %v4666_v52 = vadd.f32 %v4024_v49, %v1138_v48 }
 0x12a   : > { %v4025_v53 = vpop.f32.mrb[20].mxu1  ;;  %v3937_v54 = vpop.f32.mrb[20].mxu0 }
 0x12b   : > { %v4026_v55 = vpop.f32.mrb[21].mxu1  ;;  %v3938_v57 = vpop.f32.mrb[21].mxu0 }
 0x12c   : > { %v4027_v59 = vadd.f32 %v4026_v55, %v4025_v53  ;;  %v4028_v60 = vpop.f32.mrb[22].mxu1  ;;  %v3939_v61 = vadd.f32 %v3938_v57, %v3937_v54  ;;  %v3940_v0 = vpop.f32.mrb[22].mxu0  ;;  %v1167_v55 = vadd.f32 %v3933_v44, %v4660_v38 }
 0x12d   : > { %v4029_v1 = vpop.f32.mrb[23].mxu1  ;;  %v3941_v2 = vpop.f32.mrb[23].mxu0 }
 0x12e   : > { %v4030_v3 = vadd.f32 %v4029_v1, %v4028_v60  ;;  %v3942_v5 = vadd.f32 %v3941_v2, %v3940_v0  ;;  %v4670_v7 = vadd.f32 %v4027_v59, %v1143_v58  ;;  %v1170_v1 = vadd.f32 %v3936_v50, %v4660_v38 }
 0x130   : > { %v4672_v8 = vadd.f32 %v4030_v3, %v1146_v63  ;;  %v1178_v50 = vadd.f32 %v3942_v5, %v4660_v38 }
 0x132   : > { %v4031_v9 = vpop.f32.mrb[24].mxu1  ;;  %v3943_v12 = vpop.f32.mrb[24].mxu0 }
 0x133   : > { %v4032_v13 = vpop.f32.mrb[25].mxu1  ;;  %v3944_v14 = vpop.f32.mrb[25].mxu0 }
 0x134   : > { %v4033_v15 = vadd.f32 %v4032_v13, %v4031_v9  ;;  %v4034_v17 = vpop.f32.mrb[26].mxu1  ;;  %v3945_v19 = vadd.f32 %v3944_v14, %v3943_v12  ;;  %v3946_v20 = vpop.f32.mrb[26].mxu0 }
 0x135   : > { %v4035_v21 = vpop.f32.mrb[27].mxu1  ;;  %v3947_v24 = vpop.f32.mrb[27].mxu0 }
 0x136   : > { %v4036_v25 = vadd.f32 %v4035_v21, %v4034_v17  ;;  %v3948_v26 = vadd.f32 %v3947_v24, %v3946_v20  ;;  %v4676_v27 = vadd.f32 %v4033_v15, %v1151_v6  ;;  %v1175_v6 = vadd.f32 %v3939_v61, %v4660_v38 }
 0x137   : > { %v1183_v61 = vadd.f32 %v3945_v19, %v4660_v38 }
 0x138   : > { %v4678_v29 = vadd.f32 %v4036_v25, %v1154_v11  ;;  %v1186_v5 = vadd.f32 %v3948_v26, %v4660_v38 }
 0x13a   : > { %v4037_v31 = vpop.f32.mrb[28].mxu1  ;;  %v3949_v32 = vpop.f32.mrb[28].mxu0 }
 0x13b   : > { %v4038_v33 = vpop.f32.mrb[29].mxu1  ;;  %v3950_v36 = vpop.f32.mrb[29].mxu0 }
 0x13c   : > { %v4039_v37 = vadd.f32 %v4038_v33, %v4037_v31  ;;  %v4040_v39 = vpop.f32.mrb[30].mxu1  ;;  %v4681_v40 = vadd.f32 %v3950_v36, %v3949_v32  ;;  %v3952_v41 = vpop.f32.mrb[30].mxu0 }
 0x13d   : > { %v4041_v42 = vpop.f32.mrb[31].mxu1  ;;  %v3953_v43 = vpop.f32.mrb[31].mxu0 }
 0x13e   : > { %v4042_v45 = vadd.f32 %v4041_v42, %v4040_v39  ;;  %v4684_v46 = vadd.f32 %v3953_v43, %v3952_v41  ;;  %v4686_v47 = vadd.f32 %v4039_v37, %v1159_v18 }
 0x140   : > { %v4688_v48 = vadd.f32 %v4042_v45, %v1162_v23 }
 0x142   : > { %v4043_v49 = vpop.f32.mrb[32].mxu1  ;;  %v3955_v53 = vpop.f32.mrb[32].mxu0 }
 0x143   : > { %v4044_v54 = vpop.f32.mrb[33].mxu1  ;;  %v3956_v30 = vpop.f32.mrb[33].mxu0 }
 0x144   : > { %v4045_v57 = vadd.f32 %v4044_v54, %v4043_v49  ;;  %v4046_v58 = vpop.f32.mrb[34].mxu1  ;;  %v4691_v59 = vadd.f32 %v3956_v30, %v3955_v53  ;;  %v3958_v60 = vpop.f32.mrb[34].mxu0 }
 0x145   : > { %v4047_v0 = vpop.f32.mrb[35].mxu1  ;;  %v3959_v35 = vpop.f32.mrb[35].mxu0 }
 0x146   : > { %v4048_v2 = vadd.f32 %v4047_v0, %v4046_v58  ;;  %v4694_v63 = vadd.f32 %v3959_v35, %v3958_v60  ;;  %v4696_v3 = vadd.f32 %v4045_v57, %v1167_v55  ;;  %v4390_v57 = vmov 1983009808  }
 0x147   : > { %v1649_v58 = vunpack.c.l.s4 %v4390_v57  ;;  %v1651_v60 = vlaneseq }
 0x148   : > { %v4698_v9 = vadd.f32 %v4048_v2, %v1170_v1  ;;  %v1191_v2 = vadd.f32 %v4681_v40, %v4660_v38  ;;  %v4722_v40 = vadd.f32 %v4641_v56, %v4660_v38  ;;  %v4744_v56 = vadd.f32 %v4651_v22, %v4660_v38 }
 0x14a   : > { %v4049_v12 = vpop.f32.mrb[36].mxu1  ;;  %v3961_v13 = vpop.f32.mrb[36].mxu0  ;;  %5166 = vst [vmem:[#allocation4_spill] sm:$0xff] %v4722_v40  ;;  %5171 = vst [vmem:[#allocation9_spill] sm:$0xff] %v4744_v56 }
 0x14b   : > { %v4050_v14 = vpop.f32.mrb[37].mxu1  ;;  %v3962_v44 = vpop.f32.mrb[37].mxu0 }
 0x14c   : > { %v4051_v15 = vadd.f32 %v4050_v14, %v4049_v12  ;;  %v4052_v17 = vpop.f32.mrb[38].mxu1  ;;  %v3963_v20 = vadd.f32 %v3962_v44, %v3961_v13  ;;  %v3964_v21 = vpop.f32.mrb[38].mxu0 }
 0x14d   : > { %v4053_v24 = vpop.f32.mrb[39].mxu1  ;;  %v3965_v11 = vpop.f32.mrb[39].mxu0 }
 0x14e   : > { %v4054_v25 = vadd.f32 %v4053_v24, %v4052_v17  ;;  %v3966_v31 = vadd.f32 %v3965_v11, %v3964_v21  ;;  %v4702_v32 = vadd.f32 %v4051_v15, %v1175_v6  ;;  %v1650_v15 = vunpack.c.0.s8 %v1649_v58 }
 0x14f   : > { %v1652_v17 = vshrl.u32 %v1651_v60, 7  ;;  %v1194_v21 = vadd.f32 %v4684_v46, %v4660_v38  ;;  %v4736_v46 = vadd.f32 %v4647_v10, %v4660_v38 }
 0x150   : > { %v4704_v33 = vadd.f32 %v4054_v25, %v1178_v50 }
 0x151   : > { %5169 = vst [vmem:[#allocation7_spill] sm:$0xff] %v4736_v46 }
 0x152   : > { %v4055_v36 = vpop.f32.mrb[40].mxu1  ;;  %v3967_v18 = vpop.f32.mrb[40].mxu0 }
 0x153   : > { %v4056_v37 = vpop.f32.mrb[41].mxu1  ;;  %v3968_v39 = vpop.f32.mrb[41].mxu0 }
 0x154   : > { %v4057_v41 = vadd.f32 %v4056_v37, %v4055_v36  ;;  %v4058_v42 = vpop.f32.mrb[42].mxu1  ;;  %v3969_v43 = vadd.f32 %v3968_v39, %v3967_v18  ;;  %v3970_v23 = vpop.f32.mrb[42].mxu0  ;;  %v4726_v36 = vadd.f32 %v4643_v62, %v4660_v38  ;;  %v4728_v18 = vsub.s32 %v1650_v15, %v1652_v17 }
 0x155   : > { %v4059_v45 = vpop.f32.mrb[43].mxu1  ;;  %v3971_v49 = vpop.f32.mrb[43].mxu0  ;;  %v4732_v37 = vadd.f32 %v4645_v4, %v4660_v38  ;;  %v4740_v39 = vadd.f32 %v4649_v16, %v4660_v38  ;;  %v1202_v4 = vadd.f32 %v4694_v63, %v4660_v38 }
 0x156   : > { %v4060_v53 = vadd.f32 %v4059_v45, %v4058_v42  ;;  %v3972_v54 = vadd.f32 %v3971_v49, %v3970_v23  ;;  %v4708_v30 = vadd.f32 %v4057_v41, %v1183_v61  ;;  %5167 = vst [vmem:[#allocation5_spill] sm:$0xff] %v4726_v36  ;;  %v1199_v41 = vadd.f32 %v4691_v59, %v4660_v38 }
 0x157   : > { %5168 = vst [vmem:[#allocation6_spill] sm:$0xff] %v4732_v37  ;;  %5170 = vst [vmem:[#allocation8_spill] sm:$0xff] %v4740_v39  ;;  %v4751_v42 = vadd.f32 %v3963_v20, %v4660_v38  ;;  %v4755_v45 = vadd.f32 %v3966_v31, %v4660_v38  ;;  %v4758_v22 = vadd.f32 %v3969_v43, %v4660_v38 }
 0x158   : > { %v4710_v55 = vadd.f32 %v4060_v53, %v1186_v5  ;;  %v4762_v63 = vadd.f32 %v3972_v54, %v4660_v38 }
 0x159   : > { %5172 = vst [vmem:[#allocation10_spill] sm:$0xff] %v4755_v45  ;;  %5173 = vst [vmem:[#allocation11_spill] sm:$0xff] %v4758_v22 }
 0x15a   : > { %v4061_v0 = vpop.f32.mrb[44].mxu1  ;;  %v3973_v35 = vpop.f32.mrb[44].mxu0  ;;  %5174 = vst [vmem:[#allocation12_spill] sm:$0xff] %v4762_v63 }
 0x15b   : > { %v4062_v19 = vpop.f32.mrb[45].mxu1  ;;  %v3974_v1 = vpop.f32.mrb[45].mxu0 }
 0x15c   : > { %v4063_v12 = vadd.f32 %v4062_v19, %v4061_v0  ;;  %v4064_v13 = vpop.f32.mrb[46].mxu1  ;;  %v3975_v14 = vadd.f32 %v3974_v1, %v3973_v35  ;;  %v3976_v26 = vpop.f32.mrb[46].mxu0 }
 0x15d   : > { %v4065_v44 = vpop.f32.mrb[47].mxu1  ;;  %v3977_v6 = vpop.f32.mrb[47].mxu0 }
 0x15e   : > { %v4066_v24 = vadd.f32 %v4065_v44, %v4064_v13  ;;  %v3978_v11 = vadd.f32 %v3977_v6, %v3976_v26  ;;  %v4716_v50 = vadd.f32 %v4063_v12, %v1191_v2  ;;  %v4765_v20 = vadd.f32 %v3975_v14, %v4660_v38 }
 0x160   : > { %v4718_v25 = vadd.f32 %v4066_v24, %v1194_v21  ;;  %5175 = vst [vmem:[#allocation13_spill] sm:$0xff] %v4765_v20 }
 0x162   : > { %v4067_v62 = vpop.f32.mrb[48].mxu1  ;;  %v4145_v61 = vpop.f32.mrb[48].mxu0 }
 0x163   : > { %v1465_v10 = vadd.f32 %v4145_v61, %v4670_v7  ;;  %v4068_v23 = vpop.f32.mrb[49].mxu1  ;;  %v1456_v16 = vpop.f32.mrb[49].mxu0 }
 0x164   : > { %v4069_v49 = vadd.f32 %v4068_v23, %v4067_v62  ;;  %v1457_v5 = vadd.f32 %v1456_v16, %v4664_v51  ;;  %v4070_v59 = vpop.f32.mrb[50].mxu1  ;;  %v4146_v53 = vpop.f32.mrb[50].mxu0  ;;  %v4772_v51 = vadd.f32 %v3978_v11, %v4660_v38 }
 0x165   : > { %v1585_v7 = vmax.f32 %v1465_v10, 0.0  ;;  %v1468_v57 = vadd.f32 %v4146_v53, %v4672_v8  ;;  %v4071_v58 = vpop.f32.mrb[51].mxu1  ;;  %v1459_v31 = vpop.f32.mrb[51].mxu0 }
 0x166   : > { %v1583_v60 = vmax.f32 %v1457_v5, 0.0  ;;  %v4072_v0 = vadd.f32 %v4071_v58, %v4070_v59  ;;  %v1460_v43 = vadd.f32 %v1459_v31, %v4666_v52  ;;  %v4769_v35 = vadd.f32 %v4069_v49, %v1199_v41  ;;  %5177 = vst [vmem:[#allocation15_spill] sm:$0xff] %v4772_v51 }
 0x167   : > { %v1681_v19 = vcombine.high %v1585_v7, %v1585_v7  ;;  %v1688_v54 = vrot.slane %v1585_v7, %v4728_v18  ;;  %v1586_v1 = vmax.f32 %v1468_v57, 0.0 }
 0x168   : > { %5176 = vst [vmem:[#allocation14_spill] sm:$0xff] %v4769_v35  ;;  %v1647_v2 = vcombine.high %v1583_v60, %v1583_v60  ;;  %v1654_v12 = vrot.slane %v1583_v60, %v4728_v18  ;;  %v4776_v13 = vmax.f32 %v1460_v43, 0.0  ;;  %v4778_v8 = vadd.f32 %v4072_v0, %v1202_v4 }
 0x169   : > { %v1695_v14 = vrot.slane %v1681_v19, %v4728_v18  ;;  %v1696_v26 = vcombine.high %v1688_v54, %v1688_v54  ;;  %v3640_v52 = vrot.slane %v1688_v54, 9  ;;  %v1698_v44 = vcombine.high %v1586_v1, %v1586_v1 }
 0x16a   : > { %5178 = vst [vmem:[#allocation16_spill] sm:$0xff] %v4778_v8  ;;  %v1661_v6 = vrot.slane %v1647_v2, %v4728_v18  ;;  %v1662_v38 = vcombine.high %v1654_v12, %v1654_v12  ;;  %v3632_v15 = vrot.slane %v1654_v12, 9  ;;  %v1705_v17 = vrot.slane %v1586_v1, %v4728_v18  ;;  %v4073_v21 = vpop.f32.mrb[52].mxu1  ;;  %v4149_v24 = vpop.f32.mrb[52].mxu0 }
 0x16b   : > { %v1697_v11 = vcombine.high %v1695_v14, %v1695_v14  ;;  %v3641_v62 = vrot.slane %v1696_v26, 9  ;;  %v3642_v61 = vrot.slane %v1695_v14, 9  ;;  %v2711_v41 = vmax.f32 %v1688_v54, %v3640_v52  ;;  %v4074_v10 = vpop.f32.mrb[53].mxu1  ;;  %v1472_v4 = vpop.f32.mrb[53].mxu0 }
 0x16c   : > { %v1663_v23 = vcombine.high %v1661_v6, %v1661_v6  ;;  %v3633_v16 = vrot.slane %v1662_v38, 9  ;;  %v3634_v49 = vrot.slane %v1661_v6, 9  ;;  %v2703_v5 = vmax.f32 %v1654_v12, %v3632_v15  ;;  %v4783_v59 = vpop.f32.mrb[54].mxu1  ;;  %v4785_v53 = vpop.f32.mrb[54].mxu0 }
 0x16d   : > { %v3643_v7 = vrot.slane %v1697_v11, 9  ;;  %v2712_v57 = vmax.f32 %v1696_v26, %v3641_v62  ;;  %v2713_v58 = vmax.f32 %v1695_v14, %v3642_v61  ;;  %v1712_v31 = vrot.slane %v1698_v44, %v4728_v18  ;;  %v4788_v60 = vpop.f32.mrb[55].mxu1  ;;  %v4790_v0 = vpop.f32.mrb[55].mxu0 }
 0x16e   : > { %v3635_v43 = vrot.slane %v1663_v23, 9  ;;  %v2704_v19 = vmax.f32 %v1662_v38, %v3633_v16  ;;  %v2705_v54 = vmax.f32 %v1661_v6, %v3634_v49  ;;  %v2831_v1 = vmax.f32 %v2703_v5, %v2711_v41 }
 0x16f   : > { %v2714_v2 = vmax.f32 %v1697_v11, %v3643_v7  ;;  %v1713_v12 = vcombine.high %v1705_v17, %v1705_v17  ;;  %v1714_v52 = vcombine.high %v1712_v31, %v1712_v31  ;;  %v3644_v15 = vrot.slane %v1705_v17, 9 }
 0x170   : > { %v2706_v56 = vmax.f32 %v1663_v23, %v3635_v43  ;;  %v2832_v26 = vmax.f32 %v2704_v19, %v2712_v57  ;;  %v2833_v14 = vmax.f32 %v2705_v54, %v2713_v58  ;;  %v3827_v62 = vpack.c.bf16 %v2831_v1, %v2831_v1 }
 0x171   : > { %v3645_v61 = vrot.slane %v1713_v12, 9  ;;  %v3646_v44 = vrot.slane %v1712_v31, 9  ;;  %v3647_v39 = vrot.slane %v1714_v52, 9  ;;  %v2715_v36 = vmax.f32 %v1705_v17, %v3644_v15 }
 0x172   : > { %v2834_v34 = vmax.f32 %v2706_v56, %v2714_v2  ;;  %v3828_v28 = vpack.c.bf16 %v2832_v26, %v2832_v26  ;;  %v3829_v46 = vpack.c.bf16 %v2833_v14, %v2833_v14  ;;  %v3151_v38 = vunpack.c.l.b16 %v3827_v62  ;;  %v4792_v6 = vpop.f32.mrb[56].mxu1  ;;  %v4794_v41 = vpop.f32.mrb[56].mxu0 }
 0x173   : > { %v2716_v11 = vmax.f32 %v1713_v12, %v3645_v61  ;;  %v2717_v16 = vmax.f32 %v1712_v31, %v3646_v44  ;;  %v2718_v49 = vmax.f32 %v1714_v52, %v3647_v39  ;;  %v1664_v23 = vcombine.high %v4776_v13, %v4776_v13  ;;  %v4798_v5 = vpop.f32.mrb[57].mxu1  ;;  %v4800_v7 = vpop.f32.mrb[57].mxu0 }
 0x174   : > { %v3830_v57 = vpack.c.bf16 %v2834_v34, %v2834_v34  ;;  %v3152_v17 = vunpack.c.l.b16 %v3828_v28  ;;  %v3153_v56 = vunpack.c.l.b16 %v3829_v46  ;;  %v1671_v58 = vrot.slane %v4776_v13, %v4728_v18  ;;  %v4804_v43 = vpop.f32.mrb[58].mxu1  ;;  %v4806_v19 = vpop.f32.mrb[58].mxu0 }
 0x175   : > { %v1678_v31 = vrot.slane %v1664_v23, %v4728_v18  ;;  %v1481_v39 = vadd.f32 %v4149_v24, %v4686_v47  ;;  %v4810_v54 = vadd.f32 %v4074_v10, %v4073_v21  ;;  %v1473_v1 = vadd.f32 %v1472_v4, %v4676_v27  ;;  %v4813_v2 = vpop.f32.mrb[59].mxu1  ;;  %v4815_v34 = vpop.f32.mrb[59].mxu0 }
 0x176   : > { %v3154_v28 = vunpack.c.l.b16 %v3830_v57  ;;  %v3215_v46 = vrot.slane %v3152_v17, 7  ;;  %v3218_v12 = vrot.slane %v3153_v56, 6  ;;  %v1679_v13 = vcombine.high %v1671_v58, %v1671_v58 }
 0x177   : > { %v1680_v52 = vcombine.high %v1678_v31, %v1678_v31  ;;  %v3636_v15 = vrot.slane %v1671_v58, 9  ;;  %v3638_v26 = vrot.slane %v1678_v31, 9  ;;  %v1589_v14 = vmax.f32 %v1481_v39, 0.0 }
 0x178   : > { %v3217_v62 = vsel %vm3216_vm1, %v3215_v46, %v3151_v38  ;;  %v3221_v61 = vrot.slane %v3154_v28, 5  ;;  %v3637_v47 = vrot.slane %v1679_v13, 9  ;;  %v1587_v21 = vmax.f32 %v1473_v1, 0.0 }
 0x179   : > { %v3220_v27 = vsel %vm3219_vm2, %v3218_v12, %v3217_v62  ;;  %v3639_v24 = vrot.slane %v1680_v52, 9  ;;  %v2707_v10 = vmax.f32 %v1671_v58, %v3636_v15  ;;  %v2709_v4 = vmax.f32 %v1678_v31, %v3638_v26 }
 0x17a   : > { %v2708_v44 = vmax.f32 %v1679_v13, %v3637_v47  ;;  %v3223_v23 = vsel %vm3222_vm3, %v3221_v61, %v3220_v27  ;;  %v1749_v57 = vcombine.high %v1589_v14, %v1589_v14  ;;  %v1756_v17 = vrot.slane %v1589_v14, %v4728_v18  ;;  %v4821_v56 = vpop.f32.mrb[60].mxu1  ;;  %v4823_v38 = vpop.f32.mrb[60].mxu0 }
 0x17b   : > { %v2710_v39 = vmax.f32 %v1680_v52, %v3639_v24  ;;  %v2835_v28 = vmax.f32 %v2707_v10, %v2715_v36  ;;  %v2837_v1 = vmax.f32 %v2709_v4, %v2717_v16  ;;  %v1715_v46 = vcombine.high %v1587_v21, %v1587_v21  ;;  %v4825_v12 = vpop.f32.mrb[61].mxu1  ;;  %v4827_v58 = vpop.f32.mrb[61].mxu0 }
 0x17c   : > { %v2836_v31 = vmax.f32 %v2708_v44, %v2716_v11  ;;  %v1763_v13 = vrot.slane %v1749_v57, %v4728_v18  ;;  %v1764_v15 = vcombine.high %v1756_v17, %v1756_v17  ;;  %v3656_v26 = vrot.slane %v1756_v17, 9  ;;  %v4830_v62 = vpop.f32.mrb[62].mxu1  ;;  %v4832_v14 = vpop.f32.mrb[62].mxu0 }
 0x17d   : > { %v2838_v61 = vmax.f32 %v2710_v39, %v2718_v49  ;;  %v3831_v47 = vpack.c.bf16 %v2835_v28, %v2835_v28  ;;  %v3833_v52 = vpack.c.bf16 %v2837_v1, %v2837_v1  ;;  %v1722_v36 = vrot.slane %v1587_v21, %v4728_v18  ;;  %v4835_v16 = vpop.f32.mrb[63].mxu1  ;;  %v4837_v27 = vpop.f32.mrb[63].mxu0 }
 0x17e   : > { %v3832_v24 = vpack.c.bf16 %v2836_v31, %v2836_v31  ;;  %v1765_v11 = vcombine.high %v1763_v13, %v1763_v13  ;;  %v3657_v10 = vrot.slane %v1764_v15, 9  ;;  %v3658_v4 = vrot.slane %v1763_v13, 9 }
 0x17f   : > { %v3834_v44 = vpack.c.bf16 %v2838_v61, %v2838_v61  ;;  %v3155_v57 = vunpack.c.l.b16 %v3831_v47  ;;  %v3157_v40 = vunpack.c.l.b16 %v3833_v52  ;;  %v2727_v37 = vmax.f32 %v1756_v17, %v3656_v26 }
 0x180   : > { %v3156_v63 = vunpack.c.l.b16 %v3832_v24  ;;  %v3659_v49 = vrot.slane %v1765_v11, 9  ;;  %v2728_v39 = vmax.f32 %v1764_v15, %v3657_v10  ;;  %v2729_v28 = vmax.f32 %v1763_v13, %v3658_v4 }
 0x181   : > { %v3158_v1 = vunpack.c.l.b16 %v3834_v44  ;;  %v3224_v21 = vrot.slane %v3155_v57, 4  ;;  %v3230_v51 = vrot.slane %v3157_v40, 2  ;;  %v1729_v22 = vrot.slane %v1715_v46, %v4728_v18 }
 0x182   : > { %v3227_v20 = vrot.slane %v3156_v63, 3  ;;  %v2730_v31 = vmax.f32 %v1765_v11, %v3659_v49  ;;  %v1730_v8 = vcombine.high %v1722_v36, %v1722_v36  ;;  %v3648_v45 = vrot.slane %v1722_v36, 9  ;;  %v4840_v35 = vpop.f32.mrb[64].mxu1  ;;  %v4842_v61 = vpop.f32.mrb[64].mxu0 }
 0x183   : > { %v3226_v17 = vsel %vm3225_vm4, %v3224_v21, %v3223_v23  ;;  %v3233_v26 = vrot.slane %v3158_v1, 1  ;;  %v1731_v47 = vcombine.high %v1729_v22, %v1729_v22  ;;  %v3650_v15 = vrot.slane %v1729_v22, 9  ;;  %v4846_v13 = vpop.f32.mrb[65].mxu1  ;;  %v4848_v52 = vpop.f32.mrb[65].mxu0 }
 0x184   : > { %v3229_v40 = vsel %vm3228_vm5, %v3227_v20, %v3226_v17  ;;  %v3649_v63 = vrot.slane %v1730_v8, 9  ;;  %v2719_v46 = vmax.f32 %v1722_v36, %v3648_v45  ;;  %v1484_v24 = vadd.f32 %v4785_v53, %v4688_v48  ;;  %v4853_v11 = vpop.f32.mrb[66].mxu1  ;;  %v4855_v10 = vpop.f32.mrb[66].mxu0 }
 0x185   : > { %5179 = vst [vmem:[#allocation17_spill] sm:$0xff] %v4855_v10  ;;  %v3232_v23 = vsel %vm3231_vm6, %v3230_v51, %v3229_v40  ;;  %v3651_v4 = vrot.slane %v1731_v47, 9  ;;  %v2721_v44 = vmax.f32 %v1729_v22, %v3650_v15  ;;  %v4860_v57 = vadd.f32 %v4788_v60, %v4783_v59  ;;  %v4862_v49 = vpop.f32.mrb[67].mxu1  ;;  %v4864_v20 = vpop.f32.mrb[67].mxu0 }
 0x186   : > { %5180 = vst [vmem:[#allocation18_spill] sm:$0xff] %v4864_v20  ;;  %v3235_v48 = vsel %vm3234_vm7, %v3233_v26, %v3232_v23  ;;  %v2720_v45 = vmax.f32 %v1730_v8, %v3649_v63  ;;  %v2839_v51 = vmax.f32 %v2719_v46, %v2727_v37  ;;  %v1590_v53 = vmax.f32 %v1484_v24, 0.0 }
 0x187   : > { %v3334_v22 = vpack.c.b16 %v3235_v48, %v3235_v48  ;;  %v2722_v36 = vmax.f32 %v1731_v47, %v3651_v4  ;;  %v2841_v1 = vmax.f32 %v2721_v44, %v2729_v28  ;;  %v1476_v59 = vadd.f32 %v4790_v0, %v4678_v29 }
 0x188   : > { %v2840_v60 = vmax.f32 %v2720_v45, %v2728_v39  ;;  %v3835_v21 = vpack.c.bf16 %v2839_v51, %v2839_v51  ;;  %v1766_v17 = vcombine.high %v1590_v53, %v1590_v53  ;;  %v1773_v15 = vrot.slane %v1590_v53, %v4728_v18 }
 0x189   : > { %3351 = vst.msk [vmem:[%s4869_s28] sm:$0xf] %vm3350_vm8, %v3334_v22  ;;  %v2842_v40 = vmax.f32 %v2722_v36, %v2730_v31  ;;  %v3837_v20 = vpack.c.bf16 %v2841_v1, %v2841_v1  ;;  %v1588_v10 = vmax.f32 %v1476_v59, 0.0  ;;  %v1497_v37 = vadd.f32 %v4794_v41, %v4702_v32 }
 0x18a   : > { %v3836_v8 = vpack.c.bf16 %v2840_v60, %v2840_v60  ;;  %v3159_v26 = vunpack.c.l.b16 %v3835_v21  ;;  %v1780_v28 = vrot.slane %v1766_v17, %v4728_v18  ;;  %v1781_v47 = vcombine.high %v1773_v15, %v1773_v15  ;;  %v4880_v63 = vpop.f32.mrb[68].mxu1  ;;  %v4882_v29 = vpop.f32.mrb[68].mxu0 }
 0x18b   : > { %v3838_v0 = vpack.c.bf16 %v2842_v40, %v2842_v40  ;;  %v3161_v39 = vunpack.c.l.b16 %v3837_v20  ;;  %v3660_v46 = vrot.slane %v1773_v15, 9  ;;  %v1732_v24 = vcombine.high %v1588_v10, %v1588_v10  ;;  %v4884_v23 = vpop.f32.mrb[69].mxu1  ;;  %v4886_v31 = vpop.f32.mrb[69].mxu0 }
 0x18c   : > { %5181 = vst [vmem:[#allocation19_spill] sm:$0xff] %v4886_v31  ;;  %v3160_v4 = vunpack.c.l.b16 %v3836_v8  ;;  %v1782_v44 = vcombine.high %v1780_v28, %v1780_v28  ;;  %v3661_v32 = vrot.slane %v1781_v47, 9  ;;  %v3662_v41 = vrot.slane %v1780_v28, 9  ;;  %v4888_v48 = vpop.f32.mrb[70].mxu1  ;;  %v4890_v45 = vpop.f32.mrb[70].mxu0 }
 0x18d   : > { %5182 = vst [vmem:[#allocation20_spill] sm:$0xff] %v4888_v48  ;;  %5183 = vst [vmem:[#allocation21_spill] sm:$0xff] %v4890_v45  ;;  %v3162_v51 = vunpack.c.l.b16 %v3838_v0  ;;  %v3238_v53 = vrot.slane %v3161_v39, 6  ;;  %v2731_v22 = vmax.f32 %v1773_v15, %v3660_v46  ;;  %v1739_v36 = vrot.slane %v1588_v10, %v4728_v18  ;;  %v4893_v20 = vpop.f32.mrb[71].mxu1  ;;  %v4895_v1 = vpop.f32.mrb[71].mxu0 }
 0x18e   : > { %5184 = vst [vmem:[#allocation22_spill] sm:$0xff] %v4893_v20  ;;  %5185 = vst [vmem:[#allocation23_spill] sm:$0xff] %v4895_v1  ;;  %v3236_v59 = vrot.slane %v3160_v4, 7  ;;  %v3663_v60 = vrot.slane %v1782_v44, 9  ;;  %v2732_v21 = vmax.f32 %v1781_v47, %v3661_v32  ;;  %v2733_v17 = vmax.f32 %v1780_v28, %v3662_v41 }
 0x18f   : > { %v3240_v40 = vrot.slane %v3162_v51, 5  ;;  %v1746_v8 = vrot.slane %v1732_v24, %v4728_v18  ;;  %v1747_v31 = vcombine.high %v1739_v36, %v1739_v36  ;;  %v3652_v48 = vrot.slane %v1739_v36, 9 }
 0x190   : > { %v3237_v45 = vsel %vm3216_vm1, %v3236_v59, %v3159_v26  ;;  %v2734_v0 = vmax.f32 %v1782_v44, %v3663_v60  ;;  %v1593_v39 = vmax.f32 %v1497_v37, 0.0  ;;  %v4901_v10 = vadd.f32 %v4798_v5, %v4792_v6 }
 0x191   : > { %v3239_v15 = vsel %vm3219_vm2, %v3238_v53, %v3237_v45  ;;  %v1748_v46 = vcombine.high %v1746_v8, %v1746_v8  ;;  %v3653_v4 = vrot.slane %v1747_v31, 9  ;;  %v3654_v1 = vrot.slane %v1746_v8, 9 }
 0x192   : > { %v2723_v47 = vmax.f32 %v1739_v36, %v3652_v48  ;;  %v3241_v28 = vsel %vm3222_vm3, %v3240_v40, %v3239_v15  ;;  %v1817_v32 = vcombine.high %v1593_v39, %v1593_v39  ;;  %v1824_v24 = vrot.slane %v1593_v39, %v4728_v18  ;;  %v4906_v41 = vpop.f32.mrb[72].mxu1  ;;  %v4908_v26 = vpop.f32.mrb[72].mxu0 }
 0x193   : > { %5186 = vst [vmem:[#allocation24_spill] sm:$0xff] %v4906_v41  ;;  %5187 = vst [vmem:[#allocation25_spill] sm:$0xff] %v4908_v26  ;;  %v3655_v37 = vrot.slane %v1748_v46, 9  ;;  %v2724_v44 = vmax.f32 %v1747_v31, %v3653_v4  ;;  %v2725_v51 = vmax.f32 %v1746_v8, %v3654_v1  ;;  %v1489_v6 = vadd.f32 %v4800_v7, %v4696_v3  ;;  %v4912_v5 = vpop.f32.mrb[73].mxu1  ;;  %v4914_v45 = vpop.f32.mrb[73].mxu0 }
 0x194   : > { %5188 = vst [vmem:[#allocation26_spill] sm:$0xff] %v4912_v5  ;;  %5189 = vst [vmem:[#allocation27_spill] sm:$0xff] %v4914_v45  ;;  %v2843_v48 = vmax.f32 %v2723_v47, %v2731_v22  ;;  %v1831_v53 = vrot.slane %v1817_v32, %v4728_v18  ;;  %v1832_v36 = vcombine.high %v1824_v24, %v1824_v24  ;;  %v3672_v59 = vrot.slane %v1824_v24, 9  ;;  %v4917_v60 = vpop.f32.mrb[74].mxu1  ;;  %v4919_v40 = vpop.f32.mrb[74].mxu0 }
 0x195   : > { %5190 = vst [vmem:[#allocation28_spill] sm:$0xff] %v4917_v60  ;;  %5191 = vst [vmem:[#allocation29_spill] sm:$0xff] %v4919_v40  ;;  %v2726_v39 = vmax.f32 %v1748_v46, %v3655_v37  ;;  %v2844_v15 = vmax.f32 %v2724_v44, %v2732_v21  ;;  %v2845_v31 = vmax.f32 %v2725_v51, %v2733_v17  ;;  %v1591_v1 = vmax.f32 %v1489_v6, 0.0  ;;  %v4921_v8 = vpop.f32.mrb[75].mxu1  ;;  %v4923_v3 = vpop.f32.mrb[75].mxu0 }
 0x196   : > { %5192 = vst [vmem:[#allocation30_spill] sm:$0xff] %v4923_v3  ;;  %v3839_v7 = vpack.c.bf16 %v2843_v48, %v2843_v48  ;;  %v1833_v4 = vcombine.high %v1831_v53, %v1831_v53  ;;  %v3673_v45 = vrot.slane %v1832_v36, 9  ;;  %v3674_v22 = vrot.slane %v1831_v53, 9 }
 0x197   : > { %v2846_v47 = vmax.f32 %v2726_v39, %v2734_v0  ;;  %v3840_v32 = vpack.c.bf16 %v2844_v15, %v2844_v15  ;;  %v3841_v26 = vpack.c.bf16 %v2845_v31, %v2845_v31  ;;  %v2743_v5 = vmax.f32 %v1824_v24, %v3672_v59 }
 0x198   : > { %v3163_v41 = vunpack.c.l.b16 %v3839_v7  ;;  %v3675_v60 = vrot.slane %v1833_v4, 9  ;;  %v2744_v20 = vmax.f32 %v1832_v36, %v3673_v45  ;;  %v2745_v40 = vmax.f32 %v1831_v53, %v3674_v22 }
 0x199   : > { %v3842_v46 = vpack.c.bf16 %v2846_v47, %v2846_v47  ;;  %v3164_v21 = vunpack.c.l.b16 %v3840_v32  ;;  %v3165_v17 = vunpack.c.l.b16 %v3841_v26  ;;  %v1783_v37 = vcombine.high %v1591_v1, %v1591_v1 }
 0x19a   : > { %v3242_v44 = vrot.slane %v3163_v41, 4  ;;  %v2746_v51 = vmax.f32 %v1833_v4, %v3675_v60  ;;  %v1790_v6 = vrot.slane %v1591_v1, %v4728_v18  ;;  %v1500_v48 = vadd.f32 %v4806_v19, %v4704_v33  ;;  %v4934_v47 = vpop.f32.mrb[76].mxu1  ;;  %v4936_v32 = vpop.f32.mrb[76].mxu0 }
 0x19b   : > { %v3166_v3 = vunpack.c.l.b16 %v3842_v46  ;;  %v3244_v0 = vrot.slane %v3164_v21, 3  ;;  %v3246_v39 = vrot.slane %v3165_v17, 2  ;;  %v1797_v24 = vrot.slane %v1783_v37, %v4728_v18  ;;  %5193 = vst [vmem:[#allocation31_spill] sm:$0xff] %v4936_v32  ;;  %v4939_v37 = vpop.f32.mrb[77].mxu1 }
 0x19c   : > { %v3243_v59 = vsel %vm3225_vm4, %v3242_v44, %v3241_v28  ;;  %v1798_v45 = vcombine.high %v1790_v6, %v1790_v6  ;;  %v3664_v53 = vrot.slane %v1790_v6, 9  ;;  %v1594_v36 = vmax.f32 %v1500_v48, 0.0  ;;  %v4941_v44 = vpop.f32.mrb[77].mxu0 }
 0x19d   : > { %v3245_v26 = vsel %vm3228_vm5, %v3244_v0, %v3243_v59  ;;  %v3248_v15 = vrot.slane %v3166_v3, 1  ;;  %v1799_v41 = vcombine.high %v1797_v24, %v1797_v24  ;;  %v3666_v60 = vrot.slane %v1797_v24, 9  ;;  %5194 = vst [vmem:[#allocation32_spill] sm:$0xff] %v4941_v44  ;;  %v4945_v59 = vpop.f32.mrb[78].mxu0 }
 0x19e   : > { %v3247_v31 = vsel %vm3231_vm6, %v3246_v39, %v3245_v26  ;;  %v3665_v1 = vrot.slane %v1798_v45, 9  ;;  %v2735_v7 = vmax.f32 %v1790_v6, %v3664_v53  ;;  %v1834_v33 = vcombine.high %v1594_v36, %v1594_v36  ;;  %5195 = vst [vmem:[#allocation33_spill] sm:$0xff] %v4945_v59 }
 0x19f   : > { %v3249_v19 = vsel %vm3234_vm7, %v3248_v15, %v3247_v31  ;;  %v3667_v4 = vrot.slane %v1799_v41, 9  ;;  %v2737_v22 = vmax.f32 %v1797_v24, %v3666_v60  ;;  %v1841_v28 = vrot.slane %v1594_v36, %v4728_v18  ;;  %v4943_v24 = vpop.f32.mrb[78].mxu1  ;;  %v4951_v15 = vpop.f32.mrb[79].mxu0 }
 0x1a0   : > { %v3335_v46 = vpack.c.b16 %v3249_v19, %v3249_v19  ;;  %v2736_v3 = vmax.f32 %v1798_v45, %v3665_v1  ;;  %v2847_v21 = vmax.f32 %v2735_v7, %v2743_v5  ;;  %v1848_v17 = vrot.slane %v1834_v33, %v4728_v18  ;;  %v4949_v26 = vpop.f32.mrb[79].mxu1  ;;  %5196 = vst [vmem:[#allocation34_spill] sm:$0xff] %v4951_v15 }
 0x1a1   : > { %v2738_v6 = vmax.f32 %v1799_v41, %v3667_v4  ;;  %v2849_v48 = vmax.f32 %v2737_v22, %v2745_v40  ;;  %v1849_v0 = vcombine.high %v1841_v28, %v1841_v28  ;;  %v3676_v39 = vrot.slane %v1841_v28, 9 }
 0x1a2   : > { %3352 = vst.msk [vmem:[%s4869_s28 + $0x4] sm:$0xf] %vm3350_vm8, %v3335_v46  ;;  %v2848_v53 = vmax.f32 %v2736_v3, %v2744_v20  ;;  %v3843_v36 = vpack.c.bf16 %v2847_v21, %v2847_v21  ;;  %v1850_v45 = vcombine.high %v1848_v17, %v1848_v17  ;;  %v3678_v5 = vrot.slane %v1848_v17, 9 }
 0x1a3   : > { %v2850_v60 = vmax.f32 %v2738_v6, %v2746_v51  ;;  %v3845_v31 = vpack.c.bf16 %v2849_v48, %v2849_v48  ;;  %v3677_v41 = vrot.slane %v1849_v0, 9  ;;  %v2747_v40 = vmax.f32 %v1841_v28, %v3676_v39 }
 0x1a4   : > { %v3844_v1 = vpack.c.bf16 %v2848_v53, %v2848_v53  ;;  %v3167_v7 = vunpack.c.l.b16 %v3843_v36  ;;  %v3679_v33 = vrot.slane %v1850_v45, 9  ;;  %v2749_v19 = vmax.f32 %v1848_v17, %v3678_v5 }
 0x1a5   : > { %v3846_v4 = vpack.c.bf16 %v2850_v60, %v2850_v60  ;;  %v3169_v22 = vunpack.c.l.b16 %v3845_v31  ;;  %v2748_v59 = vmax.f32 %v1849_v0, %v3677_v41  ;;  %v4955_v20 = vadd.f32 %v4813_v2, %v4804_v43 }
 0x1a6   : > { %v3168_v46 = vunpack.c.l.b16 %v3844_v1  ;;  %v2750_v3 = vmax.f32 %v1850_v45, %v3679_v33  ;;  %v1492_v21 = vadd.f32 %v4815_v34, %v4698_v9  ;;  %v1513_v51 = vadd.f32 %v4823_v38, %v4716_v50 }
 0x1a7   : > { %v3170_v28 = vunpack.c.l.b16 %v3846_v4  ;;  %v3252_v6 = vrot.slane %v3169_v22, 6  ;;  %v4963_v17 = vadd.f32 %v4825_v12, %v4821_v56  ;;  %v1505_v48 = vadd.f32 %v4827_v58, %v4708_v30 }
 0x1a8   : > { %v3250_v0 = vrot.slane %v3168_v46, 7  ;;  %v1592_v43 = vmax.f32 %v1492_v21, 0.0  ;;  %v1597_v2 = vmax.f32 %v1513_v51, 0.0  ;;  %v4969_v39 = vadd.f32 %v4832_v14, %v4718_v25 }
 0x1a9   : > { %v3254_v9 = vrot.slane %v3170_v28, 5  ;;  %v1595_v34 = vmax.f32 %v1505_v48, 0.0  ;;  %v4973_v50 = vadd.f32 %v4835_v16, %v4830_v62  ;;  %v4977_v56 = vadd.f32 %v4837_v27, %v4710_v55 }
 0x1aa   : > { %v3251_v38 = vsel %vm3216_vm1, %v3250_v0, %v3167_v7  ;;  %v1800_v30 = vcombine.high %v1592_v43, %v1592_v43  ;;  %v1807_v12 = vrot.slane %v1592_v43, %v4728_v18  ;;  %v1885_v58 = vcombine.high %v1597_v2, %v1597_v2 }
 0x1ab   : > { %v3253_v53 = vsel %vm3219_vm2, %v3252_v6, %v3251_v38  ;;  %v1892_v25 = vrot.slane %v1597_v2, %v4728_v18  ;;  %v1851_v14 = vcombine.high %v1595_v34, %v1595_v34  ;;  %v1858_v36 = vrot.slane %v1595_v34, %v4728_v18 }
 0x1ac   : > { %v1814_v62 = vrot.slane %v1800_v30, %v4728_v18  ;;  %v1815_v16 = vcombine.high %v1807_v12, %v1807_v12  ;;  %v3668_v45 = vrot.slane %v1807_v12, 9  ;;  %v3255_v55 = vsel %vm3222_vm3, %v3254_v9, %v3253_v53 }
 0x1ad   : > { %v1899_v27 = vrot.slane %v1885_v58, %v4728_v18  ;;  %v1900_v5 = vcombine.high %v1892_v25, %v1892_v25  ;;  %v3688_v60 = vrot.slane %v1892_v25, 9  ;;  %v1865_v31 = vrot.slane %v1851_v14, %v4728_v18 }
 0x1ae   : > { %v1816_v41 = vcombine.high %v1814_v62, %v1814_v62  ;;  %v3669_v1 = vrot.slane %v1815_v16, 9  ;;  %v3670_v7 = vrot.slane %v1814_v62, 9  ;;  %v2739_v33 = vmax.f32 %v1807_v12, %v3668_v45 }
 0x1af   : > { %v1901_v4 = vcombine.high %v1899_v27, %v1899_v27  ;;  %v3689_v22 = vrot.slane %v1900_v5, 9  ;;  %v3690_v46 = vrot.slane %v1899_v27, 9  ;;  %v2759_v21 = vmax.f32 %v1892_v25, %v3688_v60 }
 0x1b0   : > { %v3671_v51 = vrot.slane %v1816_v41, 9  ;;  %v2740_v28 = vmax.f32 %v1815_v16, %v3669_v1  ;;  %v2741_v6 = vmax.f32 %v1814_v62, %v3670_v7  ;;  %v2851_v48 = vmax.f32 %v2739_v33, %v2747_v40 }
 0x1b1   : > { %v3691_v0 = vrot.slane %v1901_v4, 9  ;;  %v2760_v43 = vmax.f32 %v1900_v5, %v3689_v22  ;;  %v2761_v2 = vmax.f32 %v1899_v27, %v3690_v46  ;;  %v1866_v9 = vcombine.high %v1858_v36, %v1858_v36 }
 0x1b2   : > { %v2742_v34 = vmax.f32 %v1816_v41, %v3671_v51  ;;  %v2852_v38 = vmax.f32 %v2740_v28, %v2748_v59  ;;  %v2853_v30 = vmax.f32 %v2741_v6, %v2749_v19  ;;  %v3847_v58 = vpack.c.bf16 %v2851_v48, %v2851_v48 }
 0x1b3   : > { %v2762_v53 = vmax.f32 %v1901_v4, %v3691_v0  ;;  %v1867_v14 = vcombine.high %v1865_v31, %v1865_v31  ;;  %v3680_v15 = vrot.slane %v1858_v36, 9  ;;  %v3681_v12 = vrot.slane %v1866_v9, 9 }
 0x1b4   : > { %v2854_v45 = vmax.f32 %v2742_v34, %v2750_v3  ;;  %v3848_v32 = vpack.c.bf16 %v2852_v38, %v2852_v38  ;;  %v3849_v44 = vpack.c.bf16 %v2853_v30, %v2853_v30  ;;  %v3171_v25 = vunpack.c.l.b16 %v3847_v58 }
 0x1b5   : > { %v3682_v60 = vrot.slane %v1865_v31, 9  ;;  %v3683_v16 = vrot.slane %v1867_v14, 9  ;;  %v2751_v62 = vmax.f32 %v1858_v36, %v3680_v15  ;;  %v2752_v40 = vmax.f32 %v1866_v9, %v3681_v12 }
 0x1b6   : > { %v3850_v1 = vpack.c.bf16 %v2854_v45, %v2854_v45  ;;  %v3172_v5 = vunpack.c.l.b16 %v3848_v32  ;;  %v3173_v27 = vunpack.c.l.b16 %v3849_v44  ;;  %v3256_v7 = vrot.slane %v3171_v25, 4 }
 0x1b7   : > { %v2753_v41 = vmax.f32 %v1865_v31, %v3682_v60  ;;  %v2754_v59 = vmax.f32 %v1867_v14, %v3683_v16  ;;  %v2855_v19 = vmax.f32 %v2751_v62, %v2759_v21  ;;  %v2856_v33 = vmax.f32 %v2752_v40, %v2760_v43 }
 0x1b8   : > { %v3174_v4 = vunpack.c.l.b16 %v3850_v1  ;;  %v3257_v22 = vsel %vm3225_vm4, %v3256_v7, %v3255_v55  ;;  %v3258_v46 = vrot.slane %v3172_v5, 3  ;;  %v3260_v3 = vrot.slane %v3173_v27, 2 }
 0x1b9   : > { %v2857_v51 = vmax.f32 %v2753_v41, %v2761_v2  ;;  %v2858_v28 = vmax.f32 %v2754_v59, %v2762_v53  ;;  %v3851_v6 = vpack.c.bf16 %v2855_v19, %v2855_v19  ;;  %v3852_v48 = vpack.c.bf16 %v2856_v33, %v2856_v33 }
 0x1ba   : > { %v3259_v15 = vsel %vm3228_vm5, %v3258_v46, %v3257_v22  ;;  %v3262_v36 = vrot.slane %v3174_v4, 1  ;;  %v1598_v32 = vmax.f32 %v4969_v39, 0.0  ;;  %v1596_v44 = vmax.f32 %v4977_v56, 0.0 }
 0x1bb   : > { %v3261_v31 = vsel %vm3231_vm6, %v3260_v3, %v3259_v15  ;;  %v3853_v21 = vpack.c.bf16 %v2857_v51, %v2857_v51  ;;  %v3854_v0 = vpack.c.bf16 %v2858_v28, %v2858_v28  ;;  %v3175_v43 = vunpack.c.l.b16 %v3851_v6 }
 0x1bc   : > { %v3263_v55 = vsel %vm3234_vm7, %v3262_v36, %v3261_v31  ;;  %v3176_v9 = vunpack.c.l.b16 %v3852_v48  ;;  %v1902_v2 = vcombine.high %v1598_v32, %v1598_v32  ;;  %v1909_v34 = vrot.slane %v1598_v32, %v4728_v18 }
 0x1bd   : > { %v3336_v38 = vpack.c.b16 %v3263_v55, %v3263_v55  ;;  %v3177_v30 = vunpack.c.l.b16 %v3853_v21  ;;  %v3178_v58 = vunpack.c.l.b16 %v3854_v0  ;;  %v1868_v53 = vcombine.high %v1596_v44, %v1596_v44  ;;  %v5197_v21 = vld [vmem:[#allocation14_spill] sm:$0xff] }
 0x1be   : > { %v3264_v14 = vrot.slane %v3176_v9, 7  ;;  %v1916_v39 = vrot.slane %v1902_v2, %v4728_v18  ;;  %v1917_v56 = vcombine.high %v1909_v34, %v1909_v34  ;;  %v3692_v12 = vrot.slane %v1909_v34, 9  ;;  %v5198_v9 = vld [vmem:[#allocation10_spill] sm:$0xff] }
 0x1bf   : > { %3353 = vst.msk [vmem:[%s4869_s28 + $0x8] sm:$0xf] %vm3350_vm8, %v3336_v38  ;;  %v3266_v45 = vrot.slane %v3177_v30, 6  ;;  %v3268_v25 = vrot.slane %v3178_v58, 5  ;;  %v1875_v60 = vrot.slane %v1596_v44, %v4728_v18  ;;  %v1882_v16 = vrot.slane %v1868_v53, %v4728_v18  ;;  %v5199_v58 = vld [vmem:[#allocation17_spill] sm:$0xff] }
 0x1c0   : > { %v3265_v62 = vsel %vm3216_vm1, %v3264_v14, %v3175_v43  ;;  %v1918_v40 = vcombine.high %v1916_v39, %v1916_v39  ;;  %v3693_v1 = vrot.slane %v1917_v56, 9  ;;  %v3694_v5 = vrot.slane %v1916_v39, 9  ;;  %v5200_v14 = vld [vmem:[#allocation16_spill] sm:$0xff] }
 0x1c1   : > { %v3267_v27 = vsel %vm3219_vm2, %v3266_v45, %v3265_v62  ;;  %v2763_v7 = vmax.f32 %v1909_v34, %v3692_v12  ;;  %v1883_v41 = vcombine.high %v1875_v60, %v1875_v60  ;;  %v1884_v59 = vcombine.high %v1882_v16, %v1882_v16 }
 0x1c2   : > { %v3695_v19 = vrot.slane %v1918_v40, 9  ;;  %v2764_v33 = vmax.f32 %v1917_v56, %v3693_v1  ;;  %v2765_v4 = vmax.f32 %v1916_v39, %v3694_v5  ;;  %v3684_v22 = vrot.slane %v1875_v60, 9 }
 0x1c3   : > { %v3685_v46 = vrot.slane %v1883_v41, 9  ;;  %v3686_v3 = vrot.slane %v1882_v16, 9  ;;  %v3687_v51 = vrot.slane %v1884_v59, 9  ;;  %v3269_v28 = vsel %vm3222_vm3, %v3268_v25, %v3267_v27 }
 0x1c4   : > { %v2766_v6 = vmax.f32 %v1918_v40, %v3695_v19  ;;  %v2755_v48 = vmax.f32 %v1875_v60, %v3684_v22  ;;  %v1368_v15 = vadd.f32 %v4810_v54, %v4751_v42  ;;  %v5007_v36 = vadd.f32 %v4846_v13, %v4840_v35 }
 0x1c5   : > { %v2756_v32 = vmax.f32 %v1883_v41, %v3685_v46  ;;  %v2757_v44 = vmax.f32 %v1882_v16, %v3686_v3  ;;  %v2758_v31 = vmax.f32 %v1884_v59, %v3687_v51  ;;  %v1521_v0 = vadd.f32 %v4848_v52, %v5197_v21  ;;  %v5201_v52 = vld [vmem:[#allocation18_spill] sm:$0xff] }
 0x1c6   : > { %v2859_v43 = vmax.f32 %v2755_v48, %v2763_v7  ;;  %v1529_v55 = vadd.f32 %v4842_v61, %v1368_v15  ;;  %v1371_v2 = vadd.f32 %v4860_v57, %v5198_v9  ;;  %v5016_v34 = vadd.f32 %v4862_v49, %v4853_v11 }
 0x1c7   : > { %v2860_v42 = vmax.f32 %v2756_v32, %v2764_v33  ;;  %v2861_v54 = vmax.f32 %v2757_v44, %v2765_v4  ;;  %v2862_v35 = vmax.f32 %v2758_v31, %v2766_v6  ;;  %v1599_v13 = vmax.f32 %v1521_v0, 0.0 }
 0x1c8   : > { %v3855_v38 = vpack.c.bf16 %v2859_v43, %v2859_v43  ;;  %v1601_v30 = vmax.f32 %v1529_v55, 0.0  ;;  %v1532_v53 = vadd.f32 %v5199_v58, %v1371_v2  ;;  %v1524_v39 = vadd.f32 %v5201_v52, %v5200_v14 }
 0x1c9   : > { %v3856_v56 = vpack.c.bf16 %v2860_v42, %v2860_v42  ;;  %v3857_v61 = vpack.c.bf16 %v2861_v54, %v2861_v54  ;;  %v3858_v12 = vpack.c.bf16 %v2862_v35, %v2862_v35  ;;  %v1919_v45 = vcombine.high %v1599_v13, %v1599_v13 }
 0x1ca   : > { %v3179_v57 = vunpack.c.l.b16 %v3855_v38  ;;  %v1953_v25 = vcombine.high %v1601_v30, %v1601_v30  ;;  %v1960_v11 = vrot.slane %v1601_v30, %v4728_v18  ;;  %v1926_v49 = vrot.slane %v1599_v13, %v4728_v18 }
 0x1cb   : > { %v3180_v60 = vunpack.c.l.b16 %v3856_v56  ;;  %v3181_v16 = vunpack.c.l.b16 %v3857_v61  ;;  %v3182_v62 = vunpack.c.l.b16 %v3858_v12  ;;  %v1933_v40 = vrot.slane %v1919_v45, %v4728_v18  ;;  %v5202_v56 = vld [vmem:[#allocation13_spill] sm:$0xff] }
 0x1cc   : > { %v3270_v1 = vrot.slane %v3179_v57, 4  ;;  %v1967_v5 = vrot.slane %v1953_v25, %v4728_v18  ;;  %v1968_v27 = vcombine.high %v1960_v11, %v1960_v11  ;;  %v3704_v7 = vrot.slane %v1960_v11, 9 }
 0x1cd   : > { %v3272_v41 = vrot.slane %v3180_v60, 3  ;;  %v3274_v59 = vrot.slane %v3181_v16, 2  ;;  %v3276_v19 = vrot.slane %v3182_v62, 1  ;;  %v1934_v33 = vcombine.high %v1926_v49, %v1926_v49 }
 0x1ce   : > { %v3271_v4 = vsel %vm3225_vm4, %v3270_v1, %v3269_v28  ;;  %v1969_v22 = vcombine.high %v1967_v5, %v1967_v5  ;;  %v3705_v46 = vrot.slane %v1968_v27, 9  ;;  %v3706_v3 = vrot.slane %v1967_v5, 9 }
 0x1cf   : > { %v3273_v51 = vsel %vm3228_vm5, %v3272_v41, %v3271_v4  ;;  %v2775_v6 = vmax.f32 %v1960_v11, %v3704_v7  ;;  %v1935_v48 = vcombine.high %v1933_v40, %v1933_v40  ;;  %v3696_v15 = vrot.slane %v1926_v49, 9 }
 0x1d0   : > { %v3275_v32 = vsel %vm3231_vm6, %v3274_v59, %v3273_v51  ;;  %v3707_v44 = vrot.slane %v1969_v22, 9  ;;  %v2776_v31 = vmax.f32 %v1968_v27, %v3705_v46  ;;  %v2777_v21 = vmax.f32 %v1967_v5, %v3706_v3 }
 0x1d1   : > { %v3277_v0 = vsel %vm3234_vm7, %v3276_v19, %v3275_v32  ;;  %v3697_v43 = vrot.slane %v1934_v33, 9  ;;  %v3698_v55 = vrot.slane %v1933_v40, 9  ;;  %v3699_v9 = vrot.slane %v1935_v48, 9 }
 0x1d2   : > { %v3337_v28 = vpack.c.b16 %v3277_v0, %v3277_v0  ;;  %v2778_v2 = vmax.f32 %v1969_v22, %v3707_v44  ;;  %v2767_v42 = vmax.f32 %v1926_v49, %v3696_v15  ;;  %v1602_v54 = vmax.f32 %v1532_v53, 0.0 }
 0x1d3   : > { %v2768_v35 = vmax.f32 %v1934_v33, %v3697_v43  ;;  %v2769_v13 = vmax.f32 %v1933_v40, %v3698_v55  ;;  %v2770_v38 = vmax.f32 %v1935_v48, %v3699_v9  ;;  %v1600_v30 = vmax.f32 %v1524_v39, 0.0 }
 0x1d4   : > { %3354 = vst.msk [vmem:[%s4869_s28 + $0xc] sm:$0xf] %vm3350_vm8, %v3337_v28  ;;  %v2863_v58 = vmax.f32 %v2767_v42, %v2775_v6  ;;  %v1970_v14 = vcombine.high %v1602_v54, %v1602_v54  ;;  %v1977_v52 = vrot.slane %v1602_v54, %v4728_v18  ;;  %v1384_v61 = vadd.f32 %v4963_v17, %v5202_v56 }
 0x1d5   : > { %v2864_v12 = vmax.f32 %v2768_v35, %v2776_v31  ;;  %v2865_v45 = vmax.f32 %v2769_v13, %v2777_v21  ;;  %v2866_v57 = vmax.f32 %v2770_v38, %v2778_v2  ;;  %v1936_v25 = vcombine.high %v1600_v30, %v1600_v30  ;;  %v5203_v38 = vld [vmem:[#allocation11_spill] sm:$0xff] }
 0x1d6   : > { %v3859_v11 = vpack.c.bf16 %v2863_v58, %v2863_v58  ;;  %v1984_v53 = vrot.slane %v1970_v14, %v4728_v18  ;;  %v1985_v49 = vcombine.high %v1977_v52, %v1977_v52  ;;  %v3708_v60 = vrot.slane %v1977_v52, 9 }
 0x1d7   : > { %v3860_v16 = vpack.c.bf16 %v2864_v12, %v2864_v12  ;;  %v3861_v39 = vpack.c.bf16 %v2865_v45, %v2865_v45  ;;  %v3862_v62 = vpack.c.bf16 %v2866_v57, %v2866_v57  ;;  %v1943_v40 = vrot.slane %v1600_v30, %v4728_v18  ;;  %v5205_v12 = vld [vmem:[#allocation19_spill] sm:$0xff] }
 0x1d8   : > { %v3183_v1 = vunpack.c.l.b16 %v3859_v11  ;;  %v1986_v5 = vcombine.high %v1984_v53, %v1984_v53  ;;  %v3709_v27 = vrot.slane %v1985_v49, 9  ;;  %v3710_v7 = vrot.slane %v1984_v53, 9 }
 0x1d9   : > { %v3184_v41 = vunpack.c.l.b16 %v3860_v16  ;;  %v3185_v17 = vunpack.c.l.b16 %v3861_v39  ;;  %v3186_v59 = vunpack.c.l.b16 %v3862_v62  ;;  %v2779_v19 = vmax.f32 %v1977_v52, %v3708_v60 }
 0x1da   : > { %v3711_v33 = vrot.slane %v1986_v5, 9  ;;  %v2780_v4 = vmax.f32 %v1985_v49, %v3709_v27  ;;  %v2781_v22 = vmax.f32 %v1984_v53, %v3710_v7  ;;  %v1950_v46 = vrot.slane %v1936_v25, %v4728_v18  ;;  %v5206_v53 = vld [vmem:[#allocation21_spill] sm:$0xff] }
 0x1db   : > { %v3278_v3 = vrot.slane %v3184_v41, 7  ;;  %v3280_v51 = vrot.slane %v3185_v17, 6  ;;  %v3282_v6 = vrot.slane %v3186_v59, 5  ;;  %v1951_v48 = vcombine.high %v1943_v40, %v1943_v40 }
 0x1dc   : > { %v2782_v15 = vmax.f32 %v1986_v5, %v3711_v33  ;;  %v1952_v32 = vcombine.high %v1950_v46, %v1950_v46  ;;  %v3700_v44 = vrot.slane %v1943_v40, 9  ;;  %v3702_v31 = vrot.slane %v1950_v46, 9 }
 0x1dd   : > { %v3279_v21 = vsel %vm3216_vm1, %v3278_v3, %v3183_v1  ;;  %v3701_v0 = vrot.slane %v1951_v48, 9  ;;  %v1545_v43 = vadd.f32 %v4882_v29, %v1384_v61  ;;  %v5041_v55 = vadd.f32 %v4884_v23, %v4880_v63  ;;  %v5204_v29 = vld [vmem:[#allocation15_spill] sm:$0xff] }
 0x1de   : > { %v3281_v9 = vsel %vm3219_vm2, %v3280_v51, %v3279_v21  ;;  %v3703_v28 = vrot.slane %v1952_v32, 9  ;;  %v2771_v2 = vmax.f32 %v1943_v40, %v3700_v44  ;;  %v2773_v42 = vmax.f32 %v1950_v46, %v3702_v31  ;;  %v5207_v21 = vld [vmem:[#allocation20_spill] sm:$0xff] }
 0x1df   : > { %v2772_v54 = vmax.f32 %v1951_v48, %v3701_v0  ;;  %v3283_v35 = vsel %vm3222_vm3, %v3282_v6, %v3281_v9  ;;  %v1605_v13 = vmax.f32 %v1545_v43, 0.0  ;;  %v1376_v30 = vadd.f32 %v4901_v10, %v5203_v38  ;;  %v5208_v0 = vld [vmem:[#allocation22_spill] sm:$0xff]  ;;  %v5209_v38 = vld [vmem:[#allocation12_spill] sm:$0xff] }
 0x1e0   : > { %v2774_v58 = vmax.f32 %v1952_v32, %v3703_v28  ;;  %v2867_v14 = vmax.f32 %v2771_v2, %v2779_v19  ;;  %v2869_v52 = vmax.f32 %v2773_v42, %v2781_v22  ;;  %v1387_v56 = vadd.f32 %v4973_v50, %v5204_v29 }
 0x1e1   : > { %v2868_v63 = vmax.f32 %v2772_v54, %v2780_v4  ;;  %v2021_v23 = vcombine.high %v1605_v13, %v1605_v13  ;;  %v2028_v61 = vrot.slane %v1605_v13, %v4728_v18  ;;  %v1537_v45 = vadd.f32 %v5205_v12, %v1376_v30 }
 0x1e2   : > { %v2870_v57 = vmax.f32 %v2774_v58, %v2782_v15  ;;  %v3863_v25 = vpack.c.bf16 %v2867_v14, %v2867_v14  ;;  %v3865_v11 = vpack.c.bf16 %v2869_v52, %v2869_v52  ;;  %v1548_v49 = vadd.f32 %v5206_v53, %v1387_v56 }
 0x1e3   : > { %v3864_v60 = vpack.c.bf16 %v2868_v63, %v2868_v63  ;;  %v2035_v10 = vrot.slane %v2021_v23, %v4728_v18  ;;  %v2036_v16 = vcombine.high %v2028_v61, %v2028_v61  ;;  %v3720_v39 = vrot.slane %v2028_v61, 9 }
 0x1e4   : > { %v3866_v62 = vpack.c.bf16 %v2870_v57, %v2870_v57  ;;  %v3187_v40 = vunpack.c.l.b16 %v3863_v25  ;;  %v3189_v1 = vunpack.c.l.b16 %v3865_v11  ;;  %v1603_v50 = vmax.f32 %v1537_v45, 0.0  ;;  %v5210_v25 = vld [vmem:[#allocation23_spill] sm:$0xff] }
 0x1e5   : > { %v3188_v5 = vunpack.c.l.b16 %v3864_v60  ;;  %v2037_v27 = vcombine.high %v2035_v10, %v2035_v10  ;;  %v3721_v7 = vrot.slane %v2036_v16, 9  ;;  %v3722_v41 = vrot.slane %v2035_v10, 9 }
 0x1e6   : > { %v3190_v17 = vunpack.c.l.b16 %v3866_v62  ;;  %v3284_v59 = vrot.slane %v3187_v40, 4  ;;  %v3288_v19 = vrot.slane %v3189_v1, 2  ;;  %v2791_v33 = vmax.f32 %v2028_v61, %v3720_v39 }
 0x1e7   : > { %v3286_v4 = vrot.slane %v3188_v5, 3  ;;  %v3723_v22 = vrot.slane %v2037_v27, 9  ;;  %v2792_v46 = vmax.f32 %v2036_v16, %v3721_v7  ;;  %v2793_v3 = vmax.f32 %v2035_v10, %v3722_v41 }
 0x1e8   : > { %v3285_v51 = vsel %vm3225_vm4, %v3284_v59, %v3283_v35  ;;  %v3290_v6 = vrot.slane %v3190_v17, 1  ;;  %v1987_v48 = vcombine.high %v1603_v50, %v1603_v50  ;;  %v1994_v15 = vrot.slane %v1603_v50, %v4728_v18 }
 0x1e9   : > { %v3287_v32 = vsel %vm3228_vm5, %v3286_v4, %v3285_v51  ;;  %v2794_v44 = vmax.f32 %v2037_v27, %v3723_v22  ;;  %v1606_v31 = vmax.f32 %v1548_v49, 0.0  ;;  %v4102_v43 = vadd.f32 %v5208_v0, %v5207_v21  ;;  %v5211_v4 = vld [vmem:[#allocation6_spill] sm:$0xff]  ;;  %v5212_v22 = vld [vmem:[#allocation24_spill] sm:$0xff] }
 0x1ea   : > { %v3289_v9 = vsel %vm3231_vm6, %v3288_v19, %v3287_v32  ;;  %v2001_v28 = vrot.slane %v1987_v48, %v4728_v18  ;;  %v2002_v2 = vcombine.high %v1994_v15, %v1994_v15  ;;  %v3712_v42 = vrot.slane %v1994_v15, 9  ;;  %v5213_v51 = vld [vmem:[#allocation26_spill] sm:$0xff]  ;;  %v5215_v21 = vld [vmem:[#allocation4_spill] sm:$0xff] }
 0x1eb   : > { %v3291_v54 = vsel %vm3234_vm7, %v3290_v6, %v3289_v9  ;;  %v2038_v35 = vcombine.high %v1606_v31, %v1606_v31  ;;  %v2045_v13 = vrot.slane %v1606_v31, %v4728_v18  ;;  %v1379_v30 = vadd.f32 %v4955_v20, %v5209_v38  ;;  %v5214_v31 = vld [vmem:[#allocation25_spill] sm:$0xff]  ;;  %v5216_v9 = vld [vmem:[#allocation7_spill] sm:$0xff] }
 0x1ec   : > { %v3338_v58 = vpack.c.b16 %v3291_v54, %v3291_v54  ;;  %v2003_v14 = vcombine.high %v2001_v28, %v2001_v28  ;;  %v3713_v52 = vrot.slane %v2002_v2, 9  ;;  %v3714_v29 = vrot.slane %v2001_v28, 9 }
 0x1ed   : > { %v2783_v56 = vmax.f32 %v1994_v15, %v3712_v42  ;;  %v2052_v63 = vrot.slane %v2038_v35, %v4728_v18  ;;  %v2053_v23 = vcombine.high %v2045_v13, %v2045_v13  ;;  %v3724_v61 = vrot.slane %v2045_v13, 9 }
 0x1ee   : > { %3355 = vst.msk [vmem:[%s4869_s28 + $0x10] sm:$0xf] %vm3350_vm8, %v3338_v58  ;;  %v3715_v12 = vrot.slane %v2003_v14, 9  ;;  %v2784_v45 = vmax.f32 %v2002_v2, %v3713_v52  ;;  %v2785_v57 = vmax.f32 %v2001_v28, %v3714_v29  ;;  %v1540_v11 = vadd.f32 %v5210_v25, %v1379_v30  ;;  %v5217_v30 = vld [vmem:[#allocation27_spill] sm:$0xff] }
 0x1ef   : > { %v2871_v53 = vmax.f32 %v2783_v56, %v2791_v33  ;;  %v2054_v49 = vcombine.high %v2052_v63, %v2052_v63  ;;  %v3725_v60 = vrot.slane %v2053_v23, 9  ;;  %v3726_v20 = vrot.slane %v2052_v63, 9 }
 0x1f0   : > { %v2786_v10 = vmax.f32 %v2003_v14, %v3715_v12  ;;  %v2872_v16 = vmax.f32 %v2784_v45, %v2792_v46  ;;  %v2873_v39 = vmax.f32 %v2785_v57, %v2793_v3  ;;  %v2795_v62 = vmax.f32 %v2045_v13, %v3724_v61 }
 0x1f1   : > { %v3867_v40 = vpack.c.bf16 %v2871_v53, %v2871_v53  ;;  %v3727_v1 = vrot.slane %v2054_v49, 9  ;;  %v2796_v50 = vmax.f32 %v2053_v23, %v3725_v60  ;;  %v2797_v5 = vmax.f32 %v2052_v63, %v3726_v20 }
 0x1f2   : > { %v2874_v27 = vmax.f32 %v2786_v10, %v2794_v44  ;;  %v3868_v7 = vpack.c.bf16 %v2872_v16, %v2872_v16  ;;  %v3869_v41 = vpack.c.bf16 %v2873_v39, %v2873_v39  ;;  %v1604_v17 = vmax.f32 %v1540_v11, 0.0 }
 0x1f3   : > { %v3191_v59 = vunpack.c.l.b16 %v3867_v40  ;;  %v2798_v19 = vmax.f32 %v2054_v49, %v3727_v1  ;;  %v1400_v33 = vadd.f32 %v5041_v55, %v5211_v4  ;;  %v5072_v6 = vadd.f32 %v5213_v51, %v5212_v22 }
 0x1f4   : > { %v3870_v46 = vpack.c.bf16 %v2874_v27, %v2874_v27  ;;  %v3192_v3 = vunpack.c.l.b16 %v3868_v7  ;;  %v3193_v48 = vunpack.c.l.b16 %v3869_v41  ;;  %v2004_v15 = vcombine.high %v1604_v17, %v1604_v17 }
 0x1f5   : > { %v2011_v32 = vrot.slane %v1604_v17, %v4728_v18  ;;  %v1561_v44 = vadd.f32 %v5214_v31, %v1400_v33  ;;  %v1392_v0 = vadd.f32 %v5007_v36, %v5215_v21  ;;  %v1403_v28 = vadd.f32 %v4102_v43, %v5216_v9  ;;  %v5218_v21 = vld [vmem:[#allocation29_spill] sm:$0xff] }
 0x1f6   : > { %v3194_v2 = vunpack.c.l.b16 %v3870_v46  ;;  %v3292_v42 = vrot.slane %v3192_v3, 7  ;;  %v3294_v55 = vrot.slane %v3193_v48, 6  ;;  %v2018_v54 = vrot.slane %v2004_v15, %v4728_v18 }
 0x1f7   : > { %v2019_v35 = vcombine.high %v2011_v32, %v2011_v32  ;;  %v3716_v13 = vrot.slane %v2011_v32, 9  ;;  %v1609_v38 = vmax.f32 %v1561_v44, 0.0  ;;  %v1553_v58 = vadd.f32 %v5217_v30, %v1392_v0 }
 0x1f8   : > { %v3293_v14 = vsel %vm3216_vm1, %v3292_v42, %v3191_v59  ;;  %v3296_v52 = vrot.slane %v3194_v2, 5  ;;  %v2020_v29 = vcombine.high %v2018_v54, %v2018_v54  ;;  %v3718_v56 = vrot.slane %v2018_v54, 9 }
 0x1f9   : > { %v3295_v63 = vsel %vm3219_vm2, %v3294_v55, %v3293_v14  ;;  %v3717_v36 = vrot.slane %v2019_v35, 9  ;;  %v2787_v23 = vmax.f32 %v2011_v32, %v3716_v13  ;;  %v2089_v43 = vcombine.high %v1609_v38, %v1609_v38 }
 0x1fa   : > { %v3719_v61 = vrot.slane %v2020_v29, 9  ;;  %v2789_v12 = vmax.f32 %v2018_v54, %v3718_v56  ;;  %v3297_v45 = vsel %vm3222_vm3, %v3296_v52, %v3295_v63  ;;  %v2096_v57 = vrot.slane %v1609_v38, %v4728_v18  ;;  %v5219_v52 = vld [vmem:[#allocation28_spill] sm:$0xff] }
 0x1fb   : > { %v2788_v25 = vmax.f32 %v2019_v35, %v3717_v36  ;;  %v2875_v11 = vmax.f32 %v2787_v23, %v2795_v62  ;;  %v2103_v53 = vrot.slane %v2089_v43, %v4728_v18  ;;  %v1607_v49 = vmax.f32 %v1553_v58, 0.0 }
 0x1fc   : > { %v2790_v60 = vmax.f32 %v2020_v29, %v3719_v61  ;;  %v2877_v20 = vmax.f32 %v2789_v12, %v2797_v5  ;;  %v2104_v10 = vcombine.high %v2096_v57, %v2096_v57  ;;  %v3736_v16 = vrot.slane %v2096_v57, 9 }
 0x1fd   : > { %v2876_v39 = vmax.f32 %v2788_v25, %v2796_v50  ;;  %v3871_v40 = vpack.c.bf16 %v2875_v11, %v2875_v11  ;;  %v2105_v1 = vcombine.high %v2103_v53, %v2103_v53  ;;  %v3738_v27 = vrot.slane %v2103_v53, 9 }
 0x1fe   : > { %v2878_v7 = vmax.f32 %v2790_v60, %v2798_v19  ;;  %v3873_v41 = vpack.c.bf16 %v2877_v20, %v2877_v20  ;;  %v3737_v17 = vrot.slane %v2104_v10, 9  ;;  %v2807_v59 = vmax.f32 %v2096_v57, %v3736_v16 }
 0x1ff   : > { %v3872_v4 = vpack.c.bf16 %v2876_v39, %v2876_v39  ;;  %v3195_v33 = vunpack.c.l.b16 %v3871_v40  ;;  %v3739_v22 = vrot.slane %v2105_v1, 9  ;;  %v2809_v51 = vmax.f32 %v2103_v53, %v3738_v27  ;;  %v4365_v40 = vld [vmem:[%s5162_s2] ss:$0 sm:$0xff] }
 0x200   : > { %v3874_v62 = vpack.c.bf16 %v2878_v7, %v2878_v7  ;;  %v3197_v46 = vunpack.c.l.b16 %v3873_v41  ;;  %v2808_v3 = vmax.f32 %v2104_v10, %v3737_v17  ;;  %v2055_v48 = vcombine.high %v1607_v49, %v1607_v49  ;;  %v5221_v7 = vld [vmem:[#allocation3_spill] sm:$0xff] }
 0x201   : > { %v3196_v15 = vunpack.c.l.b16 %v3872_v4  ;;  %v3298_v5 = vrot.slane %v3195_v33, 4  ;;  %v2810_v32 = vmax.f32 %v2105_v1, %v3739_v22  ;;  %v2062_v50 = vrot.slane %v1607_v49, %v4728_v18  ;;  %v5220_v1 = vld [vmem:[#allocation2_spill] sm:$0xff] }
 0x202   : > { %v3198_v31 = vunpack.c.l.b16 %v3874_v62  ;;  %v3302_v44 = vrot.slane %v3197_v46, 2  ;;  %v2069_v19 = vrot.slane %v2055_v48, %v4728_v18  ;;  %v1564_v0 = vadd.f32 %v5218_v21, %v1403_v28  ;;  %v5224_v21 = vld [vmem:[#allocation30_spill] sm:$0xff] }
 0x203   : > { %v3299_v9 = vsel %vm3225_vm4, %v3298_v5, %v3297_v45  ;;  %v3300_v2 = vrot.slane %v3196_v15, 3  ;;  %v2070_v42 = vcombine.high %v2062_v50, %v2062_v50  ;;  %v3728_v55 = vrot.slane %v2062_v50, 9 }
 0x204   : > { %v3304_v54 = vrot.slane %v3198_v31, 1  ;;  %v2071_v35 = vcombine.high %v2069_v19, %v2069_v19  ;;  %v3730_v13 = vrot.slane %v2069_v19, 9  ;;  %v1610_v38 = vmax.f32 %v1564_v0, 0.0  ;;  %v5223_v31 = vld [vmem:[#allocation8_spill] sm:$0xff] }
 0x205   : > { %v3301_v30 = vsel %vm3228_vm5, %v3300_v2, %v3299_v9  ;;  %v3729_v58 = vrot.slane %v2070_v42, 9  ;;  %v2799_v14 = vmax.f32 %v2062_v50, %v3728_v55  ;;  %v4108_v29 = vadd.f32 %v4921_v8, %v5219_v52 }
 0x206   : > { %v3303_v56 = vsel %vm3231_vm6, %v3302_v44, %v3301_v30  ;;  %v3731_v28 = vrot.slane %v2071_v35, 9  ;;  %v2801_v63 = vmax.f32 %v2069_v19, %v3730_v13  ;;  %v2106_v36 = vcombine.high %v1610_v38, %v1610_v38 }
 0x207   : > { %v3305_v23 = vsel %vm3234_vm7, %v3304_v54, %v3303_v56  ;;  %v2800_v43 = vmax.f32 %v2070_v42, %v3729_v58  ;;  %v2879_v61 = vmax.f32 %v2799_v14, %v2807_v59  ;;  %v2113_v12 = vrot.slane %v1610_v38, %v4728_v18  ;;  %v5225_v54 = vld [vmem:[#allocation32_spill] sm:$0xff]  ;;  %v5227_v38 = vld [vmem:[#allocation31_spill] sm:$0xff]  ;;  %v5228_v56 = vld [vmem:[#allocation34_spill] sm:$0xff] }
 0x208   : > { %v3339_v45 = vpack.c.b16 %v3305_v23, %v3305_v23  ;;  %v2802_v57 = vmax.f32 %v2071_v35, %v3731_v28  ;;  %v2881_v25 = vmax.f32 %v2801_v63, %v2809_v51  ;;  %v2120_v11 = vrot.slane %v2106_v36, %v4728_v18  ;;  %v5226_v35 = vld [vmem:[#allocation9_spill] sm:$0xff] }
 0x209   : > { %v2880_v53 = vmax.f32 %v2800_v43, %v2808_v3  ;;  %v3875_v49 = vpack.c.bf16 %v2879_v61, %v2879_v61  ;;  %v2121_v8 = vcombine.high %v2113_v12, %v2113_v12  ;;  %v3740_v60 = vrot.slane %v2113_v12, 9  ;;  %v5222_v3 = vld [vmem:[#allocation5_spill] sm:$0xff] }
 0x20a   : > { %3356 = vst.msk [vmem:[%s4869_s28 + $0x14] sm:$0xf] %vm3350_vm8, %v3339_v45  ;;  %v2882_v20 = vmax.f32 %v2802_v57, %v2810_v32  ;;  %v3877_v10 = vpack.c.bf16 %v2881_v25, %v2881_v25  ;;  %v2122_v16 = vcombine.high %v2120_v11, %v2120_v11  ;;  %v3742_v39 = vrot.slane %v2120_v11, 9  ;;  %v5229_v43 = vld [vmem:[#allocation33_spill] sm:$0xff] }
 0x20b   : > { %v1255_v27 = vadd.f32 %v4365_v40, %v5220_v1  ;;  %v1258_v41 = vadd.f32 %v4365_v40, %v5221_v7  ;;  %v3876_v17 = vpack.c.bf16 %v2880_v53, %v2880_v53  ;;  %v3199_v59 = vunpack.c.l.b16 %v3875_v49 }
 0x20c   : > { %v3878_v4 = vpack.c.bf16 %v2882_v20, %v2882_v20  ;;  %v3201_v33 = vunpack.c.l.b16 %v3877_v10  ;;  %v3741_v22 = vrot.slane %v2121_v8, 9  ;;  %v2811_v51 = vmax.f32 %v2113_v12, %v3740_v60 }
 0x20d   : > { %v3200_v62 = vunpack.c.l.b16 %v3876_v17  ;;  %v3743_v46 = vrot.slane %v2122_v16, 9  ;;  %v1395_v48 = vadd.f32 %v5016_v34, %v5222_v3  ;;  %v4111_v15 = vadd.f32 %v4939_v37, %v4934_v47 }
 0x20e   : > { %v3202_v5 = vunpack.c.l.b16 %v3878_v4  ;;  %v3308_v32 = vrot.slane %v3201_v33, 6  ;;  %v2813_v50 = vmax.f32 %v2120_v11, %v3742_v39  ;;  %v1408_v44 = vadd.f32 %v5072_v6, %v5223_v31 }
 0x20f   : > { %v3306_v19 = vrot.slane %v3200_v62, 7  ;;  %v1556_v0 = vadd.f32 %v5224_v21, %v1395_v48  ;;  %v1416_v9 = vadd.f32 %v4111_v15, %v1255_v27  ;;  %v4114_v2 = vadd.f32 %v4949_v26, %v4943_v24 }
 0x210   : > { %v3310_v42 = vrot.slane %v3202_v5, 5  ;;  %v2812_v55 = vmax.f32 %v2121_v8, %v3741_v22  ;;  %v1569_v34 = vadd.f32 %v5225_v54, %v1408_v44  ;;  %v1411_v13 = vadd.f32 %v4108_v29, %v5226_v35 }
 0x211   : > { %v3307_v47 = vsel %vm3216_vm1, %v3306_v19, %v3199_v59  ;;  %v1608_v37 = vmax.f32 %v1556_v0, 0.0  ;;  %v1577_v30 = vadd.f32 %v5227_v38, %v1416_v9  ;;  %v1419_v58 = vadd.f32 %v4114_v2, %v1258_v41 }
 0x212   : > { %v3309_v6 = vsel %vm3219_vm2, %v3308_v32, %v3307_v47  ;;  %v2814_v14 = vmax.f32 %v2122_v16, %v3743_v46  ;;  %v1611_v52 = vmax.f32 %v1569_v34, 0.0  ;;  %v1572_v28 = vadd.f32 %v5228_v56, %v1411_v13 }
 0x213   : > { %v2072_v63 = vcombine.high %v1608_v37, %v1608_v37  ;;  %v2079_v24 = vrot.slane %v1608_v37, %v4728_v18  ;;  %v3311_v26 = vsel %vm3222_vm3, %v3310_v42, %v3309_v6  ;;  %v1613_v36 = vmax.f32 %v1577_v30, 0.0 }
 0x214   : > { %v2123_v23 = vcombine.high %v1611_v52, %v1611_v52  ;;  %v2130_v29 = vrot.slane %v1611_v52, %v4728_v18  ;;  %v1580_v61 = vadd.f32 %v5229_v43, %v1419_v58  ;;  %v5123_v12 = vmax.f32 %v1572_v28, 0.0 }
 0x215   : > { %v2086_v45 = vrot.slane %v2072_v63, %v4728_v18  ;;  %v2087_v57 = vcombine.high %v2079_v24, %v2079_v24  ;;  %v3732_v25 = vrot.slane %v2079_v24, 9  ;;  %v2157_v11 = vcombine.high %v1613_v36, %v1613_v36 }
 0x216   : > { %v2164_v53 = vrot.slane %v1613_v36, %v4728_v18  ;;  %v2137_v49 = vrot.slane %v2123_v23, %v4728_v18  ;;  %v2138_v8 = vcombine.high %v2130_v29, %v2130_v29  ;;  %v3744_v60 = vrot.slane %v2130_v29, 9 }
 0x217   : > { %v2088_v20 = vcombine.high %v2086_v45, %v2086_v45  ;;  %v3733_v10 = vrot.slane %v2087_v57, 9  ;;  %v3734_v16 = vrot.slane %v2086_v45, 9  ;;  %v2803_v39 = vmax.f32 %v2079_v24, %v3732_v25 }
 0x218   : > { %v2171_v40 = vrot.slane %v2157_v11, %v4728_v18  ;;  %v2172_v1 = vcombine.high %v2164_v53, %v2164_v53  ;;  %v3752_v27 = vrot.slane %v2164_v53, 9  ;;  %v2139_v7 = vcombine.high %v2137_v49, %v2137_v49 }
 0x219   : > { %v3735_v41 = vrot.slane %v2088_v20, 9  ;;  %v2804_v17 = vmax.f32 %v2087_v57, %v3733_v10  ;;  %v2805_v59 = vmax.f32 %v2086_v45, %v3734_v16  ;;  %v2883_v4 = vmax.f32 %v2803_v39, %v2811_v51 }
 0x21a   : > { %v2173_v33 = vcombine.high %v2171_v40, %v2171_v40  ;;  %v3753_v22 = vrot.slane %v2172_v1, 9  ;;  %v3754_v62 = vrot.slane %v2171_v40, 9  ;;  %v3745_v46 = vrot.slane %v2138_v8, 9 }
 0x21b   : > { %v2806_v3 = vmax.f32 %v2088_v20, %v3735_v41  ;;  %v2884_v48 = vmax.f32 %v2804_v17, %v2812_v55  ;;  %v2885_v15 = vmax.f32 %v2805_v59, %v2813_v50  ;;  %v3879_v5 = vpack.c.bf16 %v2883_v4, %v2883_v4 }
 0x21c   : > { %v3755_v32 = vrot.slane %v2173_v33, 9  ;;  %v3746_v31 = vrot.slane %v2137_v49, 9  ;;  %v3747_v44 = vrot.slane %v2139_v7, 9  ;;  %v2815_v19 = vmax.f32 %v2130_v29, %v3744_v60 }
 0x21d   : > { %v2886_v21 = vmax.f32 %v2806_v3, %v2814_v14  ;;  %v3880_v0 = vpack.c.bf16 %v2884_v48, %v2884_v48  ;;  %v3881_v9 = vpack.c.bf16 %v2885_v15, %v2885_v15  ;;  %v3203_v2 = vunpack.c.l.b16 %v3879_v5 }
 0x21e   : > { %v2816_v42 = vmax.f32 %v2138_v8, %v3745_v46  ;;  %v2817_v54 = vmax.f32 %v2137_v49, %v3746_v31  ;;  %v2818_v34 = vmax.f32 %v2139_v7, %v3747_v44  ;;  %v2823_v51 = vmax.f32 %v2164_v53, %v3752_v27 }
 0x21f   : > { %v3882_v35 = vpack.c.bf16 %v2886_v21, %v2886_v21  ;;  %v3204_v13 = vunpack.c.l.b16 %v3880_v0  ;;  %v3205_v47 = vunpack.c.l.b16 %v3881_v9  ;;  %v3312_v37 = vrot.slane %v3203_v2, 4 }
 0x220   : > { %v2824_v38 = vmax.f32 %v2172_v1, %v3753_v22  ;;  %v2825_v55 = vmax.f32 %v2171_v40, %v3754_v62  ;;  %v2826_v50 = vmax.f32 %v2173_v33, %v3755_v32  ;;  %v2887_v30 = vmax.f32 %v2815_v19, %v2823_v51 }
 0x221   : > { %v3206_v58 = vunpack.c.l.b16 %v3882_v35  ;;  %v3313_v6 = vsel %vm3225_vm4, %v3312_v37, %v3311_v26  ;;  %v3314_v52 = vrot.slane %v3204_v13, 3  ;;  %v3316_v14 = vrot.slane %v3205_v47, 2 }
 0x222   : > { %v2888_v56 = vmax.f32 %v2816_v42, %v2824_v38  ;;  %v2889_v28 = vmax.f32 %v2817_v54, %v2825_v55  ;;  %v2890_v63 = vmax.f32 %v2818_v34, %v2826_v50  ;;  %v3883_v24 = vpack.c.bf16 %v2887_v30, %v2887_v30 }
 0x223   : > { %v3315_v36 = vsel %vm3228_vm5, %v3314_v52, %v3313_v6  ;;  %v3318_v23 = vrot.slane %v3206_v58, 1  ;;  %v1614_v29 = vmax.f32 %v1580_v61, 0.0  ;;  %v2140_v43 = vcombine.high %v5123_v12, %v5123_v12 }
 0x224   : > { %v3317_v45 = vsel %vm3231_vm6, %v3316_v14, %v3315_v36  ;;  %v3884_v57 = vpack.c.bf16 %v2888_v56, %v2888_v56  ;;  %v3885_v25 = vpack.c.bf16 %v2889_v28, %v2889_v28  ;;  %v3886_v11 = vpack.c.bf16 %v2890_v63, %v2890_v63 }
 0x225   : > { %v3319_v26 = vsel %vm3234_vm7, %v3318_v23, %v3317_v45  ;;  %v3207_v53 = vunpack.c.l.b16 %v3883_v24  ;;  %v2174_v49 = vcombine.high %v1614_v29, %v1614_v29  ;;  %v2181_v8 = vrot.slane %v1614_v29, %v4728_v18 }
 0x226   : > { %v3340_v60 = vpack.c.b16 %v3319_v26, %v3319_v26  ;;  %v3208_v20 = vunpack.c.l.b16 %v3884_v57  ;;  %v3209_v10 = vunpack.c.l.b16 %v3885_v25  ;;  %v3210_v16 = vunpack.c.l.b16 %v3886_v11 }
 0x227   : > { %v2188_v61 = vrot.slane %v2174_v49, %v4728_v18  ;;  %v2189_v39 = vcombine.high %v2181_v8, %v2181_v8  ;;  %v3756_v40 = vrot.slane %v2181_v8, 9  ;;  %v2147_v1 = vrot.slane %v5123_v12, %v4728_v18 }
 0x228   : > { %3357 = vst.msk [vmem:[%s4869_s28 + $0x18] sm:$0xf] %vm3350_vm8, %v3340_v60  ;;  %v3320_v27 = vrot.slane %v3208_v20, 7  ;;  %v3322_v7 = vrot.slane %v3209_v10, 6  ;;  %v3324_v41 = vrot.slane %v3210_v16, 5  ;;  %v2154_v17 = vrot.slane %v2140_v43, %v4728_v18 }
 0x229   : > { %v2190_v59 = vcombine.high %v2188_v61, %v2188_v61  ;;  %v3757_v4 = vrot.slane %v2189_v39, 9  ;;  %v3758_v33 = vrot.slane %v2188_v61, 9  ;;  %v2155_v22 = vcombine.high %v2147_v1, %v2147_v1 }
 0x22a   : > { %v3321_v62 = vsel %vm3216_vm1, %v3320_v27, %v3207_v53  ;;  %v2156_v46 = vcombine.high %v2154_v17, %v2154_v17  ;;  %v3748_v3 = vrot.slane %v2147_v1, 9  ;;  %v3750_v48 = vrot.slane %v2154_v17, 9 }
 0x22b   : > { %v3323_v15 = vsel %vm3219_vm2, %v3322_v7, %v3321_v62  ;;  %v3759_v5 = vrot.slane %v2190_v59, 9  ;;  %v3749_v12 = vrot.slane %v2155_v22, 9  ;;  %v2827_v32 = vmax.f32 %v2181_v8, %v3756_v40 }
 0x22c   : > { %v3751_v31 = vrot.slane %v2156_v46, 9  ;;  %v2819_v44 = vmax.f32 %v2147_v1, %v3748_v3  ;;  %v2821_v19 = vmax.f32 %v2154_v17, %v3750_v48  ;;  %v2828_v21 = vmax.f32 %v2189_v39, %v3757_v4 }
 0x22d   : > { %v2820_v0 = vmax.f32 %v2155_v22, %v3749_v12  ;;  %v2829_v18 = vmax.f32 %v2188_v61, %v3758_v33  ;;  %v2830_v9 = vmax.f32 %v2190_v59, %v3759_v5  ;;  %v3325_v2 = vsel %vm3222_vm3, %v3324_v41, %v3323_v15 }
 0x22e   : > { %v2822_v42 = vmax.f32 %v2156_v46, %v3751_v31  ;;  %v2891_v54 = vmax.f32 %v2819_v44, %v2827_v32 }
 0x22f   : > { %v2892_v34 = vmax.f32 %v2820_v0, %v2828_v21  ;;  %v2893_v51 = vmax.f32 %v2821_v19, %v2829_v18 }
 0x230   : > { %v2894_v35 = vmax.f32 %v2822_v42, %v2830_v9  ;;  %v3887_v13 = vpack.c.bf16 %v2891_v54, %v2891_v54 }
 0x231   : > { %v3888_v47 = vpack.c.bf16 %v2892_v34, %v2892_v34  ;;  %v3889_v37 = vpack.c.bf16 %v2893_v51, %v2893_v51 }
 0x232   : > { %v3890_v38 = vpack.c.bf16 %v2894_v35, %v2894_v35  ;;  %v3211_v55 = vunpack.c.l.b16 %v3887_v13 }
 0x233   : > { %v3212_v50 = vunpack.c.l.b16 %v3888_v47  ;;  %v3213_v30 = vunpack.c.l.b16 %v3889_v37 }
 0x234   : > { %v3214_v58 = vunpack.c.l.b16 %v3890_v38  ;;  %v3326_v6 = vrot.slane %v3211_v55, 4 }
 0x235   : > { %v3328_v52 = vrot.slane %v3212_v50, 3  ;;  %v3330_v56 = vrot.slane %v3213_v30, 2 }
 0x236   : > { %v3327_v14 = vsel %vm3225_vm4, %v3326_v6, %v3325_v2  ;;  %v3332_v63 = vrot.slane %v3214_v58, 1 }
 0x237   : > { %v3329_v28 = vsel %vm3228_vm5, %v3328_v52, %v3327_v14 }
 0x238   : > { %v3331_v24 = vsel %vm3231_vm6, %v3330_v56, %v3329_v28 }
 0x239   : > { %v3333_v36 = vsel %vm3234_vm7, %v3332_v63, %v3331_v24 }
 0x23a   : > { %v3341_v23 = vpack.c.b16 %v3333_v36, %v3333_v36 }
 0x23c   : > { %3358 = vst.msk [vmem:[%s4869_s28 + $0x1c] sm:$0xf] %vm3350_vm8, %v3341_v23 }
 0x23d PF: > { %s13_s14 = sadd.s32 1, %s4388_s14   ;;  %s5230_s12 = smov %s4384_s13 }
 0x23e   : > { %p10_p5 = scmp.ge.s32.totalorder %s13_s14, 6   ;;  %s5231_s13 = smov %s5233_s15 }
 0x240   :  { %12 = sbr.rel (!%p10_p5) target bundleno = 2 (0x2), region = 68 }

// kernel: generator_loss.12
= control target key start
LH: loop header
LB: loop body
LE: loop exit
PB: predicated region body
PF: predicated region fallthrough
CT: control target
= control target key end

     0   :  { %s2564_s12 = smov 0   ;;  %s2566_s13 = smov 0   ;;  %s2950_s0 = inlined_call_operand.vmem [shape: bf16[4,64,1152], index: 0, kind: input, shape index: {}]   ;;  %s2951_s1 = inlined_call_operand.vmem [shape: bf16[1152,128], index: 1, kind: input, shape index: {}]   ;;  %s2952_s2 = inlined_call_operand.vmem [shape: f32[1,128], index: 2, kind: input, shape index: {}]   ;;  %s2953_s3 = inlined_call_operand.vmem [shape: bf16[4,16,128], index: 3, kind: output, shape index: {}]  }
   0x1   :  { %s2568_s14 = smov 0  }
   0x2 LB: > { %s32_s15 = sadd.s32 1, %s2537_s13  ;;  %p1977_p0 = scmp.ge.s32.totalorder %s2541_s14, 1  ;;  %s2541_s14 = sphi %s2568_s14, %s13_s14   ;;  %s2537_s13 = sphi %s2566_s13, %s2955_s13   ;;  %s2533_s12 = sphi %s2564_s12, %s2954_s12  }
   0x3   : > { %p34_p1 = scmp.ge.s32.totalorder %s32_s15, 4  ;;  %p185_p2 = scmp.lt.s32.totalorder %s2541_s14, 5 }
   0x5   : > { %s2957_s15 = smov (%p34_p1, %s32_s15), 0  ;;  %p186_p3 = pnand %p1977_p0, %p185_p2 }
   0x6   : > { %v2395_v0 = vld [vmem:[%s2951_s1 + $0x40] sm:$0xff] (!%p186_p3)   ;;  %v2399_v4 = vld [vmem:[%s2951_s1 + $0x48] sm:$0xff] (!%p186_p3)   ;;  %v2403_v8 = vld [vmem:[%s2951_s1 + $0x50] sm:$0xff] (!%p186_p3)   ;;  %p229_p4 = scmp.lt.s32.totalorder (!%p186_p3), %s2533_s12, 3  ;;  %vm1801_vm0 = vcmask (!%p186_p3), 1041409   ;;  %vm1804_vm1 = vcmask (!%p186_p3), 1042434  }
   0x7   : > { %189 = sbr.rel (%p186_p3) target bundleno = 376 (0x178), region = 32  ;;  %v2396_v1 = vld [vmem:[%s2951_s1 + $0xc0] sm:$0xff] (!%p186_p3)   ;;  %2157 = vmatprep.subr.bf16.mxu0 (!%p186_p3), %v2395_v0  ;;  %v2400_v5 = vld [vmem:[%s2951_s1 + $0xc8] sm:$0xff] (!%p186_p3)   ;;  %v2404_v9 = vld [vmem:[%s2951_s1 + $0xd0] sm:$0xff] (!%p186_p3)   ;;  %vm1807_vm2 = vcmask (!%p186_p3), 1043459   ;;  %vm1810_vm3 = vcmask (!%p186_p3), 1044484  }
   0x8   : > { %v2397_v2 = vld [vmem:[%s2951_s1] sm:$0xff] (!%p186_p3)   ;;  %2197 = vmatprep.subr.bf16.mxu1 (!%p186_p3), %v2396_v1  ;;  %v2401_v6 = vld [vmem:[%s2951_s1 + $0x8] sm:$0xff] (!%p186_p3)   ;;  %v2405_v10 = vld [vmem:[%s2951_s1 + $0x10] sm:$0xff] (!%p186_p3)   ;;  %vm1813_vm4 = vcmask (!%p186_p3), 1045509   ;;  %vm1816_vm5 = vcmask (!%p186_p3), 1046534   ;;  %vm1819_vm6 = vcmask (!%p186_p3), 1047559  }
   0x9   : > { %v2398_v3 = vld [vmem:[%s2951_s1 + $0x80] sm:$0xff] (!%p186_p3)   ;;  %2158 = vmatpush3.bf16.msra.mxu0 (!%p186_p3), %v2397_v2  ;;  %v2402_v7 = vld [vmem:[%s2951_s1 + $0x88] sm:$0xff] (!%p186_p3)   ;;  %v2406_v11 = vld [vmem:[%s2951_s1 + $0x90] sm:$0xff] (!%p186_p3)  }
   0xa   : > { %2198 = vmatpush3.bf16.msra.mxu1 (!%p186_p3), %v2398_v3  ;;  %2159 = vmatprep.subr.bf16.mxu0 (!%p186_p3), %v2399_v4  ;;  %v2407_v12 = vld [vmem:[%s2951_s1 + $0x58] sm:$0xff] (!%p186_p3)   ;;  %v2411_v16 = vld [vmem:[%s2951_s1 + $0x60] sm:$0xff] (!%p186_p3)   ;;  %v2415_v20 = vld [vmem:[%s2951_s1 + $0x68] sm:$0xff] (!%p186_p3)  }
   0xb   : > { %2199 = vmatprep.subr.bf16.mxu1 (!%p186_p3), %v2400_v5  ;;  %v2408_v13 = vld [vmem:[%s2951_s1 + $0xd8] sm:$0xff] (!%p186_p3)   ;;  %v2412_v17 = vld [vmem:[%s2951_s1 + $0xe0] sm:$0xff] (!%p186_p3)   ;;  %v2416_v21 = vld [vmem:[%s2951_s1 + $0xe8] sm:$0xff] (!%p186_p3)  }
   0xc   : > { %v2409_v14 = vld [vmem:[%s2951_s1 + $0x18] sm:$0xff] (!%p186_p3)   ;;  %v2413_v18 = vld [vmem:[%s2951_s1 + $0x20] sm:$0xff] (!%p186_p3)   ;;  %v2417_v22 = vld [vmem:[%s2951_s1 + $0x28] sm:$0xff] (!%p186_p3)  }
   0xd   : > { %2160 = vmatpush3.bf16.msra.mxu0 (!%p186_p3), %v2401_v6  ;;  %v2410_v15 = vld [vmem:[%s2951_s1 + $0x98] sm:$0xff] (!%p186_p3)   ;;  %v2414_v19 = vld [vmem:[%s2951_s1 + $0xa0] sm:$0xff] (!%p186_p3)   ;;  %v2418_v23 = vld [vmem:[%s2951_s1 + $0xa8] sm:$0xff] (!%p186_p3)  }
   0xe   : > { %2200 = vmatpush3.bf16.msra.mxu1 %v2402_v7  ;;  %2161 = vmatprep.subr.bf16.mxu0 %v2403_v8  ;;  %s2959_s12 = smov (!%p229_p4, %s2533_s12), 3  ;;  %v2419_v24 = vld [vmem:[%s2951_s1 + $0x70] sm:$0xff]   ;;  %v2423_v28 = vld [vmem:[%s2951_s1 + $0x78] sm:$0xff]   ;;  %v2433_v36 = vld [vmem:[%s2951_s1 + $0x140] sm:$0xff]  }
   0xf   : > { %2201 = vmatprep.subr.bf16.mxu1 %v2404_v9  ;;  %v2420_v25 = vld [vmem:[%s2951_s1 + $0xf0] sm:$0xff]   ;;  %s2369_s22 = smul.u32 288, %s2959_s12  ;;  %v2424_v29 = vld [vmem:[%s2951_s1 + $0xf8] sm:$0xff]   ;;  %v2434_v37 = vld [vmem:[%s2951_s1 + $0x1c0] sm:$0xff]  }
  0x10   : > { %v2421_v26 = vld [vmem:[%s2951_s1 + $0x30] sm:$0xff]   ;;  %v2425_v30 = vld [vmem:[%s2951_s1 + $0x38] sm:$0xff]   ;;  %v2435_v38 = vld [vmem:[%s2951_s1 + $0x100] sm:$0xff]  }
  0x11   : > { %2162 = vmatpush3.bf16.msra.mxu0 %v2405_v10  ;;  %v2422_v27 = vld [vmem:[%s2951_s1 + $0xb0] sm:$0xff]   ;;  %s2682_s6 = scalar_lea.vmem %s2950_s0, %s2369_s22  ;;  %v2426_v31 = vld [vmem:[%s2951_s1 + $0xb8] sm:$0xff]   ;;  %v2436_v39 = vld [vmem:[%s2951_s1 + $0x180] sm:$0xff]  }
  0x12   : > { %2202 = vmatpush3.bf16.msra.mxu1 %v2406_v11  ;;  %2163 = vmatprep.subr.bf16.mxu0 %v2407_v12  ;;  %v2427_v32 = vld [vmem:[%s2682_s6] ss:$36 sps:$4 sm:$0xff]   ;;  %v2430_v34 = vld [vmem:[%s2682_s6 + $0x8] ss:$36 sps:$4 sm:$0xff]   ;;  %v2443_v45 = vld [vmem:[%s2682_s6 + $0x54] ss:$36 sps:$4 sm:$0xff]  }
  0x13   : > { %2203 = vmatprep.subr.bf16.mxu1 %v2408_v13  ;;  %v2429_v33 = vld [vmem:[%s2682_s6 + $0x4] ss:$36 sps:$4 sm:$0xff]   ;;  %v2432_v35 = vld [vmem:[%s2682_s6 + $0xc] ss:$36 sps:$4 sm:$0xff]   ;;  %v2451_v52 = vld [vmem:[%s2951_s1 + $0x158] sm:$0xff]  }
  0x14   : > { %1099 = vmatprep.mubr.bf16.mxu0 %v2429_v33  ;;  %1164 = vmatprep.mubr.bf16.mxu1 %v2432_v35  ;;  %v2437_v40 = vld [vmem:[%s2951_s1 + $0x148] sm:$0xff]   ;;  %v2446_v47 = vld [vmem:[%s2682_s6 + $0x50] ss:$36 sps:$4 sm:$0xff]   ;;  %v2452_v53 = vld [vmem:[%s2951_s1 + $0x1d8] sm:$0xff]  }
  0x15   : > { %2164 = vmatpush3.bf16.msra.mxu0 %v2409_v14  ;;  %v2438_v41 = vld [vmem:[%s2951_s1 + $0x1c8] sm:$0xff]   ;;  %v2447_v48 = vld [vmem:[%s2951_s1 + $0x150] sm:$0xff]   ;;  %v2453_v54 = vld [vmem:[%s2951_s1 + $0x118] sm:$0xff]  }
  0x16   : > { %2204 = vmatpush3.bf16.msra.mxu1 %v2410_v15  ;;  %2165 = vmatprep.subr.bf16.mxu0 %v2411_v16  ;;  %v2439_v42 = vld [vmem:[%s2951_s1 + $0x108] sm:$0xff]   ;;  %v2448_v49 = vld [vmem:[%s2951_s1 + $0x1d0] sm:$0xff]   ;;  %v2454_v55 = vld [vmem:[%s2951_s1 + $0x198] sm:$0xff]  }
  0x17   : > { %2205 = vmatprep.subr.bf16.mxu1 %v2412_v17  ;;  %v2440_v43 = vld [vmem:[%s2951_s1 + $0x188] sm:$0xff]   ;;  %v2449_v50 = vld [vmem:[%s2951_s1 + $0x110] sm:$0xff]   ;;  %v2457_v57 = vld [vmem:[%s2682_s6 + $0x9c] ss:$36 sps:$4 sm:$0xff]  }
  0x18   : > { %v2441_v44 = vld [vmem:[%s2682_s6 + $0x4c] ss:$36 sps:$4 sm:$0xff]   ;;  %v2455_v56 = vld [vmem:[%s2682_s6 + $0x94] ss:$36 sps:$4 sm:$0xff]   ;;  %v2461_v60 = vld [vmem:[%s2951_s1 + $0x160] sm:$0xff]  }
  0x19   : > { %2166 = vmatpush3.bf16.msra.mxu0 %v2413_v18  ;;  %v2445_v46 = vld [vmem:[%s2682_s6 + $0x48] ss:$36 sps:$4 sm:$0xff]   ;;  %v2450_v51 = vld [vmem:[%s2951_s1 + $0x190] sm:$0xff]   ;;  %v2460_v59 = vld [vmem:[%s2682_s6 + $0x98] ss:$36 sps:$4 sm:$0xff]  }
  0x1a   : > { %2206 = vmatpush3.bf16.msra.mxu1 %v2414_v19  ;;  %2167 = vmatprep.subr.bf16.mxu0 %v2415_v20  ;;  %v2459_v58 = vld [vmem:[%s2682_s6 + $0x90] ss:$36 sps:$4 sm:$0xff]   ;;  %v2462_v61 = vld [vmem:[%s2951_s1 + $0x1e0] sm:$0xff]   ;;  %v2465_v0 = vld [vmem:[%s2951_s1 + $0x168] sm:$0xff]  }
  0x1b   : > { %2207 = vmatprep.subr.bf16.mxu1 %v2416_v21  ;;  %v2463_v62 = vld [vmem:[%s2951_s1 + $0x120] sm:$0xff]   ;;  %v2466_v1 = vld [vmem:[%s2951_s1 + $0x1e8] sm:$0xff]   ;;  %v2473_v6 = vld [vmem:[%s2682_s6 + $0xd8] ss:$36 sps:$4 sm:$0xff]  }
  0x1c   : > { %v2464_v63 = vld [vmem:[%s2951_s1 + $0x1a0] sm:$0xff]   ;;  %v2467_v2 = vld [vmem:[%s2951_s1 + $0x128] sm:$0xff]   ;;  %v2475_v8 = vld [vmem:[%s2951_s1 + $0x170] sm:$0xff]  }
  0x1d   : > { %2168 = vmatpush3.bf16.msra.mxu0 %v2417_v22  ;;  %v2468_v3 = vld [vmem:[%s2951_s1 + $0x1a8] sm:$0xff]   ;;  %v2469_v4 = vld [vmem:[%s2682_s6 + $0xdc] ss:$36 sps:$4 sm:$0xff]   ;;  %v2476_v9 = vld [vmem:[%s2951_s1 + $0x1f0] sm:$0xff]  }
  0x1e   : > { %2208 = vmatpush3.bf16.msra.mxu1 %v2418_v23  ;;  %2169 = vmatprep.subr.bf16.mxu0 %v2419_v24  ;;  %v2471_v5 = vld [vmem:[%s2682_s6 + $0xe4] ss:$36 sps:$4 sm:$0xff]   ;;  %v2477_v10 = vld [vmem:[%s2951_s1 + $0x130] sm:$0xff]   ;;  %v2479_v12 = vld [vmem:[%s2951_s1 + $0x178] sm:$0xff]  }
  0x1f   : > { %2209 = vmatprep.subr.bf16.mxu1 %v2420_v25  ;;  %v2474_v7 = vld [vmem:[%s2682_s6 + $0xe0] ss:$36 sps:$4 sm:$0xff]   ;;  %v2478_v11 = vld [vmem:[%s2951_s1 + $0x1b0] sm:$0xff]   ;;  %v2480_v13 = vld [vmem:[%s2951_s1 + $0x1f8] sm:$0xff]  }
  0x20   : > { %v2481_v14 = vld [vmem:[%s2951_s1 + $0x138] sm:$0xff]   ;;  %v2483_v16 = vld [vmem:[%s2682_s6 + $0x10] ss:$36 sps:$4 sm:$0xff]   ;;  %v2489_v20 = vld [vmem:[%s2951_s1 + $0x200] sm:$0xff]  }
  0x21   : > { %2170 = vmatpush3.bf16.msra.mxu0 %v2421_v26  ;;  %v2482_v15 = vld [vmem:[%s2951_s1 + $0x1b8] sm:$0xff]   ;;  %v2490_v21 = vld [vmem:[%s2951_s1 + $0x208] sm:$0xff]   ;;  %v2496_v25 = vld [vmem:[%s2682_s6 + $0x60] ss:$36 sps:$4 sm:$0xff]  }
  0x22   : > { %2210 = vmatpush3.bf16.msra.mxu1 %v2422_v27  ;;  %2171 = vmatprep.subr.bf16.mxu0 %v2423_v28  ;;  %v2485_v17 = vld [vmem:[%s2682_s6 + $0x14] ss:$36 sps:$4 sm:$0xff]   ;;  %v2488_v19 = vld [vmem:[%s2682_s6 + $0x1c] ss:$36 sps:$4 sm:$0xff]   ;;  %v2493_v23 = vld [vmem:[%s2682_s6 + $0x64] ss:$36 sps:$4 sm:$0xff]  }
  0x23   : > { %2211 = vmatprep.subr.bf16.mxu1 %v2424_v29  ;;  %v2486_v18 = vld [vmem:[%s2682_s6 + $0x18] ss:$36 sps:$4 sm:$0xff]   ;;  %v2497_v26 = vld [vmem:[%s2951_s1 + $0x210] sm:$0xff]   ;;  %v2499_v27 = vld [vmem:[%s2682_s6 + $0xa4] ss:$36 sps:$4 sm:$0xff]  }
  0x24   : > { %v2491_v22 = vld [vmem:[%s2682_s6 + $0x5c] ss:$36 sps:$4 sm:$0xff]   ;;  %v2501_v28 = vld [vmem:[%s2682_s6 + $0xac] ss:$36 sps:$4 sm:$0xff]  }
  0x25   : > { %2172 = vmatpush3.bf16.msra.mxu0 %v2425_v30  ;;  %v2495_v24 = vld [vmem:[%s2682_s6 + $0x58] ss:$36 sps:$4 sm:$0xff]   ;;  %v2503_v30 = vld [vmem:[%s2682_s6 + $0xa0] ss:$36 sps:$4 sm:$0xff]   ;;  %v2507_v33 = vld [vmem:[%s2682_s6 + $0xec] ss:$36 sps:$4 sm:$0xff]  }
  0x26   : > { %2212 = vmatpush3.bf16.msra.mxu1 %v2426_v31  ;;  %2237 = vmatprep.subr.bf16.mxu0 %v2433_v36  ;;  %v2498_v29 = vld [vmem:[%s2951_s1 + $0x218] sm:$0xff]   ;;  %v2504_v31 = vld [vmem:[%s2682_s6 + $0xa8] ss:$36 sps:$4 sm:$0xff]  }
  0x27   : > { %2277 = vmatprep.subr.bf16.mxu1 %v2434_v37  ;;  %v2506_v35 = vld [vmem:[%s2951_s1 + $0x228] sm:$0xff]   ;;  %v2513_v37 = vld [vmem:[%s2951_s1 + $0x230] sm:$0xff]  }
  0x28   : > { %1100 = vmatmul.mubr.bf16.vlgmr.msra.gmra.mrb[0].mxu0 %v2427_v32  ;;  %v2505_v32 = vld [vmem:[%s2951_s1 + $0x220] sm:$0xff]   ;;  %v2511_v36 = vld [vmem:[%s2682_s6 + $0xe8] ss:$36 sps:$4 sm:$0xff]  }
  0x29   : > { %1165 = vmatmul.mubr.bf16.vlgmr.msra.gmra.mrb[0].mxu1 %v2430_v34  ;;  %2238 = vmatpush3.bf16.msra.mxu0 %v2435_v38  ;;  %v2509_v34 = vld [vmem:[%s2682_s6 + $0xf4] ss:$36 sps:$4 sm:$0xff]  }
  0x2a   : > { %2278 = vmatpush3.bf16.msra.mxu1 %v2436_v39  ;;  %2239 = vmatprep.subr.bf16.mxu0 %v2437_v40  ;;  %v2512_v38 = vld [vmem:[%s2682_s6 + $0xf0] ss:$36 sps:$4 sm:$0xff]   ;;  %v2515_v39 = vld [vmem:[%s2682_s6 + $0x20] ss:$36 sps:$4 sm:$0xff]  }
  0x2b   : > { %2279 = vmatprep.subr.bf16.mxu1 %v2438_v41  ;;  %1107 = vmatprep.mubr.bf16.mxu0 %v2441_v44  ;;  %v2516_v40 = vld [vmem:[%s2682_s6 + $0xb0] ss:$36 sps:$4 sm:$0xff]   ;;  %v2514_v41 = vld [vmem:[%s2951_s1 + $0x238] sm:$0xff]  }
  0x2c   : > { %1172 = vmatprep.mubr.bf16.mxu1 %v2443_v45 }
  0x2d   : > { %2240 = vmatpush3.bf16.msra.mxu0 %v2439_v42  ;;  %v2517_v42 = vld [vmem:[%s2682_s6 + $0x68] ss:$36 sps:$4 sm:$0xff]  }
  0x2e   : > { %2280 = vmatpush3.bf16.msra.mxu1 %v2440_v43  ;;  %2241 = vmatprep.subr.bf16.mxu0 %v2447_v48  ;;  %v2518_v43 = vld [vmem:[%s2682_s6 + $0xf8] ss:$36 sps:$4 sm:$0xff]   ;;  %s2140_s6 = sshll.u32 %s2959_s12, 3 }
  0x2f   : > { %2281 = vmatprep.subr.bf16.mxu1 %v2448_v49  ;;  %s257_s12 = scalar_lea.vmem %s2953_s3, %s2140_s6 }
  0x30   : > { %1108 = vmatmul.mubr.bf16.gmra.mrb[4].mxu0 %v2445_v46  ;;  %v1981_v46 = vld [vmem:[%s2952_s2] ss:$0 sm:$0xff] }
  0x31   : > { %1173 = vmatmul.mubr.bf16.gmra.mrb[4].mxu1 %v2446_v47  ;;  %2242 = vmatpush3.bf16.msra.mxu0 %v2449_v50 }
  0x32   : > { %2282 = vmatpush3.bf16.msra.mxu1 %v2450_v51  ;;  %2243 = vmatprep.subr.bf16.mxu0 %v2451_v52 }
  0x33   : > { %2283 = vmatprep.subr.bf16.mxu1 %v2452_v53  ;;  %1115 = vmatprep.mubr.bf16.mxu0 %v2455_v56 }
  0x34   : > { %1180 = vmatprep.mubr.bf16.mxu1 %v2457_v57 }
  0x35   : > { %2244 = vmatpush3.bf16.msra.mxu0 %v2453_v54 }
  0x36   : > { %2284 = vmatpush3.bf16.msra.mxu1 %v2454_v55  ;;  %2245 = vmatprep.subr.bf16.mxu0 %v2461_v60 }
  0x37   : > { %2285 = vmatprep.subr.bf16.mxu1 %v2462_v61 }
  0x38   : > { %1116 = vmatmul.mubr.bf16.gmra.mrb[8].mxu0 %v2459_v58 }
  0x39   : > { %1181 = vmatmul.mubr.bf16.gmra.mrb[8].mxu1 %v2460_v59  ;;  %2246 = vmatpush3.bf16.msra.mxu0 %v2463_v62 }
  0x3a   : > { %2286 = vmatpush3.bf16.msra.mxu1 %v2464_v63  ;;  %2247 = vmatprep.subr.bf16.mxu0 %v2465_v0 }
  0x3b   : > { %2287 = vmatprep.subr.bf16.mxu1 %v2466_v1  ;;  %1123 = vmatprep.mubr.bf16.mxu0 %v2469_v4 }
  0x3c   : > { %1188 = vmatprep.mubr.bf16.mxu1 %v2471_v5 }
  0x3d   : > { %2248 = vmatpush3.bf16.msra.mxu0 %v2467_v2 }
  0x3e   : > { %2288 = vmatpush3.bf16.msra.mxu1 %v2468_v3  ;;  %2249 = vmatprep.subr.bf16.mxu0 %v2475_v8 }
  0x3f   : > { %2289 = vmatprep.subr.bf16.mxu1 %v2476_v9 }
  0x40   : > { %1124 = vmatmul.mubr.bf16.gmra.mrb[12].mxu0 %v2473_v6 }
  0x41   : > { %1189 = vmatmul.mubr.bf16.gmra.mrb[12].mxu1 %v2474_v7  ;;  %2250 = vmatpush3.bf16.msra.mxu0 %v2477_v10 }
  0x42   : > { %2290 = vmatpush3.bf16.msra.mxu1 %v2478_v11  ;;  %2251 = vmatprep.subr.bf16.mxu0 %v2479_v12 }
  0x43   : > { %2291 = vmatprep.subr.bf16.mxu1 %v2480_v13  ;;  %1229 = vmatprep.mubr.bf16.mxu0 %v2485_v17 }
  0x44   : > { %1294 = vmatprep.mubr.bf16.mxu1 %v2488_v19 }
  0x45   : > { %2252 = vmatpush3.bf16.msra.mxu0 %v2481_v14 }
  0x46   : > { %2292 = vmatpush3.bf16.msra.mxu1 %v2482_v15  ;;  %2329 = vmatprep.subr.bf16.mxu0 %v2489_v20 }
  0x47   : > { %2353 = vmatprep.subr.bf16.mxu1 %v2489_v20 }
  0x48   : > { %1230 = vmatmul.mubr.bf16.vlgmr.msra.gmra.mrb[16].mxu0 %v2483_v16 }
  0x49   : > { %1295 = vmatmul.mubr.bf16.vlgmr.msra.gmra.mrb[16].mxu1 %v2486_v18  ;;  %2330 = vmatpush3.bf16.msra.mxu0 %v2489_v20 }
  0x4a   : > { %2361 = vmatpush3.bf16.msra.mxu1 %v2489_v20  ;;  %2331 = vmatprep.subr.bf16.mxu0 %v2490_v21 }
  0x4b   : > { %2354 = vmatprep.subr.bf16.mxu1 %v2490_v21  ;;  %1237 = vmatprep.mubr.bf16.mxu0 %v2491_v22 }
  0x4c   : > { %1302 = vmatprep.mubr.bf16.mxu1 %v2493_v23 }
  0x4d   : > { %2332 = vmatpush3.bf16.msra.mxu0 %v2490_v21 }
  0x4e   : > { %2362 = vmatpush3.bf16.msra.mxu1 %v2490_v21  ;;  %2333 = vmatprep.subr.bf16.mxu0 %v2497_v26 }
  0x4f   : > { %2355 = vmatprep.subr.bf16.mxu1 %v2497_v26 }
  0x50   : > { %1238 = vmatmul.mubr.bf16.gmra.mrb[20].mxu0 %v2495_v24 }
  0x51   : > { %1303 = vmatmul.mubr.bf16.gmra.mrb[20].mxu1 %v2496_v25  ;;  %1245 = vmatprep.mubr.bf16.mxu0 %v2499_v27 }
  0x52   : > { %2334 = vmatpush3.bf16.msra.mxu0 %v2497_v26  ;;  %1310 = vmatprep.mubr.bf16.mxu1 %v2501_v28 }
  0x53   : > { %2363 = vmatpush3.bf16.msra.mxu1 %v2497_v26  ;;  %2335 = vmatprep.subr.bf16.mxu0 %v2498_v29 }
  0x54   : > { %2356 = vmatprep.subr.bf16.mxu1 %v2498_v29 }
  0x56   : > { %2336 = vmatpush3.bf16.msra.mxu0 %v2498_v29 }
  0x57   : > { %2364 = vmatpush3.bf16.msra.mxu1 %v2498_v29  ;;  %2337 = vmatprep.subr.bf16.mxu0 %v2505_v32 }
  0x58   : > { %1246 = vmatmul.mubr.bf16.gmra.mrb[24].mxu0 %v2503_v30  ;;  %2357 = vmatprep.subr.bf16.mxu1 %v2505_v32 }
  0x59   : > { %1311 = vmatmul.mubr.bf16.gmra.mrb[24].mxu1 %v2504_v31  ;;  %1253 = vmatprep.mubr.bf16.mxu0 %v2507_v33 }
  0x5a   : > { %2338 = vmatpush3.bf16.msra.mxu0 %v2505_v32  ;;  %1318 = vmatprep.mubr.bf16.mxu1 %v2509_v34 }
  0x5b   : > { %2365 = vmatpush3.bf16.msra.mxu1 %v2505_v32  ;;  %2339 = vmatprep.subr.bf16.mxu0 %v2506_v35 }
  0x5c   : > { %2358 = vmatprep.subr.bf16.mxu1 %v2506_v35 }
  0x5e   : > { %2340 = vmatpush3.bf16.msra.mxu0 %v2506_v35 }
  0x5f   : > { %2366 = vmatpush3.bf16.msra.mxu1 %v2506_v35  ;;  %2341 = vmatprep.subr.bf16.mxu0 %v2513_v37 }
  0x60   : > { %1254 = vmatmul.mubr.bf16.gmra.mrb[28].mxu0 %v2511_v36  ;;  %2359 = vmatprep.subr.bf16.mxu1 %v2513_v37 }
  0x61   : > { %1319 = vmatmul.mubr.bf16.gmra.mrb[28].mxu1 %v2512_v38  ;;  %2345 = vmatprep.mubr.bf16.mxu0 %v2515_v39 }
  0x62   : > { %2342 = vmatpush3.bf16.msra.mxu0 %v2513_v37  ;;  %2349 = vmatprep.mubr.bf16.mxu1 %v2516_v40 }
  0x63   : > { %2367 = vmatpush3.bf16.msra.mxu1 %v2513_v37  ;;  %2343 = vmatprep.subr.bf16.mxu0 %v2514_v41 }
  0x64   : > { %2360 = vmatprep.subr.bf16.mxu1 %v2514_v41 }
  0x66   : > { %2344 = vmatpush3.bf16.msra.mxu0 %v2514_v41 }
  0x67   : > { %2368 = vmatpush3.bf16.msra.mxu1 %v2514_v41 }
  0x69   : > { %2346 = vmatmul.mubr.bf16.vlgmr.msra.gmra.mrb[32].mxu0 %v2517_v42 }
  0x6a   : > { %2350 = vmatmul.mubr.bf16.vlgmr.msra.gmra.mrb[32].mxu1 %v2518_v43 }
  0xfb   : > { %v2173_v44 = vpop.f32.mrb[0].mxu0 }
  0xfc   : > { %v2213_v45 = vpop.f32.mrb[0].mxu1  ;;  %v2174_v47 = vpop.f32.mrb[1].mxu0 }
  0xfd   : > { %v2175_v48 = vadd.f32 %v2174_v47, %v2173_v44  ;;  %v2214_v49 = vpop.f32.mrb[1].mxu1  ;;  %v2176_v50 = vpop.f32.mrb[2].mxu0 }
  0xfe   : > { %v2215_v51 = vadd.f32 %v2214_v49, %v2213_v45  ;;  %v2216_v52 = vpop.f32.mrb[2].mxu1  ;;  %v2177_v53 = vpop.f32.mrb[3].mxu0 }
  0xff   : > { %v1102_v54 = vadd.f32 %v2175_v48, %v1981_v46  ;;  %v2178_v55 = vadd.f32 %v2177_v53, %v2176_v50  ;;  %v2217_v56 = vpop.f32.mrb[3].mxu1 }
 0x100   : > { %v2218_v57 = vadd.f32 %v2217_v56, %v2216_v52 }
 0x101   : > { %v1167_v58 = vadd.f32 %v2215_v51, %v1102_v54  ;;  %v1105_v59 = vadd.f32 %v2178_v55, %v1981_v46 }
 0x103   : > { %v1170_v60 = vadd.f32 %v2218_v57, %v1105_v59  ;;  %v2179_v61 = vpop.f32.mrb[4].mxu0 }
 0x104   : > { %v2219_v62 = vpop.f32.mrb[4].mxu1  ;;  %v2180_v63 = vpop.f32.mrb[5].mxu0 }
 0x105   : > { %v2181_v0 = vadd.f32 %v2180_v63, %v2179_v61  ;;  %v2220_v1 = vpop.f32.mrb[5].mxu1  ;;  %v2182_v2 = vpop.f32.mrb[6].mxu0 }
 0x106   : > { %v2221_v3 = vadd.f32 %v2220_v1, %v2219_v62  ;;  %v2222_v4 = vpop.f32.mrb[6].mxu1  ;;  %v2183_v5 = vpop.f32.mrb[7].mxu0 }
 0x107   : > { %v1110_v6 = vadd.f32 %v2181_v0, %v1981_v46  ;;  %v2184_v7 = vadd.f32 %v2183_v5, %v2182_v2  ;;  %v2223_v8 = vpop.f32.mrb[7].mxu1 }
 0x108   : > { %v2224_v9 = vadd.f32 %v2223_v8, %v2222_v4 }
 0x109   : > { %v1175_v10 = vadd.f32 %v2221_v3, %v1110_v6  ;;  %v1113_v11 = vadd.f32 %v2184_v7, %v1981_v46 }
 0x10b   : > { %v1178_v12 = vadd.f32 %v2224_v9, %v1113_v11  ;;  %v2185_v13 = vpop.f32.mrb[8].mxu0 }
 0x10c   : > { %v2225_v14 = vpop.f32.mrb[8].mxu1  ;;  %v2186_v15 = vpop.f32.mrb[9].mxu0 }
 0x10d   : > { %v2187_v16 = vadd.f32 %v2186_v15, %v2185_v13  ;;  %v2226_v17 = vpop.f32.mrb[9].mxu1  ;;  %v2188_v18 = vpop.f32.mrb[10].mxu0 }
 0x10e   : > { %v2227_v19 = vadd.f32 %v2226_v17, %v2225_v14  ;;  %v2228_v20 = vpop.f32.mrb[10].mxu1  ;;  %v2189_v21 = vpop.f32.mrb[11].mxu0 }
 0x10f   : > { %v1118_v22 = vadd.f32 %v2187_v16, %v1981_v46  ;;  %v2190_v23 = vadd.f32 %v2189_v21, %v2188_v18  ;;  %v2229_v24 = vpop.f32.mrb[11].mxu1 }
 0x110   : > { %v2230_v25 = vadd.f32 %v2229_v24, %v2228_v20 }
 0x111   : > { %v1183_v26 = vadd.f32 %v2227_v19, %v1118_v22  ;;  %v1121_v27 = vadd.f32 %v2190_v23, %v1981_v46 }
 0x113   : > { %v1186_v28 = vadd.f32 %v2230_v25, %v1121_v27  ;;  %v2191_v29 = vpop.f32.mrb[12].mxu0 }
 0x114   : > { %v2231_v30 = vpop.f32.mrb[12].mxu1  ;;  %v2192_v31 = vpop.f32.mrb[13].mxu0 }
 0x115   : > { %v2232_v32 = vpop.f32.mrb[13].mxu1  ;;  %v2193_v33 = vadd.f32 %v2192_v31, %v2191_v29  ;;  %v2194_v35 = vpop.f32.mrb[14].mxu0 }
 0x116   : > { %v2233_v34 = vadd.f32 %v2232_v32, %v2231_v30  ;;  %v2234_v36 = vpop.f32.mrb[14].mxu1  ;;  %v2195_v37 = vpop.f32.mrb[15].mxu0 }
 0x117   : > { %v2235_v38 = vpop.f32.mrb[15].mxu1  ;;  %v1126_v39 = vadd.f32 %v2193_v33, %v1981_v46  ;;  %v2196_v40 = vadd.f32 %v2195_v37, %v2194_v35 }
 0x118   : > { %v2236_v41 = vadd.f32 %v2235_v38, %v2234_v36  ;;  %v2543_v38 = vmov 1983009808  }
 0x119   : > { %v1191_v42 = vadd.f32 %v2233_v34, %v1126_v39  ;;  %v1129_v43 = vadd.f32 %v2196_v40, %v1981_v46  ;;  %v1410_v39 = vunpack.c.l.s4 %v2543_v38  ;;  %v1412_v40 = vlaneseq }
 0x11b   : > { %v2849_v44 = vadd.f32 %v2236_v41, %v1129_v43  ;;  %v2253_v45 = vpop.f32.mrb[16].mxu0 }
 0x11c   : > { %v2254_v47 = vpop.f32.mrb[17].mxu0  ;;  %v2293_v48 = vpop.f32.mrb[16].mxu1 }
 0x11d   : > { %v2255_v49 = vadd.f32 %v2254_v47, %v2253_v45  ;;  %v2256_v50 = vpop.f32.mrb[18].mxu0  ;;  %v2294_v51 = vpop.f32.mrb[17].mxu1 }
 0x11e   : > { %v2257_v52 = vpop.f32.mrb[19].mxu0  ;;  %v2295_v54 = vadd.f32 %v2294_v51, %v2293_v48  ;;  %v2296_v55 = vpop.f32.mrb[18].mxu1  ;;  %v1413_v51 = vshrl.u32 %v1412_v40, 7 }
 0x11f   : > { %v1232_v53 = vadd.f32 %v2255_v49, %v1167_v58  ;;  %v2258_v56 = vadd.f32 %v2257_v52, %v2256_v50  ;;  %v2297_v57 = vpop.f32.mrb[19].mxu1  ;;  %v1411_v50 = vunpack.c.0.s8 %v1410_v39 }
 0x120   : > { %v2298_v61 = vadd.f32 %v2297_v57, %v2296_v55 }
 0x121   : > { %v1235_v59 = vadd.f32 %v2258_v56, %v1170_v60  ;;  %v1297_v62 = vadd.f32 %v2295_v54, %v1232_v53  ;;  %v2856_v55 = vsub.s32 %v1411_v50, %v1413_v51 }
 0x123   : > { %v2259_v63 = vpop.f32.mrb[20].mxu0  ;;  %v2851_v0 = vadd.f32 %v2298_v61, %v1235_v59 }
 0x124   : > { %v2260_v46 = vpop.f32.mrb[21].mxu0  ;;  %v2299_v1 = vpop.f32.mrb[20].mxu1 }
 0x125   : > { %v2261_v2 = vadd.f32 %v2260_v46, %v2259_v63  ;;  %v2262_v3 = vpop.f32.mrb[22].mxu0  ;;  %v2300_v4 = vpop.f32.mrb[21].mxu1 }
 0x126   : > { %v2263_v5 = vpop.f32.mrb[23].mxu0  ;;  %v2301_v7 = vadd.f32 %v2300_v4, %v2299_v1  ;;  %v2302_v8 = vpop.f32.mrb[22].mxu1 }
 0x127   : > { %v1240_v6 = vadd.f32 %v2261_v2, %v1175_v10  ;;  %v2264_v58 = vadd.f32 %v2263_v5, %v2262_v3  ;;  %v2303_v9 = vpop.f32.mrb[23].mxu1 }
 0x128   : > { %v2304_v13 = vadd.f32 %v2303_v9, %v2302_v8 }
 0x129   : > { %v1243_v11 = vadd.f32 %v2264_v58, %v1178_v12  ;;  %v1305_v14 = vadd.f32 %v2301_v7, %v1240_v6 }
 0x12b   : > { %v2265_v60 = vpop.f32.mrb[24].mxu0  ;;  %v1308_v15 = vadd.f32 %v2304_v13, %v1243_v11 }
 0x12c   : > { %v2266_v16 = vpop.f32.mrb[25].mxu0  ;;  %v2305_v17 = vpop.f32.mrb[24].mxu1 }
 0x12d   : > { %v2267_v18 = vadd.f32 %v2266_v16, %v2265_v60  ;;  %v2268_v19 = vpop.f32.mrb[26].mxu0  ;;  %v2306_v20 = vpop.f32.mrb[25].mxu1 }
 0x12e   : > { %v2269_v21 = vpop.f32.mrb[27].mxu0  ;;  %v2307_v23 = vadd.f32 %v2306_v20, %v2305_v17  ;;  %v2308_v24 = vpop.f32.mrb[26].mxu1 }
 0x12f   : > { %v1248_v22 = vadd.f32 %v2267_v18, %v1183_v26  ;;  %v2270_v25 = vadd.f32 %v2269_v21, %v2268_v19  ;;  %v2309_v10 = vpop.f32.mrb[27].mxu1 }
 0x130   : > { %v2310_v29 = vadd.f32 %v2309_v10, %v2308_v24 }
 0x131   : > { %v1251_v27 = vadd.f32 %v2270_v25, %v1186_v28  ;;  %v1313_v30 = vadd.f32 %v2307_v23, %v1248_v22 }
 0x133   : > { %v2271_v31 = vpop.f32.mrb[28].mxu0  ;;  %v2853_v12 = vadd.f32 %v2310_v29, %v1251_v27 }
 0x134   : > { %v2272_v32 = vpop.f32.mrb[29].mxu0  ;;  %v2311_v33 = vpop.f32.mrb[28].mxu1 }
 0x135   : > { %v2273_v34 = vadd.f32 %v2272_v32, %v2271_v31  ;;  %v2274_v35 = vpop.f32.mrb[30].mxu0  ;;  %v2312_v36 = vpop.f32.mrb[29].mxu1 }
 0x136   : > { %v2275_v37 = vpop.f32.mrb[31].mxu0  ;;  %v2313_v41 = vadd.f32 %v2312_v36, %v2311_v33  ;;  %v2314_v43 = vpop.f32.mrb[30].mxu1 }
 0x137   : > { %v1256_v26 = vadd.f32 %v2273_v34, %v1191_v42  ;;  %v2276_v45 = vadd.f32 %v2275_v37, %v2274_v35  ;;  %v2315_v47 = vpop.f32.mrb[31].mxu1 }
 0x138   : > { %v2316_v48 = vadd.f32 %v2315_v47, %v2314_v43 }
 0x139   : > { %v1259_v28 = vadd.f32 %v2276_v45, %v2849_v44  ;;  %v1321_v49 = vadd.f32 %v2313_v41, %v1256_v26 }
 0x13b   : > { %v1324_v52 = vadd.f32 %v2316_v48, %v1259_v28 }
 0x13c   : > { %v2347_v53 = vpop.f32.mrb[32].mxu0 }
 0x13d   : > { %v1370_v54 = vadd.f32 %v2347_v53, %v1305_v14  ;;  %v2351_v56 = vpop.f32.mrb[32].mxu1  ;;  %v1361_v57 = vpop.f32.mrb[33].mxu0 }
 0x13e   : > { %v1386_v59 = vadd.f32 %v2351_v56, %v1321_v49  ;;  %v1362_v61 = vadd.f32 %v1361_v57, %v1297_v62  ;;  %v1377_v42 = vpop.f32.mrb[33].mxu1  ;;  %v2348_v63 = vpop.f32.mrb[34].mxu0 }
 0x13f   : > { %v1394_v46 = vmax.f32 %v1370_v54, 0.0  ;;  %v1378_v1 = vadd.f32 %v1377_v42, %v1313_v30  ;;  %v1373_v2 = vadd.f32 %v2348_v63, %v1308_v15  ;;  %v2352_v3 = vpop.f32.mrb[34].mxu1  ;;  %v1364_v44 = vpop.f32.mrb[35].mxu0 }
 0x140   : > { %v1398_v4 = vmax.f32 %v1386_v59, 0.0  ;;  %v1389_v5 = vadd.f32 %v2352_v3, %v1324_v52  ;;  %v1365_v6 = vadd.f32 %v1364_v44, %v2851_v0  ;;  %v2859_v7 = vpop.f32.mrb[35].mxu1  ;;  %v1392_v62 = vmax.f32 %v1362_v61, 0.0 }
 0x141   : > { %v1442_v8 = vcombine.high %v1394_v46, %v1394_v46  ;;  %v1449_v58 = vrot.slane %v1394_v46, %v2856_v55  ;;  %v1396_v17 = vmax.f32 %v1378_v1, 0.0  ;;  %v1395_v18 = vmax.f32 %v1373_v2, 0.0 }
 0x142   : > { %v1510_v9 = vcombine.high %v1398_v4, %v1398_v4  ;;  %v1517_v11 = vrot.slane %v1398_v4, %v2856_v55  ;;  %v1408_v16 = vcombine.high %v1392_v62, %v1392_v62  ;;  %v2866_v10 = vrot.slane %v1392_v62, %v2856_v55 }
 0x143   : > { %v1456_v13 = vrot.slane %v1442_v8, %v2856_v55  ;;  %v1457_v14 = vcombine.high %v1449_v58, %v1449_v58  ;;  %v2098_v0 = vrot.slane %v1449_v58, 9  ;;  %v1476_v29 = vcombine.high %v1396_v17, %v1396_v17 }
 0x144   : > { %v1524_v60 = vrot.slane %v1510_v9, %v2856_v55  ;;  %v1525_v15 = vcombine.high %v1517_v11, %v1517_v11  ;;  %v2114_v21 = vrot.slane %v1517_v11, 9  ;;  %v2869_v27 = vrot.slane %v1408_v16, %v2856_v55 }
 0x145   : > { %v1458_v19 = vcombine.high %v1456_v13, %v1456_v13  ;;  %v2099_v20 = vrot.slane %v1457_v14, 9  ;;  %v2100_v22 = vrot.slane %v1456_v13, 9  ;;  %v1459_v30 = vcombine.high %v1395_v18, %v1395_v18 }
 0x146   : > { %v1526_v23 = vcombine.high %v1524_v60, %v1524_v60  ;;  %v2115_v24 = vrot.slane %v1525_v15, 9  ;;  %v2116_v25 = vrot.slane %v1524_v60, 9  ;;  %v1680_v32 = vmax.f32 %v1449_v58, %v2098_v0 }
 0x147   : > { %v2101_v31 = vrot.slane %v1458_v19, 9  ;;  %v1681_v33 = vmax.f32 %v1457_v14, %v2099_v20  ;;  %v1696_v34 = vmax.f32 %v1517_v11, %v2114_v21  ;;  %v1682_v35 = vmax.f32 %v1456_v13, %v2100_v22 }
 0x148   : > { %v1466_v36 = vrot.slane %v1395_v18, %v2856_v55  ;;  %v1473_v37 = vrot.slane %v1459_v30, %v2856_v55  ;;  %v1399_v38 = vmax.f32 %v1389_v5, 0.0  ;;  %v2117_v39 = vrot.slane %v1526_v23, 9 }
 0x149   : > { %v1697_v40 = vmax.f32 %v1525_v15, %v2115_v24  ;;  %v1698_v26 = vmax.f32 %v1524_v60, %v2116_v25  ;;  %v1423_v41 = vcombine.high %v2866_v10, %v2866_v10  ;;  %v1424_v43 = vcombine.high %v2869_v27, %v2869_v27 }
 0x14a   : > { %v1474_v45 = vcombine.high %v1466_v36, %v1466_v36  ;;  %v1475_v47 = vcombine.high %v1473_v37, %v1473_v37  ;;  %v2102_v28 = vrot.slane %v1466_v36, 9  ;;  %v1683_v48 = vmax.f32 %v1458_v19, %v2101_v31 }
 0x14b   : > { %v2090_v49 = vrot.slane %v2866_v10, 9  ;;  %v2104_v50 = vrot.slane %v1473_v37, 9  ;;  %v1527_v51 = vcombine.high %v1399_v38, %v1399_v38  ;;  %v1534_v56 = vrot.slane %v1399_v38, %v2856_v55 }
 0x14c   : > { %v2103_v52 = vrot.slane %v1474_v45, 9  ;;  %v2105_v53 = vrot.slane %v1475_v47, 9  ;;  %v1684_v54 = vmax.f32 %v1466_v36, %v2102_v28  ;;  %v2091_v57 = vrot.slane %v1423_v41, 9 }
 0x14d   : > { %v1686_v59 = vmax.f32 %v1473_v37, %v2104_v50  ;;  %v1541_v61 = vrot.slane %v1527_v51, %v2856_v55  ;;  %v1393_v42 = vmax.f32 %v1365_v6, 0.0  ;;  %v1542_v2 = vcombine.high %v1534_v56, %v1534_v56 }
 0x14e   : > { %v1685_v63 = vmax.f32 %v1474_v45, %v2103_v52  ;;  %v1687_v46 = vmax.f32 %v1475_v47, %v2105_v53  ;;  %v2880_v1 = vmax.f32 %v1680_v32, %v1684_v54  ;;  %v2118_v4 = vrot.slane %v1534_v56, 9 }
 0x14f   : > { %v2882_v3 = vmax.f32 %v1682_v35, %v1686_v59  ;;  %v1543_v44 = vcombine.high %v1541_v61, %v1541_v61  ;;  %v2120_v5 = vrot.slane %v1541_v61, 9  ;;  %v1483_v8 = vrot.slane %v1396_v17, %v2856_v55 }
 0x150   : > { %v2885_v58 = vmax.f32 %v1681_v33, %v1685_v63  ;;  %v2887_v9 = vmax.f32 %v1683_v48, %v1687_v46  ;;  %v2119_v11 = vrot.slane %v1542_v2, 9  ;;  %v1490_v62 = vrot.slane %v1476_v29, %v2856_v55 }
 0x151   : > { %v2121_v6 = vrot.slane %v1543_v44, 9  ;;  %v1700_v13 = vmax.f32 %v1534_v56, %v2118_v4  ;;  %v1702_v14 = vmax.f32 %v1541_v61, %v2120_v5  ;;  %v1699_v60 = vmax.f32 %v1526_v23, %v2117_v39 }
 0x152   : > { %v2092_v15 = vrot.slane %v2869_v27, 9  ;;  %v1701_v16 = vmax.f32 %v1542_v2, %v2119_v11  ;;  %v1425_v18 = vcombine.high %v1393_v42, %v1393_v42  ;;  %v1432_v17 = vrot.slane %v1393_v42, %v2856_v55 }
 0x153   : > { %v1703_v19 = vmax.f32 %v1543_v44, %v2121_v6  ;;  %v2891_v0 = vmax.f32 %v1696_v34, %v1700_v13  ;;  %v2893_v20 = vmax.f32 %v1698_v26, %v1702_v14  ;;  %v2093_v21 = vrot.slane %v1424_v43, 9 }
 0x154   : > { %v2896_v22 = vmax.f32 %v1697_v40, %v1701_v16  ;;  %v1491_v24 = vcombine.high %v1483_v8, %v1483_v8  ;;  %v1492_v25 = vcombine.high %v1490_v62, %v1490_v62  ;;  %v2106_v29 = vrot.slane %v1483_v8, 9 }
 0x155   : > { %v2898_v30 = vmax.f32 %v1699_v60, %v1703_v19  ;;  %v2108_v23 = vrot.slane %v1490_v62, 9  ;;  %v1439_v31 = vrot.slane %v1425_v18, %v2856_v55  ;;  %v1672_v32 = vmax.f32 %v2866_v10, %v2090_v49 }
 0x156   : > { %v1673_v33 = vmax.f32 %v1423_v41, %v2091_v57  ;;  %v1674_v34 = vmax.f32 %v2869_v27, %v2092_v15  ;;  %v1440_v35 = vcombine.high %v1432_v17, %v1432_v17  ;;  %v1675_v36 = vmax.f32 %v1424_v43, %v2093_v21 }
 0x157   : > { %v1441_v37 = vcombine.high %v1439_v31, %v1439_v31  ;;  %v2094_v38 = vrot.slane %v1432_v17, 9  ;;  %v2096_v39 = vrot.slane %v1439_v31, 9  ;;  %v2107_v40 = vrot.slane %v1491_v24, 9 }
 0x158   : > { %v2109_v26 = vrot.slane %v1492_v25, 9  ;;  %v1688_v45 = vmax.f32 %v1483_v8, %v2106_v29  ;;  %v2095_v47 = vrot.slane %v1440_v35, 9  ;;  %v1690_v28 = vmax.f32 %v1490_v62, %v2108_v23 }
 0x159   : > { %v2097_v48 = vrot.slane %v1441_v37, 9  ;;  %v1676_v50 = vmax.f32 %v1432_v17, %v2094_v38  ;;  %v1678_v51 = vmax.f32 %v1439_v31, %v2096_v39  ;;  %v2145_v10 = vpack.c.bf16 %v2880_v1, %v2880_v1 }
 0x15a   : > { %v2147_v27 = vpack.c.bf16 %v2882_v3, %v2882_v3  ;;  %v1677_v41 = vmax.f32 %v1440_v35, %v2095_v47  ;;  %v1381_v43 = vadd.f32 %v2859_v7, %v2853_v12  ;;  %v2146_v49 = vpack.c.bf16 %v2885_v58, %v2885_v58 }
 0x15b   : > { %v1679_v52 = vmax.f32 %v1441_v37, %v2097_v48  ;;  %v1704_v53 = vmax.f32 %v1672_v32, %v1676_v50  ;;  %v1706_v54 = vmax.f32 %v1674_v34, %v1678_v51  ;;  %v1689_v56 = vmax.f32 %v1491_v24, %v2107_v40 }
 0x15c   : > { %v1691_v57 = vmax.f32 %v1492_v25, %v2109_v26  ;;  %v1705_v59 = vmax.f32 %v1673_v33, %v1677_v41  ;;  %v1397_v61 = vmax.f32 %v1381_v43, 0.0  ;;  %v2148_v42 = vpack.c.bf16 %v2887_v9, %v2887_v9 }
 0x15d   : > { %v1707_v63 = vmax.f32 %v1675_v36, %v1679_v52  ;;  %v2141_v46 = vpack.c.bf16 %v1704_v53, %v1704_v53  ;;  %v2143_v1 = vpack.c.bf16 %v1706_v54, %v1706_v54  ;;  %v1788_v12 = vunpack.c.l.b16 %v2145_v10 }
 0x15e   : > { %v2142_v7 = vpack.c.bf16 %v1705_v59, %v1705_v59  ;;  %v1493_v2 = vcombine.high %v1397_v61, %v1397_v61  ;;  %v1500_v3 = vrot.slane %v1397_v61, %v2856_v55  ;;  %v1789_v44 = vunpack.c.l.b16 %v2146_v49 }
 0x15f   : > { %v1790_v4 = vunpack.c.l.b16 %v2147_v27  ;;  %v2144_v5 = vpack.c.bf16 %v1707_v63, %v1707_v63  ;;  %v1786_v8 = vunpack.c.l.b16 %v2143_v1  ;;  %v1791_v6 = vunpack.c.l.b16 %v2148_v42 }
 0x160   : > { %v1785_v58 = vunpack.c.l.b16 %v2142_v7  ;;  %v1507_v11 = vrot.slane %v1493_v2, %v2856_v55  ;;  %v1508_v62 = vcombine.high %v1500_v3, %v1500_v3  ;;  %v2110_v9 = vrot.slane %v1500_v3, 9 }
 0x161   : > { %v1784_v13 = vunpack.c.l.b16 %v2141_v46  ;;  %v1787_v14 = vunpack.c.l.b16 %v2144_v5  ;;  %v1803_v60 = vrot.slane %v1786_v8, 6  ;;  %v1809_v17 = vrot.slane %v1788_v12, 4 }
 0x162   : > { %v1800_v15 = vrot.slane %v1785_v58, 7  ;;  %v1509_v16 = vcombine.high %v1507_v11, %v1507_v11  ;;  %v2111_v18 = vrot.slane %v1508_v62, 9  ;;  %v2112_v19 = vrot.slane %v1507_v11, 9 }
 0x163   : > { %v1815_v21 = vrot.slane %v1790_v4, 2  ;;  %v1806_v24 = vrot.slane %v1787_v14, 5  ;;  %v1692_v25 = vmax.f32 %v1500_v3, %v2110_v9  ;;  %v1812_v32 = vrot.slane %v1789_v44, 3 }
 0x164   : > { %v1802_v29 = vsel %vm1801_vm0, %v1800_v15, %v1784_v13  ;;  %v2113_v23 = vrot.slane %v1509_v16, 9  ;;  %v1693_v31 = vmax.f32 %v1508_v62, %v2111_v18  ;;  %v1694_v55 = vmax.f32 %v1507_v11, %v2112_v19 }
 0x165   : > { %v2153_v33 = vpack.c.bf16 %v2891_v0, %v2891_v0  ;;  %v1805_v34 = vsel %vm1804_vm1, %v1803_v60, %v1802_v29  ;;  %v1712_v35 = vmax.f32 %v1688_v45, %v1692_v25  ;;  %v1818_v40 = vrot.slane %v1791_v6, 1 }
 0x166   : > { %v1808_v36 = vsel %vm1807_vm2, %v1806_v24, %v1805_v34  ;;  %v1695_v37 = vmax.f32 %v1509_v16, %v2113_v23  ;;  %v1713_v38 = vmax.f32 %v1689_v56, %v1693_v31  ;;  %v1714_v39 = vmax.f32 %v1690_v28, %v1694_v55 }
 0x167   : > { %v2154_v26 = vpack.c.bf16 %v2896_v22, %v2896_v22  ;;  %v1811_v47 = vsel %vm1810_vm3, %v1809_v17, %v1808_v36  ;;  %v2149_v48 = vpack.c.bf16 %v1712_v35, %v1712_v35  ;;  %v2155_v45 = vpack.c.bf16 %v2893_v20, %v2893_v20 }
 0x168   : > { %v1814_v50 = vsel %vm1813_vm4, %v1812_v32, %v1811_v47  ;;  %v1715_v51 = vmax.f32 %v1691_v57, %v1695_v37  ;;  %v2150_v0 = vpack.c.bf16 %v1713_v38, %v1713_v38  ;;  %v2151_v10 = vpack.c.bf16 %v1714_v39, %v1714_v39 }
 0x169   : > { %v2156_v27 = vpack.c.bf16 %v2898_v30, %v2898_v30  ;;  %v1817_v28 = vsel %vm1816_vm5, %v1815_v21, %v1814_v50  ;;  %v1796_v52 = vunpack.c.l.b16 %v2153_v33  ;;  %v1797_v53 = vunpack.c.l.b16 %v2154_v26 }
 0x16a   : > { %v1820_v22 = vsel %vm1819_vm6, %v1818_v40, %v1817_v28  ;;  %v2152_v41 = vpack.c.bf16 %v1715_v51, %v1715_v51  ;;  %v1793_v43 = vunpack.c.l.b16 %v2150_v0  ;;  %v1794_v49 = vunpack.c.l.b16 %v2151_v10 }
 0x16b   : > { %v1835_v54 = vpack.c.b16 %v1820_v22, %v1820_v22  ;;  %v1792_v56 = vunpack.c.l.b16 %v2149_v48  ;;  %v1798_v61 = vunpack.c.l.b16 %v2155_v45  ;;  %v1799_v30 = vunpack.c.l.b16 %v2156_v27 }
 0x16c   : > { %v1795_v57 = vunpack.c.l.b16 %v2152_v41  ;;  %v1821_v20 = vrot.slane %v1793_v43, 7  ;;  %v1823_v59 = vrot.slane %v1794_v49, 6  ;;  %v1827_v46 = vrot.slane %v1796_v52, 4 }
 0x16d   : > { %1839 = vst [vmem:[%s257_s12] sm:$0xf] %v1835_v54  ;;  %v1829_v12 = vrot.slane %v1797_v53, 3  ;;  %v1831_v2 = vrot.slane %v1798_v61, 2  ;;  %v1833_v44 = vrot.slane %v1799_v30, 1 }
 0x16e   : > { %v1822_v42 = vsel %vm1801_vm0, %v1821_v20, %v1792_v56  ;;  %v1825_v63 = vrot.slane %v1795_v57, 5 }
 0x16f   : > { %v1824_v1 = vsel %vm1804_vm1, %v1823_v59, %v1822_v42 }
 0x170   : > { %v1826_v7 = vsel %vm1807_vm2, %v1825_v63, %v1824_v1 }
 0x171   : > { %v1828_v3 = vsel %vm1810_vm3, %v1827_v46, %v1826_v7 }
 0x172   : > { %v1830_v4 = vsel %vm1813_vm4, %v1829_v12, %v1828_v3 }
 0x173   : > { %v1832_v5 = vsel %vm1816_vm5, %v1831_v2, %v1830_v4 }
 0x174   : > { %v1834_v8 = vsel %vm1819_vm6, %v1833_v44, %v1832_v5 }
 0x175   : > { %v1836_v58 = vpack.c.b16 %v1834_v8, %v1834_v8 }
 0x177   : > { %1840 = vst [vmem:[%s257_s12 + $0x4] sm:$0xf] %v1836_v58 }
 0x178 PF: > { %s13_s14 = sadd.s32 1, %s2541_s14   ;;  %s2954_s12 = smov %s2537_s13 }
 0x179   : > { %p10_p5 = scmp.ge.s32.totalorder %s13_s14, 6   ;;  %s2955_s13 = smov %s2957_s15 }
 0x17b   :  { %12 = sbr.rel (!%p10_p5) target bundleno = 2 (0x2), region = 68 }

// kernel: generator_loss.15
= control target key start
LH: loop header
LB: loop body
LE: loop exit
PB: predicated region body
PF: predicated region fallthrough
CT: control target
= control target key end

     0   :  { %v123_v0 = vmov 0.0   ;;  %s172_s2 = inlined_call_operand.vmem [shape: f32[1,128], index: 2, kind: output, shape index: {}]   ;;  %s173_s0 = inlined_call_operand.vmem [shape: bf16[64,128], index: 0, kind: input, shape index: {}]   ;;  %s174_s1 = inlined_call_operand.vmem [shape: bf16[64,128], index: 1, kind: input, shape index: {}]  }
   0x1   :  { %15 = vst [vmem:[%s172_s2] sm:$0x1] %v123_v0  ;;  %v85_v1 = vld [vmem:[%s173_s0] sm:$0xff]   ;;  %v116_v2 = vld [vmem:[%s173_s0 + $0x8] sm:$0xff]   ;;  %v117_v3 = vld [vmem:[%s173_s0 + $0x10] sm:$0xff]  }
   0x2   :  { %v86_v4 = vunpack.c.l.bf16 %v85_v1  ;;  %v87_v5 = vunpack.c.h.bf16 %v85_v1  ;;  %v90_v6 = vunpack.c.l.bf16 %v116_v2  ;;  %v91_v7 = vunpack.c.h.bf16 %v116_v2  ;;  %v101_v8 = vld [vmem:[%s174_s1] sm:$0xff]   ;;  %v119_v9 = vld [vmem:[%s174_s1 + $0x8] sm:$0xff]   ;;  %v120_v11 = vld [vmem:[%s174_s1 + $0x10] sm:$0xff]  }
   0x3   :  { %v94_v10 = vunpack.c.l.bf16 %v117_v3  ;;  %v118_v12 = vld [vmem:[%s173_s0 + $0x18] sm:$0xff]   ;;  %v102_v13 = vunpack.c.l.bf16 %v101_v8  ;;  %v103_v14 = vunpack.c.h.bf16 %v101_v8  ;;  %v106_v15 = vunpack.c.l.bf16 %v119_v9 }
   0x4   :  { %v107_v16 = vunpack.c.h.bf16 %v119_v9  ;;  %v121_v17 = vld [vmem:[%s174_s1 + $0x18] sm:$0xff]   ;;  %v95_v18 = vunpack.c.h.bf16 %v117_v3  ;;  %v110_v19 = vunpack.c.l.bf16 %v120_v11  ;;  %v111_v20 = vunpack.c.h.bf16 %v120_v11 }
   0x5   :  { %v48_v21 = vsub.f32 %v86_v4, %v102_v13  ;;  %v49_v22 = vsub.f32 %v87_v5, %v103_v14  ;;  %v50_v23 = vsub.f32 %v90_v6, %v106_v15  ;;  %v98_v25 = vunpack.c.l.bf16 %v118_v12 }
   0x6   :  { %v51_v24 = vsub.f32 %v91_v7, %v107_v16  ;;  %v114_v26 = vunpack.c.l.bf16 %v121_v17  ;;  %v52_v27 = vsub.f32 %v94_v10, %v110_v19  ;;  %v99_v31 = vunpack.c.h.bf16 %v118_v12 }
   0x7   :  { %v57_v28 = vmul.f32 %v48_v21, %v48_v21  ;;  %v58_v29 = vmul.f32 %v49_v22, %v49_v22  ;;  %v59_v30 = vmul.f32 %v50_v23, %v50_v23  ;;  %v115_v32 = vunpack.c.h.bf16 %v121_v17 }
   0x8   :  { %v53_v33 = vsub.f32 %v95_v18, %v111_v20  ;;  %v60_v34 = vmul.f32 %v51_v24, %v51_v24  ;;  %v54_v36 = vsub.f32 %v98_v25, %v114_v26  ;;  %v61_v37 = vmul.f32 %v52_v27, %v52_v27  ;;  %v56_v53 = vld [vmem:[%s172_s2] sm:$0x1] }
   0x9   :  { %v65_v35 = vadd.f32 %v58_v29, %v57_v28  ;;  %v55_v39 = vsub.f32 %v99_v31, %v115_v32 }
   0xa   :  { %v62_v40 = vmul.f32 %v53_v33, %v53_v33  ;;  %v63_v42 = vmul.f32 %v54_v36, %v54_v36 }
   0xb   :  { %v66_v38 = vadd.f32 %v65_v35, %v59_v30  ;;  %v64_v44 = vmul.f32 %v55_v39, %v55_v39 }
   0xd   :  { %v67_v41 = vadd.f32 %v66_v38, %v60_v34 }
   0xf   :  { %v68_v43 = vadd.f32 %v67_v41, %v61_v37 }
  0x11   :  { %v69_v45 = vadd.f32 %v68_v43, %v62_v40 }
  0x13   :  { %v70_v46 = vadd.f32 %v69_v45, %v63_v42 }
  0x15   :  { %v71_v47 = vadd.f32 %v70_v46, %v64_v44 }
  0x17   :  { %v72_v48 = vrot.slane %v71_v47, 4 }
  0x19   :  { %v73_v49 = vadd.f32 %v72_v48, %v71_v47 }
  0x1b   :  { %v74_v50 = vrot.slane %v73_v49, 2 }
  0x1d   :  { %v75_v51 = vadd.f32 %v74_v50, %v73_v49 }
  0x1f   :  { %v76_v52 = vrot.slane %v75_v51, 1 }
  0x21   :  { %v77_v54 = vadd.f32 %v76_v52, %v75_v51 }
  0x23   :  { %v78_v55 = vadd.f32 %v77_v54, %v56_v53 }
  0x25   :  { %79 = vst [vmem:[%s172_s2] sm:$0x1] %v78_v55 }

// kernel: generator_loss.13
= control target key start
LH: loop header
LB: loop body
LE: loop exit
PB: predicated region body
PF: predicated region fallthrough
CT: control target
= control target key end

     0   :  { %s2069_s12 = smov 0   ;;  %s2071_s13 = smov 0   ;;  %s2556_s0 = inlined_call_operand.vmem [shape: bf16[4,16,1152], index: 0, kind: input, shape index: {}]   ;;  %s2557_s1 = inlined_call_operand.vmem [shape: bf16[1152,256], index: 1, kind: input, shape index: {}]   ;;  %s2558_s2 = inlined_call_operand.vmem [shape: f32[1,256], index: 2, kind: input, shape index: {}]   ;;  %s2559_s3 = inlined_call_operand.vmem [shape: bf16[4,16,256], index: 3, kind: output, shape index: {}]  }
   0x1   :  { %s2073_s14 = smov 0  }
   0x2 LB: > { %s32_s15 = sadd.s32 1, %s2042_s13  ;;  %p1585_p0 = scmp.ge.s32.totalorder %s2046_s14, 1  ;;  %s2046_s14 = sphi %s2073_s14, %s13_s14   ;;  %s2042_s13 = sphi %s2071_s13, %s2561_s13   ;;  %s2038_s12 = sphi %s2069_s12, %s2560_s12  }
   0x3   : > { %p34_p1 = scmp.ge.s32.totalorder %s32_s15, 4  ;;  %p189_p2 = scmp.lt.s32.totalorder %s2046_s14, 5 }
   0x5   : > { %s2563_s15 = smov (%p34_p1, %s32_s15), 0  ;;  %p190_p3 = pnand %p1585_p0, %p189_p2 }
   0x6   : > { %v1795_v0 = vld [vmem:[%s2557_s1 + $0x4] ss:$8 sps:$4 sm:$0xff] (!%p190_p3)   ;;  %v1799_v2 = vld [vmem:[%s2557_s1] ss:$8 sps:$4 sm:$0xff] (!%p190_p3)   ;;  %v1801_v4 = vld [vmem:[%s2557_s1 + $0x14] ss:$8 sps:$4 sm:$0xff] (!%p190_p3)  }
   0x7   : > { %193 = sbr.rel (%p190_p3) target bundleno = 390 (0x186), region = 32  ;;  %v1797_v1 = vld [vmem:[%s2557_s1 + $0x204] ss:$8 sps:$4 sm:$0xff] (!%p190_p3)   ;;  %1207 = vmatprep.subr.bf16.mxu1 (!%p190_p3), %v1795_v0  ;;  %v1800_v3 = vld [vmem:[%s2557_s1 + $0x200] ss:$8 sps:$4 sm:$0xff] (!%p190_p3)   ;;  %p237_p4 = scmp.lt.s32.totalorder (!%p190_p3), %s2038_s12, 3 }
   0x8   : > { %1293 = vmatprep.subr.bf16.mxu0 (!%p190_p3), %v1797_v1  ;;  %1208 = vmatpush1.bf16.msra.mxu1 (!%p190_p3), %v1799_v2  ;;  %v1803_v5 = vld [vmem:[%s2557_s1 + $0x214] ss:$8 sps:$4 sm:$0xff] (!%p190_p3)   ;;  %v1805_v6 = vld [vmem:[%s2557_s1 + $0x10] ss:$8 sps:$4 sm:$0xff] (!%p190_p3)   ;;  %v1807_v8 = vld [vmem:[%s2557_s1 + $0x24] ss:$8 sps:$4 sm:$0xff] (!%p190_p3)  }
   0x9   : > { %1294 = vmatpush1.bf16.msra.mxu0 (!%p190_p3), %v1800_v3  ;;  %1209 = vmatprep.subr.bf16.mxu1 (!%p190_p3), %v1801_v4  ;;  %v1806_v7 = vld [vmem:[%s2557_s1 + $0x210] ss:$8 sps:$4 sm:$0xff] (!%p190_p3)   ;;  %v1809_v9 = vld [vmem:[%s2557_s1 + $0x224] ss:$8 sps:$4 sm:$0xff] (!%p190_p3)   ;;  %v1811_v10 = vld [vmem:[%s2557_s1 + $0x20] ss:$8 sps:$4 sm:$0xff] (!%p190_p3)  }
   0xa   : > { %1295 = vmatprep.subr.bf16.mxu0 (!%p190_p3), %v1803_v5  ;;  %v1812_v11 = vld [vmem:[%s2557_s1 + $0x220] ss:$8 sps:$4 sm:$0xff] (!%p190_p3)   ;;  %v1813_v12 = vld [vmem:[%s2557_s1 + $0x34] ss:$8 sps:$4 sm:$0xff] (!%p190_p3)   ;;  %v1817_v14 = vld [vmem:[%s2557_s1 + $0x30] ss:$8 sps:$4 sm:$0xff] (!%p190_p3)  }
   0xb   : > { %v1815_v13 = vld [vmem:[%s2557_s1 + $0x234] ss:$8 sps:$4 sm:$0xff] (!%p190_p3)   ;;  %v1818_v15 = vld [vmem:[%s2557_s1 + $0x230] ss:$8 sps:$4 sm:$0xff] (!%p190_p3)   ;;  %v1819_v16 = vld [vmem:[%s2557_s1 + $0x44] ss:$8 sps:$4 sm:$0xff] (!%p190_p3)  }
   0xc   : > { %1210 = vmatpush1.bf16.msra.mxu1 (!%p190_p3), %v1805_v6  ;;  %v1821_v17 = vld [vmem:[%s2557_s1 + $0x244] ss:$8 sps:$4 sm:$0xff] (!%p190_p3)   ;;  %v1823_v18 = vld [vmem:[%s2557_s1 + $0x40] ss:$8 sps:$4 sm:$0xff] (!%p190_p3)   ;;  %v1825_v20 = vld [vmem:[%s2557_s1 + $0x54] ss:$8 sps:$4 sm:$0xff] (!%p190_p3)  }
   0xd   : > { %1296 = vmatpush1.bf16.msra.mxu0 (!%p190_p3), %v1806_v7  ;;  %1211 = vmatprep.subr.bf16.mxu1 (!%p190_p3), %v1807_v8  ;;  %v1824_v19 = vld [vmem:[%s2557_s1 + $0x240] ss:$8 sps:$4 sm:$0xff] (!%p190_p3)   ;;  %v1827_v21 = vld [vmem:[%s2557_s1 + $0x254] ss:$8 sps:$4 sm:$0xff] (!%p190_p3)   ;;  %v1829_v22 = vld [vmem:[%s2557_s1 + $0x50] ss:$8 sps:$4 sm:$0xff] (!%p190_p3)  }
   0xe   : > { %1297 = vmatprep.subr.bf16.mxu0 %v1809_v9  ;;  %v1830_v23 = vld [vmem:[%s2557_s1 + $0x250] ss:$8 sps:$4 sm:$0xff]   ;;  %v1831_v24 = vld [vmem:[%s2557_s1 + $0x64] ss:$8 sps:$4 sm:$0xff]   ;;  %v1835_v26 = vld [vmem:[%s2557_s1 + $0x60] ss:$8 sps:$4 sm:$0xff]  }
   0xf   : > { %v1833_v25 = vld [vmem:[%s2557_s1 + $0x264] ss:$8 sps:$4 sm:$0xff]   ;;  %v1836_v27 = vld [vmem:[%s2557_s1 + $0x260] ss:$8 sps:$4 sm:$0xff]   ;;  %v1837_v28 = vld [vmem:[%s2557_s1 + $0x74] ss:$8 sps:$4 sm:$0xff]  }
  0x10   : > { %1212 = vmatpush1.bf16.msra.mxu1 %v1811_v10  ;;  %v1839_v29 = vld [vmem:[%s2557_s1 + $0x274] ss:$8 sps:$4 sm:$0xff]   ;;  %v1841_v30 = vld [vmem:[%s2557_s1 + $0x70] ss:$8 sps:$4 sm:$0xff]   ;;  %v1843_v32 = vld [vmem:[%s2557_s1 + $0x84] ss:$8 sps:$4 sm:$0xff]  }
  0x11   : > { %1298 = vmatpush1.bf16.msra.mxu0 %v1812_v11  ;;  %1213 = vmatprep.subr.bf16.mxu1 %v1813_v12  ;;  %v1842_v31 = vld [vmem:[%s2557_s1 + $0x270] ss:$8 sps:$4 sm:$0xff]   ;;  %v1845_v33 = vld [vmem:[%s2557_s1 + $0x284] ss:$8 sps:$4 sm:$0xff]   ;;  %v1847_v34 = vld [vmem:[%s2557_s1 + $0x80] ss:$8 sps:$4 sm:$0xff]  }
  0x12   : > { %1299 = vmatprep.subr.bf16.mxu0 %v1815_v13  ;;  %v1848_v35 = vld [vmem:[%s2557_s1 + $0x280] ss:$8 sps:$4 sm:$0xff]   ;;  %v1849_v36 = vld [vmem:[%s2557_s1 + $0x94] ss:$8 sps:$4 sm:$0xff]   ;;  %s2565_s12 = smov (!%p237_p4, %s2038_s12), 3 }
  0x13   : > { %v1851_v37 = vld [vmem:[%s2557_s1 + $0x294] ss:$8 sps:$4 sm:$0xff]   ;;  %v1853_v38 = vld [vmem:[%s2557_s1 + $0x90] ss:$8 sps:$4 sm:$0xff]   ;;  %v1855_v40 = vld [vmem:[%s2557_s1 + $0xa4] ss:$8 sps:$4 sm:$0xff]  }
  0x14   : > { %1214 = vmatpush1.bf16.msra.mxu1 %v1817_v14  ;;  %v1854_v39 = vld [vmem:[%s2557_s1 + $0x290] ss:$8 sps:$4 sm:$0xff]   ;;  %s1769_s29 = smul.u32 72, %s2565_s12  ;;  %v1857_v41 = vld [vmem:[%s2557_s1 + $0x2a4] ss:$8 sps:$4 sm:$0xff]  }
  0x15   : > { %1300 = vmatpush1.bf16.msra.mxu0 %v1818_v15  ;;  %1215 = vmatprep.subr.bf16.mxu1 %v1819_v16  ;;  %v1859_v42 = vld [vmem:[%s2557_s1 + $0xa0] ss:$8 sps:$4 sm:$0xff]   ;;  %v1861_v44 = vld [vmem:[%s2557_s1 + $0xb4] ss:$8 sps:$4 sm:$0xff]   ;;  %v1865_v46 = vld [vmem:[%s2557_s1 + $0xb0] ss:$8 sps:$4 sm:$0xff]  }
  0x16   : > { %1301 = vmatprep.subr.bf16.mxu0 %v1821_v17  ;;  %v1860_v43 = vld [vmem:[%s2557_s1 + $0x2a0] ss:$8 sps:$4 sm:$0xff]   ;;  %s2232_s17 = scalar_lea.vmem %s2556_s0, %s1769_s29  ;;  %v1863_v45 = vld [vmem:[%s2557_s1 + $0x2b4] ss:$8 sps:$4 sm:$0xff]   ;;  %v1866_v47 = vld [vmem:[%s2557_s1 + $0x2b0] ss:$8 sps:$4 sm:$0xff]  }
  0x17   : > { %v1893_v48 = vld [vmem:[%s2232_s17 + $0x4] ss:$36 sps:$4 sm:$0xff]   ;;  %v1899_v51 = vld [vmem:[%s2232_s17 + $0x14] ss:$36 sps:$4 sm:$0xff]  }
  0x18   : > { %1216 = vmatpush1.bf16.msra.mxu1 %v1823_v18  ;;  %v1867_v49 = vld [vmem:[%s2557_s1 + $0xc4] ss:$8 sps:$4 sm:$0xff]   ;;  %1239 = vmatprep.mubr.bf16.mxu1 %v1893_v48  ;;  %v1871_v52 = vld [vmem:[%s2557_s1 + $0xc0] ss:$8 sps:$4 sm:$0xff]   ;;  %v1873_v54 = vld [vmem:[%s2557_s1 + $0xd4] ss:$8 sps:$4 sm:$0xff]  }
  0x19   : > { %1302 = vmatpush1.bf16.msra.mxu0 %v1824_v19  ;;  %1217 = vmatprep.subr.bf16.mxu1 %v1825_v20  ;;  %v1869_v50 = vld [vmem:[%s2557_s1 + $0x2c4] ss:$8 sps:$4 sm:$0xff]   ;;  %v1872_v53 = vld [vmem:[%s2557_s1 + $0x2c0] ss:$8 sps:$4 sm:$0xff]   ;;  %v1875_v55 = vld [vmem:[%s2557_s1 + $0x2d4] ss:$8 sps:$4 sm:$0xff]  }
  0x1a   : > { %1303 = vmatprep.subr.bf16.mxu0 %v1827_v21  ;;  %1325 = vmatprep.mubr.bf16.mxu0 %v1899_v51  ;;  %v1877_v56 = vld [vmem:[%s2557_s1 + $0xd0] ss:$8 sps:$4 sm:$0xff]   ;;  %v1879_v58 = vld [vmem:[%s2557_s1 + $0xe4] ss:$8 sps:$4 sm:$0xff]   ;;  %v1883_v60 = vld [vmem:[%s2557_s1 + $0xe0] ss:$8 sps:$4 sm:$0xff]  }
  0x1b   : > { %v1878_v57 = vld [vmem:[%s2557_s1 + $0x2d0] ss:$8 sps:$4 sm:$0xff]   ;;  %v1881_v59 = vld [vmem:[%s2557_s1 + $0x2e4] ss:$8 sps:$4 sm:$0xff]   ;;  %v1884_v61 = vld [vmem:[%s2557_s1 + $0x2e0] ss:$8 sps:$4 sm:$0xff]  }
  0x1c   : > { %1218 = vmatpush1.bf16.msra.mxu1 %v1829_v22  ;;  %v1885_v62 = vld [vmem:[%s2557_s1 + $0xf4] ss:$8 sps:$4 sm:$0xff]   ;;  %v1889_v0 = vld [vmem:[%s2557_s1 + $0xf0] ss:$8 sps:$4 sm:$0xff]   ;;  %v1896_v2 = vld [vmem:[%s2557_s1 + $0x104] ss:$8 sps:$4 sm:$0xff]  }
  0x1d   : > { %1304 = vmatpush1.bf16.msra.mxu0 %v1830_v23  ;;  %1219 = vmatprep.subr.bf16.mxu1 %v1831_v24  ;;  %v1887_v63 = vld [vmem:[%s2557_s1 + $0x2f4] ss:$8 sps:$4 sm:$0xff]   ;;  %v1890_v1 = vld [vmem:[%s2557_s1 + $0x2f0] ss:$8 sps:$4 sm:$0xff]   ;;  %v1902_v3 = vld [vmem:[%s2557_s1 + $0x304] ss:$8 sps:$4 sm:$0xff]  }
  0x1e   : > { %1305 = vmatprep.subr.bf16.mxu0 %v1833_v25  ;;  %v1891_v4 = vld [vmem:[%s2232_s17] ss:$36 sps:$4 sm:$0xff]   ;;  %v1897_v6 = vld [vmem:[%s2232_s17 + $0x10] ss:$36 sps:$4 sm:$0xff]  }
  0x1f   : > { %v1894_v5 = vld [vmem:[%s2557_s1 + $0x100] ss:$8 sps:$4 sm:$0xff]   ;;  %v1905_v8 = vld [vmem:[%s2557_s1 + $0x114] ss:$8 sps:$4 sm:$0xff]   ;;  %v1903_v10 = vld [vmem:[%s2557_s1 + $0x110] ss:$8 sps:$4 sm:$0xff]  }
  0x20   : > { %1220 = vmatpush1.bf16.msra.mxu1 %v1835_v26  ;;  %v1900_v7 = vld [vmem:[%s2557_s1 + $0x300] ss:$8 sps:$4 sm:$0xff]   ;;  %v1908_v9 = vld [vmem:[%s2557_s1 + $0x314] ss:$8 sps:$4 sm:$0xff]   ;;  %v1906_v11 = vld [vmem:[%s2557_s1 + $0x310] ss:$8 sps:$4 sm:$0xff]  }
  0x21   : > { %1306 = vmatpush1.bf16.msra.mxu0 %v1836_v27  ;;  %1221 = vmatprep.subr.bf16.mxu1 %v1837_v28  ;;  %v1911_v12 = vld [vmem:[%s2557_s1 + $0x124] ss:$8 sps:$4 sm:$0xff]   ;;  %v1909_v14 = vld [vmem:[%s2557_s1 + $0x120] ss:$8 sps:$4 sm:$0xff]   ;;  %v1917_v16 = vld [vmem:[%s2557_s1 + $0x134] ss:$8 sps:$4 sm:$0xff]  }
  0x22   : > { %1307 = vmatprep.subr.bf16.mxu0 %v1839_v29  ;;  %v1914_v13 = vld [vmem:[%s2557_s1 + $0x324] ss:$8 sps:$4 sm:$0xff]   ;;  %v1912_v15 = vld [vmem:[%s2557_s1 + $0x320] ss:$8 sps:$4 sm:$0xff]   ;;  %v1920_v17 = vld [vmem:[%s2557_s1 + $0x334] ss:$8 sps:$4 sm:$0xff]  }
  0x23   : > { %v1915_v18 = vld [vmem:[%s2557_s1 + $0x130] ss:$8 sps:$4 sm:$0xff]   ;;  %v1923_v20 = vld [vmem:[%s2557_s1 + $0x144] ss:$8 sps:$4 sm:$0xff]   ;;  %v1921_v22 = vld [vmem:[%s2557_s1 + $0x140] ss:$8 sps:$4 sm:$0xff]  }
  0x24   : > { %1222 = vmatpush1.bf16.msra.mxu1 %v1841_v30  ;;  %v1918_v19 = vld [vmem:[%s2557_s1 + $0x330] ss:$8 sps:$4 sm:$0xff]   ;;  %v1926_v21 = vld [vmem:[%s2557_s1 + $0x344] ss:$8 sps:$4 sm:$0xff]   ;;  %v1924_v23 = vld [vmem:[%s2557_s1 + $0x340] ss:$8 sps:$4 sm:$0xff]  }
  0x25   : > { %1308 = vmatpush1.bf16.msra.mxu0 %v1842_v31  ;;  %1223 = vmatprep.subr.bf16.mxu1 %v1843_v32  ;;  %v1929_v24 = vld [vmem:[%s2557_s1 + $0x154] ss:$8 sps:$4 sm:$0xff]   ;;  %v1927_v26 = vld [vmem:[%s2557_s1 + $0x150] ss:$8 sps:$4 sm:$0xff]   ;;  %v1935_v28 = vld [vmem:[%s2557_s1 + $0x164] ss:$8 sps:$4 sm:$0xff]  }
  0x26   : > { %1309 = vmatprep.subr.bf16.mxu0 %v1845_v33  ;;  %v1932_v25 = vld [vmem:[%s2557_s1 + $0x354] ss:$8 sps:$4 sm:$0xff]   ;;  %v1930_v27 = vld [vmem:[%s2557_s1 + $0x350] ss:$8 sps:$4 sm:$0xff]   ;;  %v1938_v29 = vld [vmem:[%s2557_s1 + $0x364] ss:$8 sps:$4 sm:$0xff]  }
  0x27   : > { %v1933_v30 = vld [vmem:[%s2557_s1 + $0x160] ss:$8 sps:$4 sm:$0xff]   ;;  %v1941_v32 = vld [vmem:[%s2557_s1 + $0x174] ss:$8 sps:$4 sm:$0xff]  }
  0x28   : > { %1224 = vmatpush1.bf16.msra.mxu1 %v1847_v34  ;;  %v1936_v31 = vld [vmem:[%s2557_s1 + $0x360] ss:$8 sps:$4 sm:$0xff]   ;;  %v1944_v33 = vld [vmem:[%s2557_s1 + $0x374] ss:$8 sps:$4 sm:$0xff]   ;;  %v1995_v34 = vld [vmem:[%s2232_s17 + $0xc] ss:$36 sps:$4 sm:$0xff]  }
  0x29   : > { %1310 = vmatpush1.bf16.msra.mxu0 %v1848_v35  ;;  %1225 = vmatprep.subr.bf16.mxu1 %v1849_v36  ;;  %v1998_v35 = vld [vmem:[%s2232_s17 + $0x1c] ss:$36 sps:$4 sm:$0xff]   ;;  %v1939_v36 = vld [vmem:[%s2557_s1 + $0x170] ss:$8 sps:$4 sm:$0xff]  }
  0x2a   : > { %1311 = vmatprep.subr.bf16.mxu0 %v1851_v37  ;;  %v1942_v37 = vld [vmem:[%s2557_s1 + $0x370] ss:$8 sps:$4 sm:$0xff]   ;;  %v1957_v48 = vld [vmem:[%s2557_s1 + $0x1a0] ss:$8 sps:$4 sm:$0xff]   ;;  %v1968_v51 = vld [vmem:[%s2557_s1 + $0x3b4] ss:$8 sps:$4 sm:$0xff]  }
  0x2c   : > { %1226 = vmatpush1.bf16.msra.mxu1 %v1853_v38  ;;  %v1947_v38 = vld [vmem:[%s2557_s1 + $0x184] ss:$8 sps:$4 sm:$0xff]  }
  0x2d   : > { %1312 = vmatpush1.bf16.msra.mxu0 %v1854_v39  ;;  %1227 = vmatprep.subr.bf16.mxu1 %v1855_v40  ;;  %v1950_v39 = vld [vmem:[%s2557_s1 + $0x384] ss:$8 sps:$4 sm:$0xff]   ;;  %v1945_v40 = vld [vmem:[%s2557_s1 + $0x180] ss:$8 sps:$4 sm:$0xff]  }
  0x2e   : > { %1313 = vmatprep.subr.bf16.mxu0 %v1857_v41  ;;  %v1948_v41 = vld [vmem:[%s2557_s1 + $0x380] ss:$8 sps:$4 sm:$0xff]  }
  0x30   : > { %1228 = vmatpush1.bf16.msra.mxu1 %v1859_v42  ;;  %v1953_v42 = vld [vmem:[%s2557_s1 + $0x194] ss:$8 sps:$4 sm:$0xff]  }
  0x31   : > { %1314 = vmatpush1.bf16.msra.mxu0 %v1860_v43  ;;  %1229 = vmatprep.subr.bf16.mxu1 %v1861_v44  ;;  %v1956_v43 = vld [vmem:[%s2557_s1 + $0x394] ss:$8 sps:$4 sm:$0xff]   ;;  %v1951_v44 = vld [vmem:[%s2557_s1 + $0x190] ss:$8 sps:$4 sm:$0xff]  }
  0x32   : > { %1315 = vmatprep.subr.bf16.mxu0 %v1863_v45  ;;  %v1954_v45 = vld [vmem:[%s2557_s1 + $0x390] ss:$8 sps:$4 sm:$0xff]  }
  0x34   : > { %1230 = vmatpush1.bf16.msra.mxu1 %v1865_v46  ;;  %v1959_v46 = vld [vmem:[%s2557_s1 + $0x1a4] ss:$8 sps:$4 sm:$0xff]  }
  0x35   : > { %1316 = vmatpush1.bf16.msra.mxu0 %v1866_v47  ;;  %1231 = vmatprep.subr.bf16.mxu1 %v1867_v49  ;;  %v1962_v47 = vld [vmem:[%s2557_s1 + $0x3a4] ss:$8 sps:$4 sm:$0xff]   ;;  %v1960_v49 = vld [vmem:[%s2557_s1 + $0x3a0] ss:$8 sps:$4 sm:$0xff]  }
  0x36   : > { %1317 = vmatprep.subr.bf16.mxu0 %v1869_v50  ;;  %v1965_v50 = vld [vmem:[%s2557_s1 + $0x1b4] ss:$8 sps:$4 sm:$0xff]  }
  0x38   : > { %1232 = vmatpush1.bf16.msra.mxu1 %v1871_v52  ;;  %v1963_v52 = vld [vmem:[%s2557_s1 + $0x1b0] ss:$8 sps:$4 sm:$0xff]  }
  0x39   : > { %1318 = vmatpush1.bf16.msra.mxu0 %v1872_v53  ;;  %1233 = vmatprep.subr.bf16.mxu1 %v1873_v54  ;;  %v1966_v53 = vld [vmem:[%s2557_s1 + $0x3b0] ss:$8 sps:$4 sm:$0xff]   ;;  %v1971_v54 = vld [vmem:[%s2557_s1 + $0x1c4] ss:$8 sps:$4 sm:$0xff]  }
  0x3a   : > { %1319 = vmatprep.subr.bf16.mxu0 %v1875_v55  ;;  %v1974_v55 = vld [vmem:[%s2557_s1 + $0x3c4] ss:$8 sps:$4 sm:$0xff]  }
  0x3c   : > { %1234 = vmatpush1.bf16.msra.mxu1 %v1877_v56  ;;  %v1969_v56 = vld [vmem:[%s2557_s1 + $0x1c0] ss:$8 sps:$4 sm:$0xff]  }
  0x3d   : > { %1320 = vmatpush1.bf16.msra.mxu0 %v1878_v57  ;;  %1235 = vmatprep.subr.bf16.mxu1 %v1879_v58  ;;  %v1972_v57 = vld [vmem:[%s2557_s1 + $0x3c0] ss:$8 sps:$4 sm:$0xff]   ;;  %v1977_v58 = vld [vmem:[%s2557_s1 + $0x1d4] ss:$8 sps:$4 sm:$0xff]  }
  0x3e   : > { %1321 = vmatprep.subr.bf16.mxu0 %v1881_v59  ;;  %v1980_v59 = vld [vmem:[%s2557_s1 + $0x3d4] ss:$8 sps:$4 sm:$0xff]  }
  0x40   : > { %1236 = vmatpush1.bf16.msra.mxu1 %v1883_v60  ;;  %v1975_v60 = vld [vmem:[%s2557_s1 + $0x1d0] ss:$8 sps:$4 sm:$0xff]  }
  0x41   : > { %1322 = vmatpush1.bf16.msra.mxu0 %v1884_v61  ;;  %1237 = vmatprep.subr.bf16.mxu1 %v1885_v62  ;;  %v1978_v61 = vld [vmem:[%s2557_s1 + $0x3d0] ss:$8 sps:$4 sm:$0xff]   ;;  %v1983_v62 = vld [vmem:[%s2557_s1 + $0x1e4] ss:$8 sps:$4 sm:$0xff]  }
  0x42   : > { %1323 = vmatprep.subr.bf16.mxu0 %v1887_v63  ;;  %v1986_v63 = vld [vmem:[%s2557_s1 + $0x3e4] ss:$8 sps:$4 sm:$0xff]  }
  0x44   : > { %1238 = vmatpush1.bf16.msra.mxu1 %v1889_v0  ;;  %v1981_v0 = vld [vmem:[%s2557_s1 + $0x1e0] ss:$8 sps:$4 sm:$0xff]  }
  0x45   : > { %1324 = vmatpush1.bf16.msra.mxu0 %v1890_v1  ;;  %1250 = vmatprep.subr.bf16.mxu1 %v1896_v2  ;;  %v1984_v1 = vld [vmem:[%s2557_s1 + $0x3e0] ss:$8 sps:$4 sm:$0xff]   ;;  %v1989_v2 = vld [vmem:[%s2557_s1 + $0x1f4] ss:$8 sps:$4 sm:$0xff]  }
  0x46   : > { %1336 = vmatprep.subr.bf16.mxu0 %v1902_v3  ;;  %v1992_v3 = vld [vmem:[%s2557_s1 + $0x3f4] ss:$8 sps:$4 sm:$0xff]  }
  0x47   : > { %1240 = vmatmul.mubr.bf16.vlgmr.msra.gmra.mrb[0].mxu1 %v1891_v4  ;;  %v1987_v4 = vld [vmem:[%s2557_s1 + $0x1f0] ss:$8 sps:$4 sm:$0xff]  }
  0x48   : > { %1326 = vmatmul.mubr.bf16.vlgmr.msra.gmra.mrb[0].mxu0 %v1897_v6  ;;  %1251 = vmatpush1.bf16.msra.mxu1 %v1894_v5  ;;  %v1990_v5 = vld [vmem:[%s2557_s1 + $0x3f0] ss:$8 sps:$4 sm:$0xff]   ;;  %v2001_v6 = vld [vmem:[%s2557_s1 + $0x404] ss:$8 sps:$4 sm:$0xff]  }
  0x49   : > { %1337 = vmatpush1.bf16.msra.mxu0 %v1900_v7  ;;  %1252 = vmatprep.subr.bf16.mxu1 %v1905_v8  ;;  %v1993_v7 = vld [vmem:[%s2232_s17 + $0x8] ss:$36 sps:$4 sm:$0xff]   ;;  %v1996_v8 = vld [vmem:[%s2232_s17 + $0x18] ss:$36 sps:$4 sm:$0xff]  }
  0x4a   : > { %1338 = vmatprep.subr.bf16.mxu0 %v1908_v9  ;;  %1282 = vmatprep.mubr.bf16.mxu1 %v1995_v34  ;;  %v1999_v9 = vld [vmem:[%s2557_s1 + $0x400] ss:$8 sps:$4 sm:$0xff]  }
  0x4b   : > { %1368 = vmatprep.mubr.bf16.mxu0 %v1998_v35 }
  0x4c   : > { %1253 = vmatpush1.bf16.msra.mxu1 %v1903_v10  ;;  %v2004_v10 = vld [vmem:[%s2557_s1 + $0x414] ss:$8 sps:$4 sm:$0xff]  }
  0x4d   : > { %1339 = vmatpush1.bf16.msra.mxu0 %v1906_v11  ;;  %1254 = vmatprep.subr.bf16.mxu1 %v1911_v12  ;;  %v2002_v11 = vld [vmem:[%s2557_s1 + $0x410] ss:$8 sps:$4 sm:$0xff]   ;;  %v2048_v12 = vmov 0  }
  0x4e   : > { %1340 = vmatprep.subr.bf16.mxu0 %v1914_v13  ;;  %v2007_v13 = vld [vmem:[%s2557_s1 + $0x424] ss:$8 sps:$4 sm:$0xff]  }
  0x50   : > { %1255 = vmatpush1.bf16.msra.mxu1 %v1909_v14  ;;  %v2005_v14 = vld [vmem:[%s2557_s1 + $0x420] ss:$8 sps:$4 sm:$0xff]  }
  0x51   : > { %1341 = vmatpush1.bf16.msra.mxu0 %v1912_v15  ;;  %1256 = vmatprep.subr.bf16.mxu1 %v1917_v16  ;;  %v2010_v15 = vld [vmem:[%s2557_s1 + $0x434] ss:$8 sps:$4 sm:$0xff]   ;;  %v2008_v16 = vld [vmem:[%s2557_s1 + $0x430] ss:$8 sps:$4 sm:$0xff]  }
  0x52   : > { %1342 = vmatprep.subr.bf16.mxu0 %v1920_v17  ;;  %v2013_v17 = vld [vmem:[%s2557_s1 + $0x444] ss:$8 sps:$4 sm:$0xff]  }
  0x54   : > { %1257 = vmatpush1.bf16.msra.mxu1 %v1915_v18  ;;  %v2011_v18 = vld [vmem:[%s2557_s1 + $0x440] ss:$8 sps:$4 sm:$0xff]  }
  0x55   : > { %1343 = vmatpush1.bf16.msra.mxu0 %v1918_v19  ;;  %1258 = vmatprep.subr.bf16.mxu1 %v1923_v20  ;;  %v2016_v19 = vld [vmem:[%s2557_s1 + $0x454] ss:$8 sps:$4 sm:$0xff]   ;;  %v2014_v20 = vld [vmem:[%s2557_s1 + $0x450] ss:$8 sps:$4 sm:$0xff]  }
  0x56   : > { %1344 = vmatprep.subr.bf16.mxu0 %v1926_v21  ;;  %v2019_v21 = vld [vmem:[%s2557_s1 + $0x464] ss:$8 sps:$4 sm:$0xff]  }
  0x58   : > { %1259 = vmatpush1.bf16.msra.mxu1 %v1921_v22  ;;  %v2017_v22 = vld [vmem:[%s2557_s1 + $0x460] ss:$8 sps:$4 sm:$0xff]  }
  0x59   : > { %1345 = vmatpush1.bf16.msra.mxu0 %v1924_v23  ;;  %1260 = vmatprep.subr.bf16.mxu1 %v1929_v24  ;;  %v2022_v23 = vld [vmem:[%s2557_s1 + $0x474] ss:$8 sps:$4 sm:$0xff]   ;;  %v2020_v24 = vld [vmem:[%s2557_s1 + $0x470] ss:$8 sps:$4 sm:$0xff]  }
  0x5a   : > { %1346 = vmatprep.subr.bf16.mxu0 %v1932_v25  ;;  %v2023_v25 = vld [vmem:[%s2232_s17 + $0x20] ss:$36 sps:$4 sm:$0xff]   ;;  %s1746_s17 = sshll.u32 %s2565_s12, 4 }
  0x5b   : > { %s271_s22 = scalar_lea.vmem %s2559_s3, %s1746_s17 }
  0x5c   : > { %1261 = vmatpush1.bf16.msra.mxu1 %v1927_v26 }
  0x5d   : > { %1347 = vmatpush1.bf16.msra.mxu0 %v1930_v27  ;;  %1262 = vmatprep.subr.bf16.mxu1 %v1935_v28 }
  0x5e   : > { %1348 = vmatprep.subr.bf16.mxu0 %v1938_v29 }
  0x60   : > { %1263 = vmatpush1.bf16.msra.mxu1 %v1933_v30  ;;  %v431_v30 = vlaneseq }
  0x61   : > { %1349 = vmatpush1.bf16.msra.mxu0 %v1936_v31  ;;  %1264 = vmatprep.subr.bf16.mxu1 %v1941_v32 }
  0x62   : > { %1350 = vmatprep.subr.bf16.mxu0 %v1944_v33  ;;  %v432_v31 = vshrl.u32 %v431_v30, 7  ;;  %v429_v33 = vld [vmem:[%s2558_s2] sm:$0x3] }
  0x64   : > { %1265 = vmatpush1.bf16.msra.mxu1 %v1939_v36  ;;  %v433_v32 = vsub.s32 0, %v432_v31  ;;  %v437_v34 = vsub.s32 1, %v432_v31 }
  0x65   : > { %1351 = vmatpush1.bf16.msra.mxu0 %v1942_v37  ;;  %1266 = vmatprep.subr.bf16.mxu1 %v1947_v38 }
  0x66   : > { %1352 = vmatprep.subr.bf16.mxu0 %v1950_v39  ;;  %v434_v35 = vrot.slane %v429_v33, %v433_v32  ;;  %v438_v36 = vrot.slane %v429_v33, %v437_v34 }
  0x68   : > { %1267 = vmatpush1.bf16.msra.mxu1 %v1945_v40 }
  0x69   : > { %1353 = vmatpush1.bf16.msra.mxu0 %v1948_v41  ;;  %1268 = vmatprep.subr.bf16.mxu1 %v1953_v42 }
  0x6a   : > { %1354 = vmatprep.subr.bf16.mxu0 %v1956_v43 }
  0x6c   : > { %1269 = vmatpush1.bf16.msra.mxu1 %v1951_v44 }
  0x6d   : > { %1355 = vmatpush1.bf16.msra.mxu0 %v1954_v45  ;;  %1270 = vmatprep.subr.bf16.mxu1 %v1959_v46 }
  0x6e   : > { %1356 = vmatprep.subr.bf16.mxu0 %v1962_v47 }
  0x70   : > { %1271 = vmatpush1.bf16.msra.mxu1 %v1957_v48 }
  0x71   : > { %1357 = vmatpush1.bf16.msra.mxu0 %v1960_v49  ;;  %1272 = vmatprep.subr.bf16.mxu1 %v1965_v50 }
  0x72   : > { %1358 = vmatprep.subr.bf16.mxu0 %v1968_v51 }
  0x74   : > { %1273 = vmatpush1.bf16.msra.mxu1 %v1963_v52 }
  0x75   : > { %1359 = vmatpush1.bf16.msra.mxu0 %v1966_v53  ;;  %1274 = vmatprep.subr.bf16.mxu1 %v1971_v54 }
  0x76   : > { %1360 = vmatprep.subr.bf16.mxu0 %v1974_v55 }
  0x78   : > { %1275 = vmatpush1.bf16.msra.mxu1 %v1969_v56 }
  0x79   : > { %1361 = vmatpush1.bf16.msra.mxu0 %v1972_v57  ;;  %1276 = vmatprep.subr.bf16.mxu1 %v1977_v58 }
  0x7a   : > { %1362 = vmatprep.subr.bf16.mxu0 %v1980_v59 }
  0x7c   : > { %1277 = vmatpush1.bf16.msra.mxu1 %v1975_v60 }
  0x7d   : > { %1363 = vmatpush1.bf16.msra.mxu0 %v1978_v61  ;;  %1278 = vmatprep.subr.bf16.mxu1 %v1983_v62 }
  0x7e   : > { %1364 = vmatprep.subr.bf16.mxu0 %v1986_v63 }
  0x80   : > { %1279 = vmatpush1.bf16.msra.mxu1 %v1981_v0 }
  0x81   : > { %1365 = vmatpush1.bf16.msra.mxu0 %v1984_v1  ;;  %1280 = vmatprep.subr.bf16.mxu1 %v1989_v2 }
  0x82   : > { %1366 = vmatprep.subr.bf16.mxu0 %v1992_v3 }
  0x84   : > { %1281 = vmatpush1.bf16.msra.mxu1 %v1987_v4 }
  0x85   : > { %1367 = vmatpush1.bf16.msra.mxu0 %v1990_v5 }
  0x86   : > { %1379 = vmatprep.subr.bf16.mxu0 %v2001_v6 }
  0x87   : > { %1283 = vmatmul.mubr.bf16.vlgmr.msra.gmra.mrb[0].mxu1 %v1993_v7 }
  0x88   : > { %1369 = vmatmul.mubr.bf16.vlgmr.msra.gmra.mrb[0].mxu0 %v1996_v8 }
  0x89   : > { %1380 = vmatpush1.bf16.msra.mxu0 %v1999_v9  ;;  %1411 = vmatprep.mubr.bf16.mxu0 %v2048_v12 }
  0x8a   : > { %1381 = vmatprep.subr.bf16.mxu0 %v2004_v10 }
  0x8d   : > { %1382 = vmatpush1.bf16.msra.mxu0 %v2002_v11 }
  0x8e   : > { %1383 = vmatprep.subr.bf16.mxu0 %v2007_v13 }
  0x91   : > { %1384 = vmatpush1.bf16.msra.mxu0 %v2005_v14 }
  0x92   : > { %1385 = vmatprep.subr.bf16.mxu0 %v2010_v15 }
  0x95   : > { %1386 = vmatpush1.bf16.msra.mxu0 %v2008_v16 }
  0x96   : > { %1387 = vmatprep.subr.bf16.mxu0 %v2013_v17 }
  0x99   : > { %1388 = vmatpush1.bf16.msra.mxu0 %v2011_v18 }
  0x9a   : > { %1389 = vmatprep.subr.bf16.mxu0 %v2016_v19 }
  0x9d   : > { %1390 = vmatpush1.bf16.msra.mxu0 %v2014_v20 }
  0x9e   : > { %1391 = vmatprep.subr.bf16.mxu0 %v2019_v21 }
  0xa1   : > { %1392 = vmatpush1.bf16.msra.mxu0 %v2017_v22 }
  0xa2   : > { %1393 = vmatprep.subr.bf16.mxu0 %v2022_v23 }
  0xa5   : > { %1394 = vmatpush1.bf16.msra.mxu0 %v2020_v24 }
  0xa8   : > { %1412 = vmatmul.mubr.bf16.vlgmr.msra.gmra.mrb[0].mxu0 %v2023_v25 }
 0x15a   : > { %v1284_v26 = vpop.f32.mrb[0].mxu1 }
 0x15b   : > { %v1286_v27 = vpop.f32.mrb[1].mxu1  ;;  %v1749_v37 = vadd.f32 %v1284_v26, %v434_v35 }
 0x15c   : > { %v1288_v28 = vpop.f32.mrb[2].mxu1  ;;  %v1751_v38 = vadd.f32 %v1286_v27, %v438_v36 }
 0x15d   : > { %v1290_v29 = vpop.f32.mrb[3].mxu1  ;;  %v1753_v40 = vadd.f32 %v1288_v28, %v434_v35 }
 0x15e   : > { %v1755_v43 = vadd.f32 %v1290_v29, %v438_v36 }
 0x17b   : > { %v1413_v39 = vpop.f32.mrb[0].mxu0 }
 0x17c   : > { %v1750_v41 = vadd.f32 %v1749_v37, %v1413_v39  ;;  %v1415_v42 = vpop.f32.mrb[1].mxu0 }
 0x17d   : > { %v1752_v44 = vadd.f32 %v1751_v38, %v1415_v42  ;;  %v1417_v45 = vpop.f32.mrb[2].mxu0 }
 0x17e   : > { %v1422_v46 = vmax.f32 %v1750_v41, 0.0  ;;  %v1754_v47 = vadd.f32 %v1753_v40, %v1417_v45  ;;  %v1419_v48 = vpop.f32.mrb[3].mxu0 }
 0x17f   : > { %v1423_v49 = vmax.f32 %v1752_v44, 0.0  ;;  %v1756_v50 = vadd.f32 %v1755_v43, %v1419_v48 }
 0x180   : > { %v1424_v51 = vmax.f32 %v1754_v47, 0.0 }
 0x181   : > { %v1747_v52 = vpack.c.bf16 %v1423_v49, %v1422_v46  ;;  %v1425_v53 = vmax.f32 %v1756_v50, 0.0 }
 0x183   : > { %1438 = vst [vmem:[%s271_s22] sm:$0xff] %v1747_v52  ;;  %v1748_v54 = vpack.c.bf16 %v1425_v53, %v1424_v51 }
 0x185   : > { %1439 = vst [vmem:[%s271_s22 + $0x8] sm:$0xff] %v1748_v54 }
 0x186 PF: > { %s13_s14 = sadd.s32 1, %s2046_s14   ;;  %s2560_s12 = smov %s2042_s13 }
 0x187   : > { %p10_p5 = scmp.ge.s32.totalorder %s13_s14, 6   ;;  %s2561_s13 = smov %s2563_s15 }
 0x189   :  { %12 = sbr.rel (!%p10_p5) target bundleno = 2 (0x2), region = 68 }

// kernel: generator_loss.14
= control target key start
LH: loop header
LB: loop body
LE: loop exit
PB: predicated region body
PF: predicated region fallthrough
CT: control target
= control target key end

     0   :  { %v39_v0 = vmov 0.0   ;;  %s76_s2 = inlined_call_operand.vmem [shape: f32[1,128], index: 2, kind: output, shape index: {}]   ;;  %s77_s0 = inlined_call_operand.vmem [shape: f32[16,128], index: 0, kind: input, shape index: {}]   ;;  %s78_s1 = inlined_call_operand.vmem [shape: f32[16,128], index: 1, kind: input, shape index: {}]  }
   0x1   :  { %15 = vst [vmem:[%s76_s2] sm:$0x1] %v39_v0  ;;  %v16_v1 = vld [vmem:[%s77_s0] sm:$0xff]  ;;  %v17_v2 = vld [vmem:[%s77_s0 + $0x8] sm:$0xff] }
   0x2   :  { %v18_v3 = vld [vmem:[%s78_s1] sm:$0xff]  ;;  %v19_v4 = vld [vmem:[%s78_s1 + $0x8] sm:$0xff] }
   0x3   :  { %v20_v5 = vsub.f32 %v16_v1, %v18_v3  ;;  %v21_v6 = vsub.f32 %v17_v2, %v19_v4 }
   0x5   :  { %v23_v7 = vmul.f32 %v20_v5, %v20_v5  ;;  %v24_v8 = vmul.f32 %v21_v6, %v21_v6 }
   0x7   :  { %v25_v9 = vadd.f32 %v24_v8, %v23_v7 }
   0x8   :  { %v22_v15 = vld [vmem:[%s76_s2] sm:$0x1] }
   0x9   :  { %v26_v10 = vrot.slane %v25_v9, 4 }
   0xb   :  { %v27_v11 = vadd.f32 %v26_v10, %v25_v9 }
   0xd   :  { %v28_v12 = vrot.slane %v27_v11, 2 }
   0xf   :  { %v29_v13 = vadd.f32 %v28_v12, %v27_v11 }
  0x11   :  { %v30_v14 = vrot.slane %v29_v13, 1 }
  0x13   :  { %v31_v16 = vadd.f32 %v30_v14, %v29_v13 }
  0x15   :  { %v32_v17 = vadd.f32 %v31_v16, %v22_v15 }
  0x17   :  { %33 = vst [vmem:[%s76_s2] sm:$0x1] %v32_v17 }

// kernel: generator_loss.8
= control target key start
LH: loop header
LB: loop body
LE: loop exit
PB: predicated region body
PF: predicated region fallthrough
CT: control target
= control target key end

     0   :  { %v28_v0 = vmov 0.0   ;;  %s51_s1 = inlined_call_operand.vmem [shape: f32[1,128], index: 1, kind: output, shape index: {}]   ;;  %s52_s0 = inlined_call_operand.vmem [shape: f32[8,128], index: 0, kind: input, shape index: {}]  }
   0x1   :  { %12 = vst [vmem:[%s51_s1] sm:$0x1] %v28_v0  ;;  %v14_v1 = vld [vmem:[%s52_s0] sm:$0xff] }
   0x2   :  { %v15_v2 = vrot.slane %v14_v1, 4 }
   0x4   :  { %v16_v3 = vadd.f32 %v15_v2, %v14_v1 }
   0x6   :  { %v17_v4 = vrot.slane %v16_v3, 2 }
   0x8   :  { %v18_v5 = vadd.f32 %v17_v4, %v16_v3  ;;  %v13_v7 = vld [vmem:[%s51_s1] sm:$0x1] }
   0xa   :  { %v19_v6 = vrot.slane %v18_v5, 1 }
   0xc   :  { %v20_v8 = vadd.f32 %v19_v6, %v18_v5 }
   0xe   :  { %v21_v9 = vadd.f32 %v20_v8, %v13_v7 }
  0x10   :  { %22 = vst [vmem:[%s51_s1] sm:$0x1] %v21_v9 }

</bundles_post_ra>
